<compile_context>
chip_gen: v7x
topology: tpu7x:2x2x1
jax: 0.10.0
libtpu: 0.0.40
codegen_flags: <defaults>
</compile_context>

<pallas_src>
import functools

import jax
import jax.numpy as jnp
from jax import lax
from jax.experimental import pallas as pl
from jax.experimental.pallas import tpu as pltpu

_EPS = 1e-5


def _vmem_limit_bytes():
    # Per-generation scoped-VMEM budget (v7x: 64 MiB physical, v5e/v6e: 128 MiB).
    # Fall back to a 32 MiB raise (needed on v5e where the default is 16 MiB).
    try:
        cap = int(pltpu.get_tpu_info().vmem_capacity_bytes)
        if cap <= 0:
            raise ValueError("bad vmem capacity")
        return max(32 * 1024 * 1024, min((cap * 3) // 4, 100 * 1024 * 1024))
    except Exception:
        return 32 * 1024 * 1024


# ---------------------------------------------------------------------------
# Shared conv3x3 "same" body (channel-major):
#   * 1-pixel halo staged in a bf16 VMEM scratch; only border strips zeroed.
#   * no im2col scratch: 9 accumulated MXU dots, bf16 operands, f32 accumulate.
#   * bias in the epilogue; lane-dense (1, Cout, Ho*Wo) output write.
#   * single-pass per-block BN partials (sum + centered M2) from the f32 acc.
# ---------------------------------------------------------------------------
def _conv3x3_body(act_chw, w_ref, b_ref, y_ref, ss_ref, xpad_ref,
                  Ho, Wo, Cin, Cout):
    HW = Ho * Wo
    pdt = xpad_ref.dtype

    # Zero only the halo border (interior fully overwritten below).
    zrow = jnp.zeros((Cin, 1, Wo + 2), pdt)
    zcol = jnp.zeros((Cin, Ho + 2, 1), pdt)
    xpad_ref[:, 0:1, :] = zrow
    xpad_ref[:, Ho + 1:Ho + 2, :] = zrow
    xpad_ref[:, :, 0:1] = zcol
    xpad_ref[:, :, Wo + 1:Wo + 2] = zcol
    xpad_ref[:, 1:Ho + 1, 1:Wo + 1] = act_chw.astype(pdt)

    # 9 tap matmuls: (Cout, Cin) bf16 @ (Cin, Ho*Wo) bf16 -> f32 accumulator.
    acc = jnp.zeros((Cout, HW), jnp.float32)
    for k in range(9):
        dy, dx = k // 3, k % 3
        tap = xpad_ref[:, dy:dy + Ho, dx:dx + Wo].reshape(Cin, HW)
        acc = acc + jnp.dot(w_ref[k], tap, preferred_element_type=jnp.float32)
    acc = acc + b_ref[...]                       # (Cout, 1) bias epilogue

    # Lane-dense output: last dim is the flattened spatial extent.
    y_ref[...] = acc.reshape(1, Cout, HW).astype(y_ref.dtype)

    # BN partials while the f32 accumulator is still live in VMEM:
    # per-channel sum and *centered* sum-of-squares (Chan-combinable).
    s1 = jnp.sum(acc, axis=1, keepdims=True)                 # (Cout, 1)
    mb = s1 * (1.0 / HW)
    d = acc - mb
    m2 = jnp.sum(d * d, axis=1, keepdims=True)               # (Cout, 1)
    ss_ref[:, :, 0:1] = s1.reshape(1, Cout, 1)
    ss_ref[:, :, 1:2] = m2.reshape(1, Cout, 1)


# ---------------------------------------------------------------------------
# Kernel A: 2x2/2 max-pool folded into the conv1 prologue.
# ---------------------------------------------------------------------------
def _pool_conv_kernel(x_ref, w_ref, b_ref, y_ref, ss_ref, xpad_ref,
                      *, Ho, Wo, Cin, Cout):
    # x_ref block: (Cin, Ho, 2, Wo, 2) -- a free contiguous view of NCHW.
    x = x_ref[...]
    m = jnp.maximum(x[:, :, 0, :, :], x[:, :, 1, :, :])      # (Cin, Ho, Wo, 2)
    pooled = jnp.maximum(m[:, :, :, 0], m[:, :, :, 1])       # (Cin, Ho, Wo)
    _conv3x3_body(pooled, w_ref, b_ref, y_ref, ss_ref, xpad_ref,
                  Ho, Wo, Cin, Cout)


# ---------------------------------------------------------------------------
# Kernel B: BN1 (folded affine) + ReLU as the conv2 prologue.
# ---------------------------------------------------------------------------
def _bn_relu_conv_kernel(x_ref, a_ref, c_ref, w_ref, b_ref, y_ref, ss_ref,
                         xpad_ref, *, Ho, Wo, Cin, Cout):
    x = x_ref[0].astype(jnp.float32)                         # (Cin, Ho*Wo)
    x = jnp.maximum(x * a_ref[...] + c_ref[...], 0.0)        # BN1 + ReLU
    _conv3x3_body(x.reshape(Cin, Ho, Wo), w_ref, b_ref, y_ref, ss_ref,
                  xpad_ref, Ho, Wo, Cin, Cout)


# ---------------------------------------------------------------------------
# Kernel C: BN2 (folded affine) + ReLU epilogue (already in NCHW layout).
# ---------------------------------------------------------------------------
def _bn_relu_kernel(x_ref, a_ref, c_ref, o_ref):
    x = x_ref[0].astype(jnp.float32)                         # (C, Ho*Wo)
    y = jnp.maximum(x * a_ref[...] + c_ref[...], 0.0)
    o_ref[...] = y[None, :, :].astype(o_ref.dtype)


# ---------------------------------------------------------------------------
# pallas_call wrappers
# ---------------------------------------------------------------------------
def _pool_conv(x_nchw, w9, b):
    N, Cin, H, W = x_nchw.shape
    Ho, Wo = H // 2, W // 2
    HW = Ho * Wo
    Cout = w9.shape[1]
    xr = x_nchw.reshape(N * Cin, Ho, 2, Wo, 2)       # free contiguous view
    kern = functools.partial(_pool_conv_kernel, Ho=Ho, Wo=Wo, Cin=Cin, Cout=Cout)
    return pl.pallas_call(
        kern,
        grid=(N,),
        in_specs=[
            pl.BlockSpec((Cin, Ho, 2, Wo, 2), lambda n: (n, 0, 0, 0, 0)),
            pl.BlockSpec((9, Cout, Cin), lambda n: (0, 0, 0)),
            pl.BlockSpec((Cout, 1), lambda n: (0, 0)),
        ],
        out_specs=(
            pl.BlockSpec((1, Cout, HW), lambda n: (n, 0, 0)),
            pl.BlockSpec((1, Cout, 2), lambda n: (n, 0, 0)),
        ),
        out_shape=(
            jax.ShapeDtypeStruct((N, Cout, HW), jnp.bfloat16),   # bf16 intermediate
            jax.ShapeDtypeStruct((N, Cout, 2), jnp.float32),
        ),
        scratch_shapes=[pltpu.VMEM((Cin, Ho + 2, Wo + 2), jnp.bfloat16)],
        compiler_params=pltpu.CompilerParams(
            dimension_semantics=("parallel",),
            vmem_limit_bytes=_vmem_limit_bytes()),
    )(xr, w9, b.reshape(Cout, 1))


def _bn_relu_conv(y1, a, c, w9, b):
    N, Cin, HW = y1.shape
    Cout = w9.shape[1]
    Ho = Wo = int(round(HW ** 0.5))
    kern = functools.partial(_bn_relu_conv_kernel, Ho=Ho, Wo=Wo, Cin=Cin, Cout=Cout)
    return pl.pallas_call(
        kern,
        grid=(N,),
        in_specs=[
            pl.BlockSpec((1, Cin, HW), lambda n: (n, 0, 0)),
            pl.BlockSpec((Cin, 1), lambda n: (0, 0)),
            pl.BlockSpec((Cin, 1), lambda n: (0, 0)),
            pl.BlockSpec((9, Cout, Cin), lambda n: (0, 0, 0)),
            pl.BlockSpec((Cout, 1), lambda n: (0, 0)),
        ],
        out_specs=(
            pl.BlockSpec((1, Cout, HW), lambda n: (n, 0, 0)),
            pl.BlockSpec((1, Cout, 2), lambda n: (n, 0, 0)),
        ),
        out_shape=(
            jax.ShapeDtypeStruct((N, Cout, HW), jnp.bfloat16),   # bf16 intermediate
            jax.ShapeDtypeStruct((N, Cout, 2), jnp.float32),
        ),
        scratch_shapes=[pltpu.VMEM((Cin, Ho + 2, Wo + 2), jnp.bfloat16)],
        compiler_params=pltpu.CompilerParams(
            dimension_semantics=("parallel",),
            vmem_limit_bytes=_vmem_limit_bytes()),
    )(y1, a, c, w9, b.reshape(Cout, 1))


def _bn_relu(y2, a, c):
    N, C, HW = y2.shape
    return pl.pallas_call(
        _bn_relu_kernel,
        grid=(N,),
        in_specs=[
            pl.BlockSpec((1, C, HW), lambda n: (n, 0, 0)),
            pl.BlockSpec((C, 1), lambda n: (0, 0)),
            pl.BlockSpec((C, 1), lambda n: (0, 0)),
        ],
        out_specs=pl.BlockSpec((1, C, HW), lambda n: (n, 0, 0)),
        out_shape=jax.ShapeDtypeStruct((N, C, HW), jnp.float32),
        compiler_params=pltpu.CompilerParams(
            dimension_semantics=("parallel",),
            vmem_limit_bytes=_vmem_limit_bytes()),
    )(y2, a, c)


def _fold_bn_stats(ss, gamma, beta, count_per_block, eps=_EPS):
    """Combine per-block (sum, centered M2) with Chan's formula, fold into BN affine."""
    s1 = ss[:, :, 0]                                   # (N, C)
    m2 = ss[:, :, 1]                                   # (N, C)
    nb = ss.shape[0]
    total = nb * count_per_block
    mean = jnp.sum(s1, axis=0) / total
    mb = s1 / count_per_block                          # per-block means
    M2 = jnp.sum(m2, axis=0) + count_per_block * jnp.sum((mb - mean[None, :]) ** 2, axis=0)
    var = M2 / total                                   # biased (training-mode)
    scale = gamma * lax.rsqrt(var + eps)
    shift = beta - mean * scale
    return (scale.reshape(-1, 1).astype(jnp.float32),
            shift.reshape(-1, 1).astype(jnp.float32))


# ---------------------------------------------------------------------------
# DownBlock forward (NCHW in / NCHW out, no transposes anywhere)
# ---------------------------------------------------------------------------
def down_block(x_nchw, params):
    """params = [(w OIHW, b, gamma, beta), (w OIHW, b, gamma, beta)]."""
    (w1, b1, g1, be1), (w2, b2, g2, be2) = params
    N, Cin, H, W = x_nchw.shape
    Ho, Wo = H // 2, W // 2
    HW = Ho * Wo
    C1, C2 = w1.shape[0], w2.shape[0]

    # OIHW -> (tap, Cout, Cin) bf16 MXU operands (f32 accumulation in-kernel).
    w1_9 = jnp.transpose(w1, (2, 3, 0, 1)).reshape(9, C1, Cin).astype(jnp.bfloat16)
    w2_9 = jnp.transpose(w2, (2, 3, 0, 1)).reshape(9, C2, C1).astype(jnp.bfloat16)

    y1, ss1 = _pool_conv(x_nchw, w1_9, b1)             # pool + conv1 + BN1 stats
    a1, c1 = _fold_bn_stats(ss1, g1, be1, HW)          # tiny per-channel glue
    y2, ss2 = _bn_relu_conv(y1, a1, c1, w2_9, b2)      # BN1+ReLU + conv2 + BN2 stats
    a2, c2 = _fold_bn_stats(ss2, g2, be2, HW)
    out = _bn_relu(y2, a2, c2)                         # BN2 + ReLU
    return out.reshape(N, C2, Ho, Wo)                  # free reshape (already NCHW)


# ---------------------------------------------------------------------------
# Pure-JAX reference (for correctness check)
# ---------------------------------------------------------------------------
def ref_down_block(x, params, eps=_EPS):
    x = lax.reduce_window(x, -jnp.inf, lax.max, (1, 1, 2, 2), (1, 1, 2, 2), "VALID")
    for (w, b, g, be) in params:
        x = lax.conv_general_dilated(
            x, w, (1, 1), "SAME",
            dimension_numbers=("NCHW", "OIHW", "NCHW"))
        x = x + b.reshape(1, -1, 1, 1)
        mean = jnp.mean(x, axis=(0, 2, 3), keepdims=True)
        var = jnp.mean((x - mean) ** 2, axis=(0, 2, 3), keepdims=True)
        x = (x - mean) * lax.rsqrt(var + eps) * g.reshape(1, -1, 1, 1) \
            + be.reshape(1, -1, 1, 1)
        x = jnp.maximum(x, 0.0)
    return x


if __name__ == "__main__":
    # Small shapes: DownBlock(input_size=4, output_size=8), x = (N=2, C=4, 16, 16)
    Cin, Cout = 4, 8
    N, H, W = 2, 16, 16

    key = jax.random.PRNGKey(0)
    k = jax.random.split(key, 9)
    x = jax.random.normal(k[0], (N, Cin, H, W), jnp.float32)

    # Deterministic parameter init (shapes match the nn.Module's __init__), OIHW.
    w1 = 0.1 * jax.random.normal(k[1], (Cout, Cin, 3, 3), jnp.float32)
    b1 = 0.1 * jax.random.normal(k[2], (Cout,), jnp.float32)
    g1 = 1.0 + 0.1 * jax.random.normal(k[3], (Cout,), jnp.float32)
    be1 = 0.1 * jax.random.normal(k[4], (Cout,), jnp.float32)
    w2 = 0.1 * jax.random.normal(k[5], (Cout, Cout, 3, 3), jnp.float32)
    b2 = 0.1 * jax.random.normal(k[6], (Cout,), jnp.float32)
    g2 = 1.0 + 0.1 * jax.random.normal(k[7], (Cout,), jnp.float32)
    be2 = 0.1 * jax.random.normal(k[8], (Cout,), jnp.float32)

    params = [(w1, b1, g1, be1), (w2, b2, g2, be2)]

    fwd = jax.jit(down_block)
    out = jax.block_until_ready(fwd(x, params))
    ref = jax.block_until_ready(ref_down_block(x, params))

    assert out.shape == (N, Cout, H // 2, W // 2), out.shape
    err = float(jnp.max(jnp.abs(out - ref)))
    # Loosened tolerance: bf16 MXU operands + bf16 inter-kernel intermediates
    # are compared against a pure-f32 reference (per performance review).
    assert jnp.allclose(out, ref, atol=7e-2, rtol=5e-2), err

    print("KERNEL_OK")
</pallas_src>

<mosaic_0001>
module attributes {stable_mosaic.version = 11 : i64} {
  func.func @_pool_conv_kernel(%arg0: i32, %arg1: memref<4x8x2x8x2xf32, #tpu.memory_space<vmem>>, %arg2: memref<9x8x4xbf16, #tpu.memory_space<vmem>>, %arg3: memref<8x1xf32, #tpu.memory_space<vmem>>, %arg4: memref<1x8x64xbf16, #tpu.memory_space<vmem>>, %arg5: memref<1x8x2xf32, #tpu.memory_space<vmem>>, %arg6: memref<4x10x10xbf16, #tpu.memory_space<vmem>>) attributes {dimension_semantics = [#tpu.dimension_semantics<parallel>], iteration_bounds = array<i64: 2>, scalar_prefetch = 0 : i64, scratch_operands = 1 : i64, tpu.core_type = #tpu.core_type<tc>, window_params = [{transform_indices = @transform_0, window_bounds = array<i64: 4, 8, 2, 8, 2>}, {pipeline_mode = #tpu.pipeline_mode<synchronous>, transform_indices = @transform_1, window_bounds = array<i64: 9, 8, 4>}, {pipeline_mode = #tpu.pipeline_mode<synchronous>, transform_indices = @transform_2, window_bounds = array<i64: 8, 1>}, {transform_indices = @transform_3, window_bounds = array<i64: 1, 8, 64>}, {transform_indices = @transform_4, window_bounds = array<i64: 1, 8, 2>}]} {
    %c0 = arith.constant 0 : index
    %c0_0 = arith.constant 0 : index
    %c0_1 = arith.constant 0 : index
    %c0_2 = arith.constant 0 : index
    %c0_3 = arith.constant 0 : index
    %0 = vector.load %arg1[%c0, %c0_0, %c0_1, %c0_2, %c0_3] : memref<4x8x2x8x2xf32, #tpu.memory_space<vmem>>, vector<4x8x2x8x2xf32>
    %1 = vector.extract_strided_slice %0 {offsets = [0, 0, 0, 0, 0], sizes = [4, 8, 1, 8, 2], strides = [1, 1, 1, 1, 1]} : vector<4x8x2x8x2xf32> to vector<4x8x1x8x2xf32>
    %2 = vector.shape_cast %1 : vector<4x8x1x8x2xf32> to vector<4x8x8x2xf32>
    %3 = vector.extract_strided_slice %0 {offsets = [0, 0, 1, 0, 0], sizes = [4, 8, 1, 8, 2], strides = [1, 1, 1, 1, 1]} : vector<4x8x2x8x2xf32> to vector<4x8x1x8x2xf32>
    %4 = vector.shape_cast %3 : vector<4x8x1x8x2xf32> to vector<4x8x8x2xf32>
    %5 = arith.maximumf %2, %4 : vector<4x8x8x2xf32>
    %6 = vector.extract_strided_slice %5 {offsets = [0, 0, 0, 0], sizes = [4, 8, 8, 1], strides = [1, 1, 1, 1]} : vector<4x8x8x2xf32> to vector<4x8x8x1xf32>
    %7 = vector.shape_cast %6 : vector<4x8x8x1xf32> to vector<4x8x8xf32>
    %8 = vector.extract_strided_slice %5 {offsets = [0, 0, 0, 1], sizes = [4, 8, 8, 1], strides = [1, 1, 1, 1]} : vector<4x8x8x2xf32> to vector<4x8x8x1xf32>
    %9 = vector.shape_cast %8 : vector<4x8x8x1xf32> to vector<4x8x8xf32>
    %10 = arith.maximumf %7, %9 : vector<4x8x8xf32>
    %cst = arith.constant 0.000000e+00 : bf16
    %11 = vector.broadcast %cst : bf16 to vector<4x1x10xbf16>
    %cst_4 = arith.constant 0.000000e+00 : bf16
    %12 = vector.broadcast %cst_4 : bf16 to vector<4x10x1xbf16>
    %c0_5 = arith.constant 0 : index
    %c0_6 = arith.constant 0 : index
    %c0_7 = arith.constant 0 : index
    %13 = vector.load %arg6[%c0_5, %c0_6, %c0_7] : memref<4x10x10xbf16, #tpu.memory_space<vmem>>, vector<4x1x10xbf16>
    tpu.vector_store %arg6[%c0_5, %c0_6, %c0_7], %11 {strides = array<i32>} : memref<4x10x10xbf16, #tpu.memory_space<vmem>>, vector<4x1x10xbf16>,
    %c0_8 = arith.constant 0 : index
    %c9 = arith.constant 9 : index
    %c0_9 = arith.constant 0 : index
    %14 = vector.load %arg6[%c0_8, %c9, %c0_9] : memref<4x10x10xbf16, #tpu.memory_space<vmem>>, vector<4x1x10xbf16>
    tpu.vector_store %arg6[%c0_8, %c9, %c0_9], %11 {strides = array<i32>} : memref<4x10x10xbf16, #tpu.memory_space<vmem>>, vector<4x1x10xbf16>,
    %c0_10 = arith.constant 0 : index
    %c0_11 = arith.constant 0 : index
    %c0_12 = arith.constant 0 : index
    %15 = vector.load %arg6[%c0_10, %c0_11, %c0_12] : memref<4x10x10xbf16, #tpu.memory_space<vmem>>, vector<4x10x1xbf16>
    tpu.vector_store %arg6[%c0_10, %c0_11, %c0_12], %12 {strides = array<i32>} : memref<4x10x10xbf16, #tpu.memory_space<vmem>>, vector<4x10x1xbf16>,
    %c0_13 = arith.constant 0 : index
    %c0_14 = arith.constant 0 : index
    %c9_15 = arith.constant 9 : index
    %16 = vector.load %arg6[%c0_13, %c0_14, %c9_15] : memref<4x10x10xbf16, #tpu.memory_space<vmem>>, vector<4x10x1xbf16>
    tpu.vector_store %arg6[%c0_13, %c0_14, %c9_15], %12 {strides = array<i32>} : memref<4x10x10xbf16, #tpu.memory_space<vmem>>, vector<4x10x1xbf16>,
    %17 = arith.truncf %10 : vector<4x8x8xf32> to vector<4x8x8xbf16>
    %c0_16 = arith.constant 0 : index
    %c1 = arith.constant 1 : index
    %c1_17 = arith.constant 1 : index
    %18 = vector.load %arg6[%c0_16, %c1, %c1_17] : memref<4x10x10xbf16, #tpu.memory_space<vmem>>, vector<4x8x8xbf16>
    tpu.vector_store %arg6[%c0_16, %c1, %c1_17], %17 {strides = array<i32>} : memref<4x10x10xbf16, #tpu.memory_space<vmem>>, vector<4x8x8xbf16>,
    %cst_18 = arith.constant 0.000000e+00 : f32
    %19 = vector.broadcast %cst_18 : f32 to vector<8x64xf32>
    %c0_19 = arith.constant 0 : index
    %c0_20 = arith.constant 0 : index
    %c0_21 = arith.constant 0 : index
    %20 = vector.load %arg6[%c0_19, %c0_20, %c0_21] : memref<4x10x10xbf16, #tpu.memory_space<vmem>>, vector<4x8x8xbf16>
    %21 = vector.shape_cast %20 : vector<4x8x8xbf16> to vector<4x64xbf16>
    %c0_22 = arith.constant 0 : index
    %c0_23 = arith.constant 0 : index
    %c0_24 = arith.constant 0 : index
    %22 = vector.load %arg2[%c0_22, %c0_23, %c0_24] : memref<9x8x4xbf16, #tpu.memory_space<vmem>>, vector<1x8x4xbf16>
    %23 = vector.shape_cast %22 : vector<1x8x4xbf16> to vector<8x4xbf16>
    %cst_25 = arith.constant dense<0.000000e+00> : vector<8x64xf32>
    %24 = tpu.matmul %23, %21, %cst_25 {dimension_numbers = #tpu.dot_dimension_numbers<[1], [0], [0], [1], [0, 0, 1, 1], [], []>} : vector<8x4xbf16>, vector<4x64xbf16>, vector<8x64xf32> -> vector<8x64xf32>
    %25 = arith.addf %19, %24 : vector<8x64xf32>
    %c0_26 = arith.constant 0 : index
    %c0_27 = arith.constant 0 : index
    %c1_28 = arith.constant 1 : index
    %26 = vector.load %arg6[%c0_26, %c0_27, %c1_28] : memref<4x10x10xbf16, #tpu.memory_space<vmem>>, vector<4x8x8xbf16>
    %27 = vector.shape_cast %26 : vector<4x8x8xbf16> to vector<4x64xbf16>
    %c1_29 = arith.constant 1 : index
    %c0_30 = arith.constant 0 : index
    %c0_31 = arith.constant 0 : index
    %28 = vector.load %arg2[%c1_29, %c0_30, %c0_31] : memref<9x8x4xbf16, #tpu.memory_space<vmem>>, vector<1x8x4xbf16>
    %29 = vector.shape_cast %28 : vector<1x8x4xbf16> to vector<8x4xbf16>
    %cst_32 = arith.constant dense<0.000000e+00> : vector<8x64xf32>
    %30 = tpu.matmul %29, %27, %cst_32 {dimension_numbers = #tpu.dot_dimension_numbers<[1], [0], [0], [1], [0, 0, 1, 1], [], []>} : vector<8x4xbf16>, vector<4x64xbf16>, vector<8x64xf32> -> vector<8x64xf32>
    %31 = arith.addf %25, %30 : vector<8x64xf32>
    %c0_33 = arith.constant 0 : index
    %c0_34 = arith.constant 0 : index
    %c2 = arith.constant 2 : index
    %32 = vector.load %arg6[%c0_33, %c0_34, %c2] : memref<4x10x10xbf16, #tpu.memory_space<vmem>>, vector<4x8x8xbf16>
    %33 = vector.shape_cast %32 : vector<4x8x8xbf16> to vector<4x64xbf16>
    %c2_35 = arith.constant 2 : index
    %c0_36 = arith.constant 0 : index
    %c0_37 = arith.constant 0 : index
    %34 = vector.load %arg2[%c2_35, %c0_36, %c0_37] : memref<9x8x4xbf16, #tpu.memory_space<vmem>>, vector<1x8x4xbf16>
    %35 = vector.shape_cast %34 : vector<1x8x4xbf16> to vector<8x4xbf16>
    %cst_38 = arith.constant dense<0.000000e+00> : vector<8x64xf32>
    %36 = tpu.matmul %35, %33, %cst_38 {dimension_numbers = #tpu.dot_dimension_numbers<[1], [0], [0], [1], [0, 0, 1, 1], [], []>} : vector<8x4xbf16>, vector<4x64xbf16>, vector<8x64xf32> -> vector<8x64xf32>
    %37 = arith.addf %31, %36 : vector<8x64xf32>
    %c0_39 = arith.constant 0 : index
    %c1_40 = arith.constant 1 : index
    %c0_41 = arith.constant 0 : index
    %38 = vector.load %arg6[%c0_39, %c1_40, %c0_41] : memref<4x10x10xbf16, #tpu.memory_space<vmem>>, vector<4x8x8xbf16>
    %39 = vector.shape_cast %38 : vector<4x8x8xbf16> to vector<4x64xbf16>
    %c3 = arith.constant 3 : index
    %c0_42 = arith.constant 0 : index
    %c0_43 = arith.constant 0 : index
    %40 = vector.load %arg2[%c3, %c0_42, %c0_43] : memref<9x8x4xbf16, #tpu.memory_space<vmem>>, vector<1x8x4xbf16>
    %41 = vector.shape_cast %40 : vector<1x8x4xbf16> to vector<8x4xbf16>
    %cst_44 = arith.constant dense<0.000000e+00> : vector<8x64xf32>
    %42 = tpu.matmul %41, %39, %cst_44 {dimension_numbers = #tpu.dot_dimension_numbers<[1], [0], [0], [1], [0, 0, 1, 1], [], []>} : vector<8x4xbf16>, vector<4x64xbf16>, vector<8x64xf32> -> vector<8x64xf32>
    %43 = arith.addf %37, %42 : vector<8x64xf32>
    %c0_45 = arith.constant 0 : index
    %c1_46 = arith.constant 1 : index
    %c1_47 = arith.constant 1 : index
    %44 = vector.load %arg6[%c0_45, %c1_46, %c1_47] : memref<4x10x10xbf16, #tpu.memory_space<vmem>>, vector<4x8x8xbf16>
    %45 = vector.shape_cast %44 : vector<4x8x8xbf16> to vector<4x64xbf16>
    %c4 = arith.constant 4 : index
    %c0_48 = arith.constant 0 : index
    %c0_49 = arith.constant 0 : index
    %46 = vector.load %arg2[%c4, %c0_48, %c0_49] : memref<9x8x4xbf16, #tpu.memory_space<vmem>>, vector<1x8x4xbf16>
    %47 = vector.shape_cast %46 : vector<1x8x4xbf16> to vector<8x4xbf16>
    %cst_50 = arith.constant dense<0.000000e+00> : vector<8x64xf32>
    %48 = tpu.matmul %47, %45, %cst_50 {dimension_numbers = #tpu.dot_dimension_numbers<[1], [0], [0], [1], [0, 0, 1, 1], [], []>} : vector<8x4xbf16>, vector<4x64xbf16>, vector<8x64xf32> -> vector<8x64xf32>
    %49 = arith.addf %43, %48 : vector<8x64xf32>
    %c0_51 = arith.constant 0 : index
    %c1_52 = arith.constant 1 : index
    %c2_53 = arith.constant 2 : index
    %50 = vector.load %arg6[%c0_51, %c1_52, %c2_53] : memref<4x10x10xbf16, #tpu.memory_space<vmem>>, vector<4x8x8xbf16>
    %51 = vector.shape_cast %50 : vector<4x8x8xbf16> to vector<4x64xbf16>
    %c5 = arith.constant 5 : index
    %c0_54 = arith.constant 0 : index
    %c0_55 = arith.constant 0 : index
    %52 = vector.load %arg2[%c5, %c0_54, %c0_55] : memref<9x8x4xbf16, #tpu.memory_space<vmem>>, vector<1x8x4xbf16>
    %53 = vector.shape_cast %52 : vector<1x8x4xbf16> to vector<8x4xbf16>
    %cst_56 = arith.constant dense<0.000000e+00> : vector<8x64xf32>
    %54 = tpu.matmul %53, %51, %cst_56 {dimension_numbers = #tpu.dot_dimension_numbers<[1], [0], [0], [1], [0, 0, 1, 1], [], []>} : vector<8x4xbf16>, vector<4x64xbf16>, vector<8x64xf32> -> vector<8x64xf32>
    %55 = arith.addf %49, %54 : vector<8x64xf32>
    %c0_57 = arith.constant 0 : index
    %c2_58 = arith.constant 2 : index
    %c0_59 = arith.constant 0 : index
    %56 = vector.load %arg6[%c0_57, %c2_58, %c0_59] : memref<4x10x10xbf16, #tpu.memory_space<vmem>>, vector<4x8x8xbf16>
    %57 = vector.shape_cast %56 : vector<4x8x8xbf16> to vector<4x64xbf16>
    %c6 = arith.constant 6 : index
    %c0_60 = arith.constant 0 : index
    %c0_61 = arith.constant 0 : index
    %58 = vector.load %arg2[%c6, %c0_60, %c0_61] : memref<9x8x4xbf16, #tpu.memory_space<vmem>>, vector<1x8x4xbf16>
    %59 = vector.shape_cast %58 : vector<1x8x4xbf16> to vector<8x4xbf16>
    %cst_62 = arith.constant dense<0.000000e+00> : vector<8x64xf32>
    %60 = tpu.matmul %59, %57, %cst_62 {dimension_numbers = #tpu.dot_dimension_numbers<[1], [0], [0], [1], [0, 0, 1, 1], [], []>} : vector<8x4xbf16>, vector<4x64xbf16>, vector<8x64xf32> -> vector<8x64xf32>
    %61 = arith.addf %55, %60 : vector<8x64xf32>
    %c0_63 = arith.constant 0 : index
    %c2_64 = arith.constant 2 : index
    %c1_65 = arith.constant 1 : index
    %62 = vector.load %arg6[%c0_63, %c2_64, %c1_65] : memref<4x10x10xbf16, #tpu.memory_space<vmem>>, vector<4x8x8xbf16>
    %63 = vector.shape_cast %62 : vector<4x8x8xbf16> to vector<4x64xbf16>
    %c7 = arith.constant 7 : index
    %c0_66 = arith.constant 0 : index
    %c0_67 = arith.constant 0 : index
    %64 = vector.load %arg2[%c7, %c0_66, %c0_67] : memref<9x8x4xbf16, #tpu.memory_space<vmem>>, vector<1x8x4xbf16>
    %65 = vector.shape_cast %64 : vector<1x8x4xbf16> to vector<8x4xbf16>
    %cst_68 = arith.constant dense<0.000000e+00> : vector<8x64xf32>
    %66 = tpu.matmul %65, %63, %cst_68 {dimension_numbers = #tpu.dot_dimension_numbers<[1], [0], [0], [1], [0, 0, 1, 1], [], []>} : vector<8x4xbf16>, vector<4x64xbf16>, vector<8x64xf32> -> vector<8x64xf32>
    %67 = arith.addf %61, %66 : vector<8x64xf32>
    %c0_69 = arith.constant 0 : index
    %c2_70 = arith.constant 2 : index
    %c2_71 = arith.constant 2 : index
    %68 = vector.load %arg6[%c0_69, %c2_70, %c2_71] : memref<4x10x10xbf16, #tpu.memory_space<vmem>>, vector<4x8x8xbf16>
    %69 = vector.shape_cast %68 : vector<4x8x8xbf16> to vector<4x64xbf16>
    %c8 = arith.constant 8 : index
    %c0_72 = arith.constant 0 : index
    %c0_73 = arith.constant 0 : index
    %70 = vector.load %arg2[%c8, %c0_72, %c0_73] : memref<9x8x4xbf16, #tpu.memory_space<vmem>>, vector<1x8x4xbf16>
    %71 = vector.shape_cast %70 : vector<1x8x4xbf16> to vector<8x4xbf16>
    %cst_74 = arith.constant dense<0.000000e+00> : vector<8x64xf32>
    %72 = tpu.matmul %71, %69, %cst_74 {dimension_numbers = #tpu.dot_dimension_numbers<[1], [0], [0], [1], [0, 0, 1, 1], [], []>} : vector<8x4xbf16>, vector<4x64xbf16>, vector<8x64xf32> -> vector<8x64xf32>
    %73 = arith.addf %67, %72 : vector<8x64xf32>
    %c0_75 = arith.constant 0 : index
    %c0_76 = arith.constant 0 : index
    %74 = vector.load %arg3[%c0_75, %c0_76] : memref<8x1xf32, #tpu.memory_space<vmem>>, vector<8x1xf32>
    %75 = vector.broadcast %74 : vector<8x1xf32> to vector<8x64xf32>
    %76 = arith.addf %73, %75 : vector<8x64xf32>
    %77 = vector.shape_cast %76 : vector<8x64xf32> to vector<1x8x64xf32>
    %78 = arith.truncf %77 : vector<1x8x64xf32> to vector<1x8x64xbf16>
    %c0_77 = arith.constant 0 : index
    %c0_78 = arith.constant 0 : index
    %c0_79 = arith.constant 0 : index
    %79 = vector.load %arg4[%c0_77, %c0_78, %c0_79] : memref<1x8x64xbf16, #tpu.memory_space<vmem>>, vector<1x8x64xbf16>
    tpu.vector_store %arg4[%c0_77, %c0_78, %c0_79], %78 {strides = array<i32>} : memref<1x8x64xbf16, #tpu.memory_space<vmem>>, vector<1x8x64xbf16>,
    %cst_80 = arith.constant dense<0.000000e+00> : vector<8xf32>
    %80 = vector.multi_reduction <add>, %76, %cst_80 [1] : vector<8x64xf32> to vector<8xf32>
    %81 = vector.shape_cast %80 : vector<8xf32> to vector<8x1xf32>
    %cst_81 = arith.constant 1.562500e-02 : f32
    %82 = vector.broadcast %cst_81 : f32 to vector<8x1xf32>
    %83 = arith.mulf %81, %82 : vector<8x1xf32>
    %84 = vector.broadcast %83 : vector<8x1xf32> to vector<8x64xf32>
    %85 = arith.subf %76, %84 : vector<8x64xf32>
    %86 = arith.mulf %85, %85 : vector<8x64xf32>
    %cst_82 = arith.constant dense<0.000000e+00> : vector<8xf32>
    %87 = vector.multi_reduction <add>, %86, %cst_82 [1] : vector<8x64xf32> to vector<8xf32>
    %88 = vector.shape_cast %87 : vector<8xf32> to vector<8x1xf32>
    %89 = vector.shape_cast %81 : vector<8x1xf32> to vector<1x8x1xf32>
    %c0_83 = arith.constant 0 : index
    %c0_84 = arith.constant 0 : index
    %c0_85 = arith.constant 0 : index
    %90 = vector.load %arg5[%c0_83, %c0_84, %c0_85] : memref<1x8x2xf32, #tpu.memory_space<vmem>>, vector<1x8x1xf32>
    tpu.vector_store %arg5[%c0_83, %c0_84, %c0_85], %89 {strides = array<i32>} : memref<1x8x2xf32, #tpu.memory_space<vmem>>, vector<1x8x1xf32>,
    %91 = vector.shape_cast %88 : vector<8x1xf32> to vector<1x8x1xf32>
    %c0_86 = arith.constant 0 : index
    %c0_87 = arith.constant 0 : index
    %c1_88 = arith.constant 1 : index
    %92 = vector.load %arg5[%c0_86, %c0_87, %c1_88] : memref<1x8x2xf32, #tpu.memory_space<vmem>>, vector<1x8x1xf32>
    tpu.vector_store %arg5[%c0_86, %c0_87, %c1_88], %91 {strides = array<i32>} : memref<1x8x2xf32, #tpu.memory_space<vmem>>, vector<1x8x1xf32>,
    return
  }
  func.func @transform_0(%arg0: i32) -> (i32, i32, i32, i32, i32) {
    %c0_i32 = arith.constant 0 : i32
    %c0_i32_0 = arith.constant 0 : i32
    %c0_i32_1 = arith.constant 0 : i32
    %c0_i32_2 = arith.constant 0 : i32
    %c0_i32_3 = arith.constant 0 : i32
    return %arg0, %c0_i32, %c0_i32_0, %c0_i32_1, %c0_i32_2 : i32, i32, i32, i32, i32
  }
  func.func @transform_1(%arg0: i32) -> (i32, i32, i32) {
    %c0_i32 = arith.constant 0 : i32
    %c0_i32_0 = arith.constant 0 : i32
    %c0_i32_1 = arith.constant 0 : i32
    %c0_i32_2 = arith.constant 0 : i32
    return %c0_i32, %c0_i32_0, %c0_i32_1 : i32, i32, i32
  }
  func.func @transform_2(%arg0: i32) -> (i32, i32) {
    %c0_i32 = arith.constant 0 : i32
    %c0_i32_0 = arith.constant 0 : i32
    %c0_i32_1 = arith.constant 0 : i32
    return %c0_i32, %c0_i32_0 : i32, i32
  }
  func.func @transform_3(%arg0: i32) -> (i32, i32, i32) {
    %c0_i32 = arith.constant 0 : i32
    %c0_i32_0 = arith.constant 0 : i32
    %c0_i32_1 = arith.constant 0 : i32
    return %arg0, %c0_i32, %c0_i32_0 : i32, i32, i32
  }
  func.func @transform_4(%arg0: i32) -> (i32, i32, i32) {
    %c0_i32 = arith.constant 0 : i32
    %c0_i32_0 = arith.constant 0 : i32
    %c0_i32_1 = arith.constant 0 : i32
    return %arg0, %c0_i32, %c0_i32_0 : i32, i32, i32
  }
}

module attributes {stable_mosaic.version = 11 : i64} {
  func.func @_bn_relu_kernel(%arg0: i32, %arg1: memref<1x8x64xbf16, #tpu.memory_space<vmem>>, %arg2: memref<8x1xf32, #tpu.memory_space<vmem>>, %arg3: memref<8x1xf32, #tpu.memory_space<vmem>>, %arg4: memref<1x8x64xf32, #tpu.memory_space<vmem>>) attributes {dimension_semantics = [#tpu.dimension_semantics<parallel>], iteration_bounds = array<i64: 2>, scalar_prefetch = 0 : i64, scratch_operands = 0 : i64, tpu.core_type = #tpu.core_type<tc>, window_params = [{transform_indices = @transform_0, window_bounds = array<i64: 1, 8, 64>}, {pipeline_mode = #tpu.pipeline_mode<synchronous>, transform_indices = @transform_1, window_bounds = array<i64: 8, 1>}, {pipeline_mode = #tpu.pipeline_mode<synchronous>, transform_indices = @transform_2, window_bounds = array<i64: 8, 1>}, {transform_indices = @transform_3, window_bounds = array<i64: 1, 8, 64>}]} {
    %c0 = arith.constant 0 : index
    %c0_0 = arith.constant 0 : index
    %c0_1 = arith.constant 0 : index
    %0 = vector.load %arg1[%c0, %c0_0, %c0_1] : memref<1x8x64xbf16, #tpu.memory_space<vmem>>, vector<1x8x64xbf16>
    %1 = vector.shape_cast %0 : vector<1x8x64xbf16> to vector<8x64xbf16>
    %2 = arith.extf %1 : vector<8x64xbf16> to vector<8x64xf32>
    %c0_2 = arith.constant 0 : index
    %c0_3 = arith.constant 0 : index
    %3 = vector.load %arg2[%c0_2, %c0_3] : memref<8x1xf32, #tpu.memory_space<vmem>>, vector<8x1xf32>
    %4 = vector.broadcast %3 : vector<8x1xf32> to vector<8x64xf32>
    %5 = arith.mulf %2, %4 : vector<8x64xf32>
    %c0_4 = arith.constant 0 : index
    %c0_5 = arith.constant 0 : index
    %6 = vector.load %arg3[%c0_4, %c0_5] : memref<8x1xf32, #tpu.memory_space<vmem>>, vector<8x1xf32>
    %7 = vector.broadcast %6 : vector<8x1xf32> to vector<8x64xf32>
    %8 = arith.addf %5, %7 : vector<8x64xf32>
    %cst = arith.constant 0.000000e+00 : f32
    %9 = vector.broadcast %cst : f32 to vector<8x64xf32>
    %10 = arith.maximumf %8, %9 : vector<8x64xf32>
    %11 = vector.shape_cast %10 : vector<8x64xf32> to vector<1x8x64xf32>
    %c0_6 = arith.constant 0 : index
    %c0_7 = arith.constant 0 : index
    %c0_8 = arith.constant 0 : index
    %12 = vector.load %arg4[%c0_6, %c0_7, %c0_8] : memref<1x8x64xf32, #tpu.memory_space<vmem>>, vector<1x8x64xf32>
    tpu.vector_store %arg4[%c0_6, %c0_7, %c0_8], %11 {strides = array<i32>} : memref<1x8x64xf32, #tpu.memory_space<vmem>>, vector<1x8x64xf32>,
    return
  }
  func.func @transform_0(%arg0: i32) -> (i32, i32, i32) {
    %c0_i32 = arith.constant 0 : i32
    %c0_i32_0 = arith.constant 0 : i32
    %c0_i32_1 = arith.constant 0 : i32
    return %arg0, %c0_i32, %c0_i32_0 : i32, i32, i32
  }
  func.func @transform_1(%arg0: i32) -> (i32, i32) {
    %c0_i32 = arith.constant 0 : i32
    %c0_i32_0 = arith.constant 0 : i32
    %c0_i32_1 = arith.constant 0 : i32
    return %c0_i32, %c0_i32_0 : i32, i32
  }
  func.func @transform_2(%arg0: i32) -> (i32, i32) {
    %c0_i32 = arith.constant 0 : i32
    %c0_i32_0 = arith.constant 0 : i32
    %c0_i32_1 = arith.constant 0 : i32
    return %c0_i32, %c0_i32_0 : i32, i32
  }
  func.func @transform_3(%arg0: i32) -> (i32, i32, i32) {
    %c0_i32 = arith.constant 0 : i32
    %c0_i32_0 = arith.constant 0 : i32
    %c0_i32_1 = arith.constant 0 : i32
    return %arg0, %c0_i32, %c0_i32_0 : i32, i32, i32
  }
}

module attributes {stable_mosaic.version = 11 : i64} {
  func.func @_bn_relu_conv_kernel(%arg0: i32, %arg1: memref<1x8x64xbf16, #tpu.memory_space<vmem>>, %arg2: memref<8x1xf32, #tpu.memory_space<vmem>>, %arg3: memref<8x1xf32, #tpu.memory_space<vmem>>, %arg4: memref<9x8x8xbf16, #tpu.memory_space<vmem>>, %arg5: memref<8x1xf32, #tpu.memory_space<vmem>>, %arg6: memref<1x8x64xbf16, #tpu.memory_space<vmem>>, %arg7: memref<1x8x2xf32, #tpu.memory_space<vmem>>, %arg8: memref<8x10x10xbf16, #tpu.memory_space<vmem>>) attributes {dimension_semantics = [#tpu.dimension_semantics<parallel>], iteration_bounds = array<i64: 2>, scalar_prefetch = 0 : i64, scratch_operands = 1 : i64, tpu.core_type = #tpu.core_type<tc>, window_params = [{transform_indices = @transform_0, window_bounds = array<i64: 1, 8, 64>}, {pipeline_mode = #tpu.pipeline_mode<synchronous>, transform_indices = @transform_1, window_bounds = array<i64: 8, 1>}, {pipeline_mode = #tpu.pipeline_mode<synchronous>, transform_indices = @transform_2, window_bounds = array<i64: 8, 1>}, {pipeline_mode = #tpu.pipeline_mode<synchronous>, transform_indices = @transform_3, window_bounds = array<i64: 9, 8, 8>}, {pipeline_mode = #tpu.pipeline_mode<synchronous>, transform_indices = @transform_4, window_bounds = array<i64: 8, 1>}, {transform_indices = @transform_5, window_bounds = array<i64: 1, 8, 64>}, {transform_indices = @transform_6, window_bounds = array<i64: 1, 8, 2>}]} {
    %c0 = arith.constant 0 : index
    %c0_0 = arith.constant 0 : index
    %c0_1 = arith.constant 0 : index
    %0 = vector.load %arg1[%c0, %c0_0, %c0_1] : memref<1x8x64xbf16, #tpu.memory_space<vmem>>, vector<1x8x64xbf16>
    %1 = vector.shape_cast %0 : vector<1x8x64xbf16> to vector<8x64xbf16>
    %2 = arith.extf %1 : vector<8x64xbf16> to vector<8x64xf32>
    %c0_2 = arith.constant 0 : index
    %c0_3 = arith.constant 0 : index
    %3 = vector.load %arg2[%c0_2, %c0_3] : memref<8x1xf32, #tpu.memory_space<vmem>>, vector<8x1xf32>
    %4 = vector.broadcast %3 : vector<8x1xf32> to vector<8x64xf32>
    %5 = arith.mulf %2, %4 : vector<8x64xf32>
    %c0_4 = arith.constant 0 : index
    %c0_5 = arith.constant 0 : index
    %6 = vector.load %arg3[%c0_4, %c0_5] : memref<8x1xf32, #tpu.memory_space<vmem>>, vector<8x1xf32>
    %7 = vector.broadcast %6 : vector<8x1xf32> to vector<8x64xf32>
    %8 = arith.addf %5, %7 : vector<8x64xf32>
    %cst = arith.constant 0.000000e+00 : f32
    %9 = vector.broadcast %cst : f32 to vector<8x64xf32>
    %10 = arith.maximumf %8, %9 : vector<8x64xf32>
    %11 = vector.shape_cast %10 : vector<8x64xf32> to vector<8x8x8xf32>
    %cst_6 = arith.constant 0.000000e+00 : bf16
    %12 = vector.broadcast %cst_6 : bf16 to vector<8x1x10xbf16>
    %cst_7 = arith.constant 0.000000e+00 : bf16
    %13 = vector.broadcast %cst_7 : bf16 to vector<8x10x1xbf16>
    %c0_8 = arith.constant 0 : index
    %c0_9 = arith.constant 0 : index
    %c0_10 = arith.constant 0 : index
    %14 = vector.load %arg8[%c0_8, %c0_9, %c0_10] : memref<8x10x10xbf16, #tpu.memory_space<vmem>>, vector<8x1x10xbf16>
    tpu.vector_store %arg8[%c0_8, %c0_9, %c0_10], %12 {strides = array<i32>} : memref<8x10x10xbf16, #tpu.memory_space<vmem>>, vector<8x1x10xbf16>,
    %c0_11 = arith.constant 0 : index
    %c9 = arith.constant 9 : index
    %c0_12 = arith.constant 0 : index
    %15 = vector.load %arg8[%c0_11, %c9, %c0_12] : memref<8x10x10xbf16, #tpu.memory_space<vmem>>, vector<8x1x10xbf16>
    tpu.vector_store %arg8[%c0_11, %c9, %c0_12], %12 {strides = array<i32>} : memref<8x10x10xbf16, #tpu.memory_space<vmem>>, vector<8x1x10xbf16>,
    %c0_13 = arith.constant 0 : index
    %c0_14 = arith.constant 0 : index
    %c0_15 = arith.constant 0 : index
    %16 = vector.load %arg8[%c0_13, %c0_14, %c0_15] : memref<8x10x10xbf16, #tpu.memory_space<vmem>>, vector<8x10x1xbf16>
    tpu.vector_store %arg8[%c0_13, %c0_14, %c0_15], %13 {strides = array<i32>} : memref<8x10x10xbf16, #tpu.memory_space<vmem>>, vector<8x10x1xbf16>,
    %c0_16 = arith.constant 0 : index
    %c0_17 = arith.constant 0 : index
    %c9_18 = arith.constant 9 : index
    %17 = vector.load %arg8[%c0_16, %c0_17, %c9_18] : memref<8x10x10xbf16, #tpu.memory_space<vmem>>, vector<8x10x1xbf16>
    tpu.vector_store %arg8[%c0_16, %c0_17, %c9_18], %13 {strides = array<i32>} : memref<8x10x10xbf16, #tpu.memory_space<vmem>>, vector<8x10x1xbf16>,
    %18 = arith.truncf %11 : vector<8x8x8xf32> to vector<8x8x8xbf16>
    %c0_19 = arith.constant 0 : index
    %c1 = arith.constant 1 : index
    %c1_20 = arith.constant 1 : index
    %19 = vector.load %arg8[%c0_19, %c1, %c1_20] : memref<8x10x10xbf16, #tpu.memory_space<vmem>>, vector<8x8x8xbf16>
    tpu.vector_store %arg8[%c0_19, %c1, %c1_20], %18 {strides = array<i32>} : memref<8x10x10xbf16, #tpu.memory_space<vmem>>, vector<8x8x8xbf16>,
    %cst_21 = arith.constant 0.000000e+00 : f32
    %20 = vector.broadcast %cst_21 : f32 to vector<8x64xf32>
    %c0_22 = arith.constant 0 : index
    %c0_23 = arith.constant 0 : index
    %c0_24 = arith.constant 0 : index
    %21 = vector.load %arg8[%c0_22, %c0_23, %c0_24] : memref<8x10x10xbf16, #tpu.memory_space<vmem>>, vector<8x8x8xbf16>
    %22 = vector.shape_cast %21 : vector<8x8x8xbf16> to vector<8x64xbf16>
    %c0_25 = arith.constant 0 : index
    %c0_26 = arith.constant 0 : index
    %c0_27 = arith.constant 0 : index
    %23 = vector.load %arg4[%c0_25, %c0_26, %c0_27] : memref<9x8x8xbf16, #tpu.memory_space<vmem>>, vector<1x8x8xbf16>
    %24 = vector.shape_cast %23 : vector<1x8x8xbf16> to vector<8x8xbf16>
    %cst_28 = arith.constant dense<0.000000e+00> : vector<8x64xf32>
    %25 = tpu.matmul %24, %22, %cst_28 {dimension_numbers = #tpu.dot_dimension_numbers<[1], [0], [0], [1], [0, 0, 1, 1], [], []>} : vector<8x8xbf16>, vector<8x64xbf16>, vector<8x64xf32> -> vector<8x64xf32>
    %26 = arith.addf %20, %25 : vector<8x64xf32>
    %c0_29 = arith.constant 0 : index
    %c0_30 = arith.constant 0 : index
    %c1_31 = arith.constant 1 : index
    %27 = vector.load %arg8[%c0_29, %c0_30, %c1_31] : memref<8x10x10xbf16, #tpu.memory_space<vmem>>, vector<8x8x8xbf16>
    %28 = vector.shape_cast %27 : vector<8x8x8xbf16> to vector<8x64xbf16>
    %c1_32 = arith.constant 1 : index
    %c0_33 = arith.constant 0 : index
    %c0_34 = arith.constant 0 : index
    %29 = vector.load %arg4[%c1_32, %c0_33, %c0_34] : memref<9x8x8xbf16, #tpu.memory_space<vmem>>, vector<1x8x8xbf16>
    %30 = vector.shape_cast %29 : vector<1x8x8xbf16> to vector<8x8xbf16>
    %cst_35 = arith.constant dense<0.000000e+00> : vector<8x64xf32>
    %31 = tpu.matmul %30, %28, %cst_35 {dimension_numbers = #tpu.dot_dimension_numbers<[1], [0], [0], [1], [0, 0, 1, 1], [], []>} : vector<8x8xbf16>, vector<8x64xbf16>, vector<8x64xf32> -> vector<8x64xf32>
    %32 = arith.addf %26, %31 : vector<8x64xf32>
    %c0_36 = arith.constant 0 : index
    %c0_37 = arith.constant 0 : index
    %c2 = arith.constant 2 : index
    %33 = vector.load %arg8[%c0_36, %c0_37, %c2] : memref<8x10x10xbf16, #tpu.memory_space<vmem>>, vector<8x8x8xbf16>
    %34 = vector.shape_cast %33 : vector<8x8x8xbf16> to vector<8x64xbf16>
    %c2_38 = arith.constant 2 : index
    %c0_39 = arith.constant 0 : index
    %c0_40 = arith.constant 0 : index
    %35 = vector.load %arg4[%c2_38, %c0_39, %c0_40] : memref<9x8x8xbf16, #tpu.memory_space<vmem>>, vector<1x8x8xbf16>
    %36 = vector.shape_cast %35 : vector<1x8x8xbf16> to vector<8x8xbf16>
    %cst_41 = arith.constant dense<0.000000e+00> : vector<8x64xf32>
    %37 = tpu.matmul %36, %34, %cst_41 {dimension_numbers = #tpu.dot_dimension_numbers<[1], [0], [0], [1], [0, 0, 1, 1], [], []>} : vector<8x8xbf16>, vector<8x64xbf16>, vector<8x64xf32> -> vector<8x64xf32>
    %38 = arith.addf %32, %37 : vector<8x64xf32>
    %c0_42 = arith.constant 0 : index
    %c1_43 = arith.constant 1 : index
    %c0_44 = arith.constant 0 : index
    %39 = vector.load %arg8[%c0_42, %c1_43, %c0_44] : memref<8x10x10xbf16, #tpu.memory_space<vmem>>, vector<8x8x8xbf16>
    %40 = vector.shape_cast %39 : vector<8x8x8xbf16> to vector<8x64xbf16>
    %c3 = arith.constant 3 : index
    %c0_45 = arith.constant 0 : index
    %c0_46 = arith.constant 0 : index
    %41 = vector.load %arg4[%c3, %c0_45, %c0_46] : memref<9x8x8xbf16, #tpu.memory_space<vmem>>, vector<1x8x8xbf16>
    %42 = vector.shape_cast %41 : vector<1x8x8xbf16> to vector<8x8xbf16>
    %cst_47 = arith.constant dense<0.000000e+00> : vector<8x64xf32>
    %43 = tpu.matmul %42, %40, %cst_47 {dimension_numbers = #tpu.dot_dimension_numbers<[1], [0], [0], [1], [0, 0, 1, 1], [], []>} : vector<8x8xbf16>, vector<8x64xbf16>, vector<8x64xf32> -> vector<8x64xf32>
    %44 = arith.addf %38, %43 : vector<8x64xf32>
    %c0_48 = arith.constant 0 : index
    %c1_49 = arith.constant 1 : index
    %c1_50 = arith.constant 1 : index
    %45 = vector.load %arg8[%c0_48, %c1_49, %c1_50] : memref<8x10x10xbf16, #tpu.memory_space<vmem>>, vector<8x8x8xbf16>
    %46 = vector.shape_cast %45 : vector<8x8x8xbf16> to vector<8x64xbf16>
    %c4 = arith.constant 4 : index
    %c0_51 = arith.constant 0 : index
    %c0_52 = arith.constant 0 : index
    %47 = vector.load %arg4[%c4, %c0_51, %c0_52] : memref<9x8x8xbf16, #tpu.memory_space<vmem>>, vector<1x8x8xbf16>
    %48 = vector.shape_cast %47 : vector<1x8x8xbf16> to vector<8x8xbf16>
    %cst_53 = arith.constant dense<0.000000e+00> : vector<8x64xf32>
    %49 = tpu.matmul %48, %46, %cst_53 {dimension_numbers = #tpu.dot_dimension_numbers<[1], [0], [0], [1], [0, 0, 1, 1], [], []>} : vector<8x8xbf16>, vector<8x64xbf16>, vector<8x64xf32> -> vector<8x64xf32>
    %50 = arith.addf %44, %49 : vector<8x64xf32>
    %c0_54 = arith.constant 0 : index
    %c1_55 = arith.constant 1 : index
    %c2_56 = arith.constant 2 : index
    %51 = vector.load %arg8[%c0_54, %c1_55, %c2_56] : memref<8x10x10xbf16, #tpu.memory_space<vmem>>, vector<8x8x8xbf16>
    %52 = vector.shape_cast %51 : vector<8x8x8xbf16> to vector<8x64xbf16>
    %c5 = arith.constant 5 : index
    %c0_57 = arith.constant 0 : index
    %c0_58 = arith.constant 0 : index
    %53 = vector.load %arg4[%c5, %c0_57, %c0_58] : memref<9x8x8xbf16, #tpu.memory_space<vmem>>, vector<1x8x8xbf16>
    %54 = vector.shape_cast %53 : vector<1x8x8xbf16> to vector<8x8xbf16>
    %cst_59 = arith.constant dense<0.000000e+00> : vector<8x64xf32>
    %55 = tpu.matmul %54, %52, %cst_59 {dimension_numbers = #tpu.dot_dimension_numbers<[1], [0], [0], [1], [0, 0, 1, 1], [], []>} : vector<8x8xbf16>, vector<8x64xbf16>, vector<8x64xf32> -> vector<8x64xf32>
    %56 = arith.addf %50, %55 : vector<8x64xf32>
    %c0_60 = arith.constant 0 : index
    %c2_61 = arith.constant 2 : index
    %c0_62 = arith.constant 0 : index
    %57 = vector.load %arg8[%c0_60, %c2_61, %c0_62] : memref<8x10x10xbf16, #tpu.memory_space<vmem>>, vector<8x8x8xbf16>
    %58 = vector.shape_cast %57 : vector<8x8x8xbf16> to vector<8x64xbf16>
    %c6 = arith.constant 6 : index
    %c0_63 = arith.constant 0 : index
    %c0_64 = arith.constant 0 : index
    %59 = vector.load %arg4[%c6, %c0_63, %c0_64] : memref<9x8x8xbf16, #tpu.memory_space<vmem>>, vector<1x8x8xbf16>
    %60 = vector.shape_cast %59 : vector<1x8x8xbf16> to vector<8x8xbf16>
    %cst_65 = arith.constant dense<0.000000e+00> : vector<8x64xf32>
    %61 = tpu.matmul %60, %58, %cst_65 {dimension_numbers = #tpu.dot_dimension_numbers<[1], [0], [0], [1], [0, 0, 1, 1], [], []>} : vector<8x8xbf16>, vector<8x64xbf16>, vector<8x64xf32> -> vector<8x64xf32>
    %62 = arith.addf %56, %61 : vector<8x64xf32>
    %c0_66 = arith.constant 0 : index
    %c2_67 = arith.constant 2 : index
    %c1_68 = arith.constant 1 : index
    %63 = vector.load %arg8[%c0_66, %c2_67, %c1_68] : memref<8x10x10xbf16, #tpu.memory_space<vmem>>, vector<8x8x8xbf16>
    %64 = vector.shape_cast %63 : vector<8x8x8xbf16> to vector<8x64xbf16>
    %c7 = arith.constant 7 : index
    %c0_69 = arith.constant 0 : index
    %c0_70 = arith.constant 0 : index
    %65 = vector.load %arg4[%c7, %c0_69, %c0_70] : memref<9x8x8xbf16, #tpu.memory_space<vmem>>, vector<1x8x8xbf16>
    %66 = vector.shape_cast %65 : vector<1x8x8xbf16> to vector<8x8xbf16>
    %cst_71 = arith.constant dense<0.000000e+00> : vector<8x64xf32>
    %67 = tpu.matmul %66, %64, %cst_71 {dimension_numbers = #tpu.dot_dimension_numbers<[1], [0], [0], [1], [0, 0, 1, 1], [], []>} : vector<8x8xbf16>, vector<8x64xbf16>, vector<8x64xf32> -> vector<8x64xf32>
    %68 = arith.addf %62, %67 : vector<8x64xf32>
    %c0_72 = arith.constant 0 : index
    %c2_73 = arith.constant 2 : index
    %c2_74 = arith.constant 2 : index
    %69 = vector.load %arg8[%c0_72, %c2_73, %c2_74] : memref<8x10x10xbf16, #tpu.memory_space<vmem>>, vector<8x8x8xbf16>
    %70 = vector.shape_cast %69 : vector<8x8x8xbf16> to vector<8x64xbf16>
    %c8 = arith.constant 8 : index
    %c0_75 = arith.constant 0 : index
    %c0_76 = arith.constant 0 : index
    %71 = vector.load %arg4[%c8, %c0_75, %c0_76] : memref<9x8x8xbf16, #tpu.memory_space<vmem>>, vector<1x8x8xbf16>
    %72 = vector.shape_cast %71 : vector<1x8x8xbf16> to vector<8x8xbf16>
    %cst_77 = arith.constant dense<0.000000e+00> : vector<8x64xf32>
    %73 = tpu.matmul %72, %70, %cst_77 {dimension_numbers = #tpu.dot_dimension_numbers<[1], [0], [0], [1], [0, 0, 1, 1], [], []>} : vector<8x8xbf16>, vector<8x64xbf16>, vector<8x64xf32> -> vector<8x64xf32>
    %74 = arith.addf %68, %73 : vector<8x64xf32>
    %c0_78 = arith.constant 0 : index
    %c0_79 = arith.constant 0 : index
    %75 = vector.load %arg5[%c0_78, %c0_79] : memref<8x1xf32, #tpu.memory_space<vmem>>, vector<8x1xf32>
    %76 = vector.broadcast %75 : vector<8x1xf32> to vector<8x64xf32>
    %77 = arith.addf %74, %76 : vector<8x64xf32>
    %78 = vector.shape_cast %77 : vector<8x64xf32> to vector<1x8x64xf32>
    %79 = arith.truncf %78 : vector<1x8x64xf32> to vector<1x8x64xbf16>
    %c0_80 = arith.constant 0 : index
    %c0_81 = arith.constant 0 : index
    %c0_82 = arith.constant 0 : index
    %80 = vector.load %arg6[%c0_80, %c0_81, %c0_82] : memref<1x8x64xbf16, #tpu.memory_space<vmem>>, vector<1x8x64xbf16>
    tpu.vector_store %arg6[%c0_80, %c0_81, %c0_82], %79 {strides = array<i32>} : memref<1x8x64xbf16, #tpu.memory_space<vmem>>, vector<1x8x64xbf16>,
    %cst_83 = arith.constant dense<0.000000e+00> : vector<8xf32>
    %81 = vector.multi_reduction <add>, %77, %cst_83 [1] : vector<8x64xf32> to vector<8xf32>
    %82 = vector.shape_cast %81 : vector<8xf32> to vector<8x1xf32>
    %cst_84 = arith.constant 1.562500e-02 : f32
    %83 = vector.broadcast %cst_84 : f32 to vector<8x1xf32>
    %84 = arith.mulf %82, %83 : vector<8x1xf32>
    %85 = vector.broadcast %84 : vector<8x1xf32> to vector<8x64xf32>
    %86 = arith.subf %77, %85 : vector<8x64xf32>
    %87 = arith.mulf %86, %86 : vector<8x64xf32>
    %cst_85 = arith.constant dense<0.000000e+00> : vector<8xf32>
    %88 = vector.multi_reduction <add>, %87, %cst_85 [1] : vector<8x64xf32> to vector<8xf32>
    %89 = vector.shape_cast %88 : vector<8xf32> to vector<8x1xf32>
    %90 = vector.shape_cast %82 : vector<8x1xf32> to vector<1x8x1xf32>
    %c0_86 = arith.constant 0 : index
    %c0_87 = arith.constant 0 : index
    %c0_88 = arith.constant 0 : index
    %91 = vector.load %arg7[%c0_86, %c0_87, %c0_88] : memref<1x8x2xf32, #tpu.memory_space<vmem>>, vector<1x8x1xf32>
    tpu.vector_store %arg7[%c0_86, %c0_87, %c0_88], %90 {strides = array<i32>} : memref<1x8x2xf32, #tpu.memory_space<vmem>>, vector<1x8x1xf32>,
    %92 = vector.shape_cast %89 : vector<8x1xf32> to vector<1x8x1xf32>
    %c0_89 = arith.constant 0 : index
    %c0_90 = arith.constant 0 : index
    %c1_91 = arith.constant 1 : index
    %93 = vector.load %arg7[%c0_89, %c0_90, %c1_91] : memref<1x8x2xf32, #tpu.memory_space<vmem>>, vector<1x8x1xf32>
    tpu.vector_store %arg7[%c0_89, %c0_90, %c1_91], %92 {strides = array<i32>} : memref<1x8x2xf32, #tpu.memory_space<vmem>>, vector<1x8x1xf32>,
    return
  }
  func.func @transform_0(%arg0: i32) -> (i32, i32, i32) {
    %c0_i32 = arith.constant 0 : i32
    %c0_i32_0 = arith.constant 0 : i32
    %c0_i32_1 = arith.constant 0 : i32
    return %arg0, %c0_i32, %c0_i32_0 : i32, i32, i32
  }
  func.func @transform_1(%arg0: i32) -> (i32, i32) {
    %c0_i32 = arith.constant 0 : i32
    %c0_i32_0 = arith.constant 0 : i32
    %c0_i32_1 = arith.constant 0 : i32
    return %c0_i32, %c0_i32_0 : i32, i32
  }
  func.func @transform_2(%arg0: i32) -> (i32, i32) {
    %c0_i32 = arith.constant 0 : i32
    %c0_i32_0 = arith.constant 0 : i32
    %c0_i32_1 = arith.constant 0 : i32
    return %c0_i32, %c0_i32_0 : i32, i32
  }
  func.func @transform_3(%arg0: i32) -> (i32, i32, i32) {
    %c0_i32 = arith.constant 0 : i32
    %c0_i32_0 = arith.constant 0 : i32
    %c0_i32_1 = arith.constant 0 : i32
    %c0_i32_2 = arith.constant 0 : i32
    return %c0_i32, %c0_i32_0, %c0_i32_1 : i32, i32, i32
  }
  func.func @transform_4(%arg0: i32) -> (i32, i32) {
    %c0_i32 = arith.constant 0 : i32
    %c0_i32_0 = arith.constant 0 : i32
    %c0_i32_1 = arith.constant 0 : i32
    return %c0_i32, %c0_i32_0 : i32, i32
  }
  func.func @transform_5(%arg0: i32) -> (i32, i32, i32) {
    %c0_i32 = arith.constant 0 : i32
    %c0_i32_0 = arith.constant 0 : i32
    %c0_i32_1 = arith.constant 0 : i32
    return %arg0, %c0_i32, %c0_i32_0 : i32, i32, i32
  }
  func.func @transform_6(%arg0: i32) -> (i32, i32, i32) {
    %c0_i32 = arith.constant 0 : i32
    %c0_i32_0 = arith.constant 0 : i32
    %c0_i32_1 = arith.constant 0 : i32
    return %arg0, %c0_i32, %c0_i32_0 : i32, i32, i32
  }
}

</mosaic_0001>

<bundles_post_ra>
// kernel: down_block.5
= control target key start
LH: loop header
LB: loop body
LE: loop exit
PB: predicated region body
PF: predicated region fallthrough
CT: control target
= control target key end

     0   :  { %s286_s12 = smov 0   ;;  %s309_s0 = inlined_call_operand.vmem [shape: bf16[2,8,64], index: 0, kind: input, shape index: {}]   ;;  %s310_s1 = inlined_call_operand.vmem [shape: f32[8,1], index: 1, kind: input, shape index: {}]   ;;  %s311_s2 = inlined_call_operand.vmem [shape: f32[8,1], index: 2, kind: input, shape index: {}]   ;;  %s312_s3 = inlined_call_operand.vmem [shape: f32[2,8,64], index: 3, kind: output, shape index: {}]  }
   0x1 LB: > { %s238_s13 = sadd.s32 4294967295, %s263_s12   ;;  %p242_p0 = scmp.ge.s32.totalorder %s263_s12, 1  ;;  %s263_s12 = sphi %s286_s12, %s13_s12  }
   0x2   : > { %p136_p1 = scmp.lt.s32.totalorder %s263_s12, 3 }
   0x4   : > { %p137_p2 = pnand %p242_p0, %p136_p1 }
   0x5   : > { %v168_v0 = vld [vmem:[%s310_s1] sm:$0xff] (!%p137_p2)  ;;  %v265_v1 = vmov (!%p137_p2), 0   ;;  %p158_p3 = scmp.lt.s32.totalorder (!%p137_p2), %s238_s13, 1  ;;  %vm183_vm0 = vcmask (!%p137_p2), 523264  }
   0x6   : > { %140 = sbr.rel (%p137_p2) target bundleno = 144 (0x90), region = 32  ;;  %256 = vset.pattern.permute.xlu0 (!%p137_p2), %v265_v1  ;;  %v175_v2 = vld [vmem:[%s311_s2] sm:$0xff] (!%p137_p2) }
   0x7   : > { %171 = vperm.xlu0 (!%p137_p2), %256, %v168_v0  }
   0xb   : > { %178 = vperm.xlu0 (!%p137_p2), %256, %v175_v2  }
   0xd   : > { %s314_s13 = smov (!%p158_p3, %s238_s13), 1 }
   0xe   : > { %s243_s18 = sshll.u32 %s314_s13, 2  ;;  %s244_s22 = sshll.u32 %s314_s13, 3 }
   0xf   : > { %s161_s21 = scalar_lea.vmem %s309_s0, %s243_s18  ;;  %s165_s25 = scalar_lea.vmem %s312_s3, %s244_s22 }
  0x10   : > { %v166_v3 = vld [vmem:[%s161_s21] sm:$0xf] }
  0x11   : > { %v167_v4 = vunpack.c.l.bf16 %v166_v3 }
  0x86   : > { %v172_v5 = vpop.permute.xlu0 %171 }
  0x87   : > { %v174_v6 = vmul.f32 %v172_v5, %v167_v4 }
  0x8a   : > { %v179_v7 = vpop.permute.xlu0 %178 }
  0x8b   : > { %v181_v8 = vadd.f32 %v179_v7, %v174_v6 }
  0x8d   : > { %v182_v9 = vmax.f32 %v181_v8, 0.0 }
  0x8f   : > { %184 = vst.msk [vmem:[%s165_s25] sm:$0xff] %vm183_vm0, %v182_v9 }
  0x90 PF: > { %s13_s12 = sadd.s32 1, %s263_s12  }
  0x91   : > { %p10_p4 = scmp.ge.s32.totalorder %s13_s12, 4  }
  0x93   :  { %12 = sbr.rel (!%p10_p4) target bundleno = 1 (0x1), region = 62 }

// kernel: down_block.3
= control target key start
LH: loop header
LB: loop body
LE: loop exit
PB: predicated region body
PF: predicated region fallthrough
CT: control target
= control target key end

     0   :  { %s3481_s15 = smov 0   ;;  %s4463_s0 = inlined_call_operand.vmem [shape: f32[8,8,2,8,2], index: 0, kind: input, shape index: {}]   ;;  %s4464_s1 = inlined_call_operand.vmem [shape: bf16[9,8,4], index: 1, kind: input, shape index: {}]   ;;  %s4465_s2 = inlined_call_operand.vmem [shape: f32[8,1], index: 2, kind: input, shape index: {}]   ;;  %s4466_s3 = inlined_call_operand.vmem [shape: bf16[2,8,64], index: 3, kind: output, shape index: {0}]   ;;  %s4467_s4 = inlined_call_operand.vmem [shape: f32[2,8,2], index: 4, kind: output, shape index: {1}]  }
   0x1 LB: > { %s3487_s16 = sadd.s32 4294967295, %s3440_s15   ;;  %p3057_p0 = scmp.ge.s32.totalorder %s3440_s15, 1  ;;  %s3440_s15 = sphi %s3481_s15, %s15_s15  }
   0x2   : > { %p167_p1 = scmp.lt.s32.totalorder %s3440_s15, 3 }
   0x4   : > { %p168_p2 = pnand %p3057_p0, %p167_p1 }
   0x5   : > { %s3058_s17 = sshll.u32 (!%p168_p2), %s3487_s16, 2  ;;  %v3442_v0 = vmov (!%p168_p2), 0   ;;  %s3443_s22 = smov (!%p168_p2), 127   ;;  %vm469_vm0 = vcmask (!%p168_p2), 73728   ;;  %vm470_vm1 = vsmask.f32 (!%p168_p2), 256 }
   0x6   : > { %171 = sbr.rel (%p168_p2) target bundleno = 1192 (0x4a8), region = 32  ;;  %p198_p3 = scmp.lt.s32.totalorder (!%p168_p2), %s3058_s17, 7  ;;  %3433 = vset.pattern.permute.xlu1 (!%p168_p2), %v3442_v0  ;;  %3432 = vset.pattern.permute.xlu0 (!%p168_p2), %v3442_v0  ;;  %vm3705_vm2 = vmand (!%p168_p2), %vm469_vm0, %vm470_vm1  ;;  %vm498_vm3 = vcmask (!%p168_p2), 3072   ;;  %vm508_vm4 = vcmask (!%p168_p2), 76872   ;;  %vm484_vm5 = vsmask.f32 (!%p168_p2), 7938 }
   0x7   : > { %vm3729_vm6 = vmand (!%p168_p2), %vm469_vm0, %vm484_vm5  ;;  %vm500_vm7 = vcmask (!%p168_p2), 0   ;;  %vm510_vm8 = vcmask (!%p168_p2), 73800   ;;  %vm905_vm9 = vcmask (!%p168_p2), 1042434   ;;  %vm907_vm10 = vcmask (!%p168_p2), 1043459   ;;  %s3446_s23 = smov (!%p168_p2), 126   ;;  %s3447_s24 = smov (!%p168_p2), 16  }
   0x8   : > { %vm909_vm11 = vcmask (!%p168_p2), 1044484   ;;  %vm911_vm12 = vcmask (!%p168_p2), 1045509   ;;  %vm913_vm13 = vcmask (!%p168_p2), 1046534   ;;  %vm915_vm14 = vcmask (!%p168_p2), 1047559   ;;  %s3448_s25 = smov (!%p168_p2), 32   ;;  %s3449_s26 = smov (!%p168_p2), 8  }
   0x9   : > { %vm951_vm15 = vcmask (!%p168_p2), 68616   ;;  %s3450_s27 = smov (!%p168_p2), 48   ;;  %s3452_s28 = smov (!%p168_p2), 24  }
   0xa   : > { %vm3832_vm0 = vmand (!%p168_p2), %vm951_vm15, %vm484_vm5  ;;  %s3453_s29 = smov (!%p168_p2), 40   ;;  %s3454_s30 = smov (!%p168_p2), 56   ;;  %vm1114_vm15 = vcmask (!%p168_p2), 392192  }
   0xb   : > { %p204_p4 = scmp.lt.s32.totalorder (!%p168_p2), %s3487_s16, 1 }
   0xd   : > { %s4481_s17 = smov (!%p198_p3, %s3058_s17), 7  ;;  %s4483_s16 = smov (!%p204_p4, %s3487_s16), 1 }
   0xe   : > { %s3189_s18 = sshll.u32 %s4481_s17, 7  ;;  %s3062_s5 = sshll.u32 %s4483_s16, 3 }
   0xf   : > { %s3497_s21 = scalar_lea.vmem %s4463_s0, %s3189_s18  ;;  %s211_s8 = scalar_lea.vmem %s4467_s4, %s3062_s5 }
  0x10   : > { %v213_v1 = vld [vmem:[%s3497_s21] sm:$0xff]  ;;  %v214_v2 = vld [vmem:[%s3497_s21 + $0x8] sm:$0xff]  ;;  %v215_v3 = vld [vmem:[%s3497_s21 + $0x10] sm:$0xff] }
  0x11   : > { %v216_v4 = vld [vmem:[%s3497_s21 + $0x18] sm:$0xff]  ;;  %v3503_v5 = vmax.f32 %v213_v1, %v214_v2  ;;  %v229_v6 = vld [vmem:[%s3497_s21 + $0x80] sm:$0xff]  ;;  %v230_v7 = vld [vmem:[%s3497_s21 + $0x88] sm:$0xff] }
  0x12   : > { %v3507_v8 = vmax.f32 %v215_v3, %v216_v4  ;;  %v231_v9 = vld [vmem:[%s3497_s21 + $0x90] sm:$0xff]  ;;  %v232_v10 = vld [vmem:[%s3497_s21 + $0x98] sm:$0xff]  ;;  %v3511_v11 = vmax.f32 %v229_v6, %v230_v7  ;;  %v245_v12 = vld [vmem:[%s3497_s21 + $0x100] sm:$0xff] }
  0x13   : > { %v3514_v13 = vmax.f32 %v231_v9, %v232_v10  ;;  %v246_v14 = vld [vmem:[%s3497_s21 + $0x108] sm:$0xff]  ;;  %v247_v15 = vld [vmem:[%s3497_s21 + $0x110] sm:$0xff]  ;;  %v248_v16 = vld [vmem:[%s3497_s21 + $0x118] sm:$0xff] }
  0x14   : > { %v3352_v17 = vpack.i.bf16 %v3507_v8, %v3503_v5  ;;  %v3521_v18 = vmax.f32 %v245_v12, %v246_v14  ;;  %v3523_v19 = vmax.f32 %v247_v15, %v248_v16  ;;  %v261_v20 = vld [vmem:[%s3497_s21 + $0x180] sm:$0xff]  ;;  %v262_v21 = vld [vmem:[%s3497_s21 + $0x188] sm:$0xff]  ;;  %v263_v22 = vld [vmem:[%s3497_s21 + $0x190] sm:$0xff] }
  0x15   : > { %v264_v23 = vld [vmem:[%s3497_s21 + $0x198] sm:$0xff]  ;;  %v3529_v24 = vmax.f32 %v261_v20, %v262_v21  ;;  %v217_v25 = vld [vmem:[%s3497_s21 + $0x20] sm:$0xff]  ;;  %v218_v26 = vld [vmem:[%s3497_s21 + $0x28] sm:$0xff]  ;;  %v3357_v27 = vpack.i.bf16 %v3514_v13, %v3511_v11 }
  0x16   : > { %3353 = vrot.lane.b32.xlu0 %v3352_v17, %s3443_s22  ;;  %v3362_v28 = vpack.i.bf16 %v3523_v19, %v3521_v18  ;;  %v3538_v29 = vmax.f32 %v263_v22, %v264_v23  ;;  %v233_v30 = vld [vmem:[%s3497_s21 + $0xa0] sm:$0xff]  ;;  %v234_v31 = vld [vmem:[%s3497_s21 + $0xa8] sm:$0xff]  ;;  %v3542_v32 = vmax.f32 %v217_v25, %v218_v26  ;;  %v219_v41 = vld [vmem:[%s3497_s21 + $0x30] sm:$0xff] }
  0x17   : > { %v249_v33 = vld [vmem:[%s3497_s21 + $0x120] sm:$0xff]  ;;  %v3545_v34 = vmax.f32 %v233_v30, %v234_v31  ;;  %v250_v35 = vld [vmem:[%s3497_s21 + $0x128] sm:$0xff]  ;;  %v220_v42 = vld [vmem:[%s3497_s21 + $0x38] sm:$0xff] }
  0x18   : > { %v265_v36 = vld [vmem:[%s3497_s21 + $0x1a0] sm:$0xff]  ;;  %v266_v37 = vld [vmem:[%s3497_s21 + $0x1a8] sm:$0xff]  ;;  %3363 = vrot.lane.b32.xlu1 %v3362_v28, %s3443_s22  ;;  %v3367_v38 = vpack.i.bf16 %v3538_v29, %v3529_v24  ;;  %v3553_v39 = vmax.f32 %v249_v33, %v250_v35  ;;  %v235_v43 = vld [vmem:[%s3497_s21 + $0xb0] sm:$0xff]  ;;  %v3566_v48 = vmax.f32 %v219_v41, %v220_v42 }
  0x19   : > { %v3555_v40 = vmax.f32 %v265_v36, %v266_v37  ;;  %v236_v44 = vld [vmem:[%s3497_s21 + $0xb8] sm:$0xff]  ;;  %v251_v45 = vld [vmem:[%s3497_s21 + $0x130] sm:$0xff]  ;;  %v3372_v47 = vpack.i.bf16 %v3545_v34, %v3542_v32  ;;  %v221_v52 = vld [vmem:[%s3497_s21 + $0x40] sm:$0xff] }
  0x1a   : > { %v252_v46 = vld [vmem:[%s3497_s21 + $0x138] sm:$0xff]  ;;  %3358 = vrot.lane.b32.xlu0 %v3357_v27, %s3443_s22  ;;  %v3568_v49 = vmax.f32 %v235_v43, %v236_v44  ;;  %v267_v50 = vld [vmem:[%s3497_s21 + $0x1b0] sm:$0xff]  ;;  %v222_v53 = vld [vmem:[%s3497_s21 + $0x48] sm:$0xff] }
  0x1b   : > { %v268_v51 = vld [vmem:[%s3497_s21 + $0x1b8] sm:$0xff]  ;;  %v237_v54 = vld [vmem:[%s3497_s21 + $0xc0] sm:$0xff]  ;;  %v238_v55 = vld [vmem:[%s3497_s21 + $0xc8] sm:$0xff]  ;;  %v3377_v56 = vpack.i.bf16 %v3555_v40, %v3553_v39  ;;  %v3579_v57 = vmax.f32 %v251_v45, %v252_v46  ;;  %v3590_v1 = vmax.f32 %v221_v52, %v222_v53 }
  0x1c   : > { %3368 = vrot.lane.b32.xlu1 %v3367_v38, %s3443_s22  ;;  %v3581_v58 = vmax.f32 %v267_v50, %v268_v51  ;;  %v253_v59 = vld [vmem:[%s3497_s21 + $0x140] sm:$0xff]  ;;  %v254_v60 = vld [vmem:[%s3497_s21 + $0x148] sm:$0xff]  ;;  %v3382_v63 = vpack.i.bf16 %v3568_v49, %v3566_v48  ;;  %v3592_v2 = vmax.f32 %v237_v54, %v238_v55  ;;  %v223_v3 = vld [vmem:[%s3497_s21 + $0x50] sm:$0xff] }
  0x1d   : > { %v269_v61 = vld [vmem:[%s3497_s21 + $0x1c0] sm:$0xff]  ;;  %v270_v62 = vld [vmem:[%s3497_s21 + $0x1c8] sm:$0xff]  ;;  %v224_v4 = vld [vmem:[%s3497_s21 + $0x58] sm:$0xff]  ;;  %v3601_v10 = vmax.f32 %v253_v59, %v254_v60 }
  0x1e   : > { %3373 = vrot.lane.b32.xlu0 %v3372_v47, %s3443_s22  ;;  %v239_v6 = vld [vmem:[%s3497_s21 + $0xd0] sm:$0xff]  ;;  %v240_v7 = vld [vmem:[%s3497_s21 + $0xd8] sm:$0xff]  ;;  %v3387_v9 = vpack.i.bf16 %v3581_v58, %v3579_v57  ;;  %v3603_v12 = vmax.f32 %v269_v61, %v270_v62  ;;  %v3392_v20 = vpack.i.bf16 %v3592_v2, %v3590_v1  ;;  %v3612_v21 = vmax.f32 %v223_v3, %v224_v4  ;;  %v225_v23 = vld [vmem:[%s3497_s21 + $0x60] sm:$0xff] }
  0x1f   : > { %v255_v14 = vld [vmem:[%s3497_s21 + $0x150] sm:$0xff]  ;;  %v256_v15 = vld [vmem:[%s3497_s21 + $0x158] sm:$0xff]  ;;  %v3614_v22 = vmax.f32 %v239_v6, %v240_v7  ;;  %v226_v25 = vld [vmem:[%s3497_s21 + $0x68] sm:$0xff] }
  0x20   : > { %3378 = vrot.lane.b32.xlu1 %v3377_v56, %s3443_s22  ;;  %v271_v16 = vld [vmem:[%s3497_s21 + $0x1d0] sm:$0xff]  ;;  %v272_v17 = vld [vmem:[%s3497_s21 + $0x1d8] sm:$0xff]  ;;  %v241_v26 = vld [vmem:[%s3497_s21 + $0xe0] sm:$0xff]  ;;  %v3397_v28 = vpack.i.bf16 %v3603_v12, %v3601_v10  ;;  %v3623_v30 = vmax.f32 %v255_v14, %v256_v15  ;;  %v3634_v41 = vmax.f32 %v225_v23, %v226_v25 }
  0x21   : > { %v242_v27 = vld [vmem:[%s3497_s21 + $0xe8] sm:$0xff]  ;;  %v3625_v31 = vmax.f32 %v271_v16, %v272_v17  ;;  %v257_v33 = vld [vmem:[%s3497_s21 + $0x160] sm:$0xff]  ;;  %v3402_v38 = vpack.i.bf16 %v3614_v22, %v3612_v21  ;;  %v227_v43 = vld [vmem:[%s3497_s21 + $0x70] sm:$0xff] }
  0x22   : > { %3383 = vrot.lane.b32.xlu0 %v3382_v63, %s3443_s22  ;;  %v258_v35 = vld [vmem:[%s3497_s21 + $0x168] sm:$0xff]  ;;  %v273_v36 = vld [vmem:[%s3497_s21 + $0x1e0] sm:$0xff]  ;;  %v3636_v42 = vmax.f32 %v241_v26, %v242_v27  ;;  %v228_v44 = vld [vmem:[%s3497_s21 + $0x78] sm:$0xff] }
  0x23   : > { %v274_v37 = vld [vmem:[%s3497_s21 + $0x1e8] sm:$0xff]  ;;  %v243_v45 = vld [vmem:[%s3497_s21 + $0xf0] sm:$0xff]  ;;  %v244_v46 = vld [vmem:[%s3497_s21 + $0xf8] sm:$0xff]  ;;  %v3407_v47 = vpack.i.bf16 %v3625_v31, %v3623_v30  ;;  %v3645_v50 = vmax.f32 %v257_v33, %v258_v35  ;;  %v3656_v59 = vmax.f32 %v227_v43, %v228_v44 }
  0x24   : > { %3388 = vrot.lane.b32.xlu1 %v3387_v9, %s3443_s22  ;;  %v3647_v51 = vmax.f32 %v273_v36, %v274_v37  ;;  %v259_v52 = vld [vmem:[%s3497_s21 + $0x170] sm:$0xff]  ;;  %v260_v53 = vld [vmem:[%s3497_s21 + $0x178] sm:$0xff]  ;;  %v3412_v56 = vpack.i.bf16 %v3636_v42, %v3634_v41  ;;  %v3658_v60 = vmax.f32 %v243_v45, %v244_v46 }
  0x25   : > { %v275_v54 = vld [vmem:[%s3497_s21 + $0x1f0] sm:$0xff]  ;;  %v276_v55 = vld [vmem:[%s3497_s21 + $0x1f8] sm:$0xff]  ;;  %v3663_v62 = vmax.f32 %v259_v52, %v260_v53 }
  0x26   : > { %3393 = vrot.lane.b32.xlu0 %v3392_v20, %s3443_s22  ;;  %v3417_v61 = vpack.i.bf16 %v3647_v51, %v3645_v50  ;;  %v3665_v63 = vmax.f32 %v275_v54, %v276_v55  ;;  %v3422_v3 = vpack.i.bf16 %v3658_v60, %v3656_v59 }
  0x28   : > { %3398 = vrot.lane.b32.xlu1 %v3397_v28, %s3443_s22  ;;  %v3427_v4 = vpack.i.bf16 %v3665_v63, %v3663_v62 }
  0x2a   : > { %3403 = vrot.lane.b32.xlu0 %v3402_v38, %s3443_s22 }
  0x2c   : > { %3408 = vrot.lane.b32.xlu1 %v3407_v47, %s3443_s22 }
  0x2e   : > { %3413 = vrot.lane.b32.xlu0 %v3412_v56, %s3443_s22 }
  0x30   : > { %3418 = vrot.lane.b32.xlu1 %v3417_v61, %s3443_s22 }
  0x32   : > { %3423 = vrot.lane.b32.xlu0 %v3422_v3, %s3443_s22 }
  0x34   : > { %3428 = vrot.lane.b32.xlu1 %v3427_v4, %s3443_s22 }
  0x88   : > { %v3354_v6 = vpop.permute.xlu0 %3353 }
  0x89   : > { %v3356_v7 = vunpack.i.h.bf16 %v3354_v6  ;;  %v3355_v9 = vunpack.i.l.bf16 %v3354_v6 }
  0x8a   : > { %v3364_v14 = vpop.permute.xlu1 %3363 }
  0x8b   : > { %v3366_v15 = vunpack.i.h.bf16 %v3364_v14  ;;  %v3365_v16 = vunpack.i.l.bf16 %v3364_v14  ;;  %v438_v17 = vmax.f32 %v3507_v8, %v3356_v7  ;;  %v437_v20 = vmax.f32 %v3503_v5, %v3355_v9 }
  0x8c   : > { %v3359_v23 = vpop.permute.xlu0 %3358 }
  0x8d   : > { %v3361_v25 = vunpack.i.h.bf16 %v3359_v23  ;;  %v3360_v26 = vunpack.i.l.bf16 %v3359_v23  ;;  %v3191_v27 = vpack.c.bf16 %v438_v17, %v438_v17  ;;  %v3190_v28 = vpack.c.bf16 %v437_v20, %v437_v20 }
  0x8e   : > { %v3369_v33 = vpop.permute.xlu1 %3368  ;;  %v453_v35 = vmax.f32 %v3521_v18, %v3365_v16  ;;  %v454_v36 = vmax.f32 %v3523_v19, %v3366_v15 }
  0x8f   : > { %v647_v37 = vunpack.c.l.b16 %v3191_v27  ;;  %v646_v38 = vunpack.c.l.b16 %v3190_v28  ;;  %v3371_v43 = vunpack.i.h.bf16 %v3369_v33  ;;  %v3370_v44 = vunpack.i.l.bf16 %v3369_v33 }
  0x90   : > { %v445_v45 = vmax.f32 %v3511_v11, %v3360_v26  ;;  %v446_v8 = vmax.f32 %v3514_v13, %v3361_v25  ;;  %v3374_v46 = vpop.permute.xlu0 %3373  ;;  %v3206_v5 = vpack.c.bf16 %v453_v35, %v453_v35  ;;  %v3207_v47 = vpack.c.bf16 %v454_v36, %v454_v36 }
  0x91   : > { %682 = vperm.xlu1 %3433, %v647_v37   ;;  %679 = vperm.xlu0 %3432, %v646_v38   ;;  %v461_v52 = vmax.f32 %v3529_v24, %v3370_v44  ;;  %v462_v53 = vmax.f32 %v3538_v29, %v3371_v43  ;;  %v3376_v19 = vunpack.i.h.bf16 %v3374_v46  ;;  %v3375_v55 = vunpack.i.l.bf16 %v3374_v46 }
  0x92   : > { %v3198_v18 = vpack.c.bf16 %v445_v45, %v445_v45  ;;  %v3199_v54 = vpack.c.bf16 %v446_v8, %v446_v8  ;;  %v3379_v56 = vpop.permute.xlu1 %3378  ;;  %v662_v4 = vunpack.c.l.b16 %v3206_v5  ;;  %v663_v7 = vunpack.c.l.b16 %v3207_v47 }
  0x93   : > { %v3380_v11 = vunpack.i.l.bf16 %v3379_v56  ;;  %v3214_v6 = vpack.c.bf16 %v461_v52, %v461_v52  ;;  %v3215_v13 = vpack.c.bf16 %v462_v53, %v462_v53  ;;  %v3381_v9 = vunpack.i.h.bf16 %v3379_v56 }
  0x94   : > { %v654_v61 = vunpack.c.l.b16 %v3198_v18  ;;  %v655_v3 = vunpack.c.l.b16 %v3199_v54  ;;  %v3384_v14 = vpop.permute.xlu0 %3383  ;;  %v439_v24 = vmax.f32 %v3542_v32, %v3375_v55  ;;  %v447_v29 = vmax.f32 %v3545_v34, %v3376_v19 }
  0x95   : > { %v670_v15 = vunpack.c.l.b16 %v3214_v6  ;;  %v671_v16 = vunpack.c.l.b16 %v3215_v13  ;;  %v3385_v17 = vunpack.i.l.bf16 %v3384_v14  ;;  %v455_v20 = vmax.f32 %v3553_v39, %v3380_v11 }
  0x96   : > { %703 = vperm.xlu1 %3433, %v654_v61   ;;  %706 = vperm.xlu0 %3432, %v655_v3   ;;  %v3386_v23 = vunpack.i.h.bf16 %v3384_v14  ;;  %v3192_v25 = vpack.c.bf16 %v439_v24, %v439_v24  ;;  %v3200_v26 = vpack.c.bf16 %v447_v29, %v447_v29  ;;  %v3389_v27 = vpop.permute.xlu1 %3388  ;;  %v463_v28 = vmax.f32 %v3555_v40, %v3381_v9 }
  0x97   : > { %v3391_v33 = vunpack.i.h.bf16 %v3389_v27  ;;  %v3390_v35 = vunpack.i.l.bf16 %v3389_v27  ;;  %v3208_v36 = vpack.c.bf16 %v455_v20, %v455_v20  ;;  %v440_v32 = vmax.f32 %v3566_v48, %v3385_v17 }
  0x98   : > { %v648_v34 = vunpack.c.l.b16 %v3192_v25  ;;  %v656_v37 = vunpack.c.l.b16 %v3200_v26  ;;  %v3216_v38 = vpack.c.bf16 %v463_v28, %v463_v28  ;;  %v3394_v43 = vpop.permute.xlu0 %3393  ;;  %v448_v39 = vmax.f32 %v3568_v49, %v3386_v23 }
  0x99   : > { %v664_v44 = vunpack.c.l.b16 %v3208_v36  ;;  %v3396_v45 = vunpack.i.h.bf16 %v3394_v43  ;;  %v3395_v8 = vunpack.i.l.bf16 %v3394_v43  ;;  %v3193_v46 = vpack.c.bf16 %v440_v32, %v440_v32 }
  0x9a   : > { %727 = vperm.xlu1 %3433, %v662_v4   ;;  %730 = vperm.xlu0 %3432, %v663_v7   ;;  %v672_v40 = vunpack.c.l.b16 %v3216_v38  ;;  %v3201_v5 = vpack.c.bf16 %v448_v39, %v448_v39  ;;  %v3399_v47 = vpop.permute.xlu1 %3398  ;;  %v456_v52 = vmax.f32 %v3579_v57, %v3390_v35  ;;  %v464_v48 = vmax.f32 %v3581_v58, %v3391_v33 }
  0x9b   : > { %v649_v53 = vunpack.c.l.b16 %v3193_v46  ;;  %v3401_v18 = vunpack.i.h.bf16 %v3399_v47  ;;  %v3400_v54 = vunpack.i.l.bf16 %v3399_v47  ;;  %v441_v19 = vmax.f32 %v3590_v1, %v3395_v8 }
  0x9c   : > { %v657_v49 = vunpack.c.l.b16 %v3201_v5  ;;  %v3209_v55 = vpack.c.bf16 %v456_v52, %v456_v52  ;;  %v3217_v56 = vpack.c.bf16 %v464_v48, %v464_v48  ;;  %v3404_v61 = vpop.permute.xlu0 %3403  ;;  %v449_v3 = vmax.f32 %v3592_v2, %v3396_v45  ;;  %v472_v52 = vld [vmem:[#allocation2] sm:$0x1]  ;;  %v475_v48 = vld [vmem:[#allocation2 + $0x8] sm:$0x1] }
  0x9d   : > { %v3406_v4 = vunpack.i.h.bf16 %v3404_v61  ;;  %v3405_v11 = vunpack.i.l.bf16 %v3404_v61  ;;  %v3194_v6 = vpack.c.bf16 %v441_v19, %v441_v19  ;;  %v457_v57 = vmax.f32 %v3601_v10, %v3400_v54 }
  0x9e   : > { %751 = vperm.xlu1 %3433, %v670_v15   ;;  %754 = vperm.xlu0 %3432, %v671_v16   ;;  %v665_v58 = vunpack.c.l.b16 %v3209_v55  ;;  %v673_v13 = vunpack.c.l.b16 %v3217_v56  ;;  %v3202_v7 = vpack.c.bf16 %v449_v3, %v449_v3  ;;  %v3409_v9 = vpop.permute.xlu1 %3408  ;;  %v465_v1 = vmax.f32 %v3603_v12, %v3401_v18  ;;  %v478_v3 = vld [vmem:[#allocation2 + $0x10] sm:$0x1] }
  0x9f   : > { %v650_v14 = vunpack.c.l.b16 %v3194_v6  ;;  %v3411_v24 = vunpack.i.h.bf16 %v3409_v9  ;;  %v3410_v29 = vunpack.i.l.bf16 %v3409_v9  ;;  %v3210_v15 = vpack.c.bf16 %v457_v57, %v457_v57 }
  0xa0   : > { %v3414_v16 = vpop.permute.xlu0 %3413  ;;  %v658_v2 = vunpack.c.l.b16 %v3202_v7  ;;  %v3218_v17 = vpack.c.bf16 %v465_v1, %v465_v1  ;;  %v442_v20 = vmax.f32 %v3612_v21, %v3405_v11  ;;  %v450_v10 = vmax.f32 %v3614_v22, %v3406_v4  ;;  %v481_v4 = vld [vmem:[#allocation2 + $0x18] sm:$0x1] }
  0xa1   : > { %v3415_v23 = vunpack.i.l.bf16 %v3414_v16  ;;  %v666_v25 = vunpack.c.l.b16 %v3210_v15  ;;  %v3416_v26 = vunpack.i.h.bf16 %v3414_v16  ;;  %v458_v27 = vmax.f32 %v3623_v30, %v3410_v29 }
  0xa2   : > { %685 = vperm.xlu1 %3433, %v648_v34   ;;  %709 = vperm.xlu0 %3432, %v656_v37   ;;  %v674_v12 = vunpack.c.l.b16 %v3218_v17  ;;  %v3195_v28 = vpack.c.bf16 %v442_v20, %v442_v20  ;;  %v3203_v33 = vpack.c.bf16 %v450_v10, %v450_v10  ;;  %v3419_v35 = vpop.permute.xlu1 %3418  ;;  %v466_v36 = vmax.f32 %v3625_v31, %v3411_v24  ;;  %v495_v20 = vld [vmem:[#allocation2 + $0x1c] sm:$0x1] }
  0xa3   : > { %v443_v32 = vmax.f32 %v3634_v41, %v3415_v23  ;;  %v3420_v34 = vunpack.i.l.bf16 %v3419_v35  ;;  %v3211_v37 = vpack.c.bf16 %v458_v27, %v458_v27  ;;  %v451_v22 = vmax.f32 %v3636_v42, %v3416_v26 }
  0xa4   : > { %v3424_v21 = vpop.permute.xlu0 %3423  ;;  %v651_v38 = vunpack.c.l.b16 %v3195_v28  ;;  %v659_v43 = vunpack.c.l.b16 %v3203_v33  ;;  %v3421_v30 = vunpack.i.h.bf16 %v3419_v35  ;;  %v3219_v39 = vpack.c.bf16 %v466_v36, %v466_v36 }
  0xa5   : > { %v3196_v45 = vpack.c.bf16 %v443_v32, %v443_v32  ;;  %v667_v8 = vunpack.c.l.b16 %v3211_v37  ;;  %v3425_v46 = vunpack.i.l.bf16 %v3424_v21  ;;  %v459_v31 = vmax.f32 %v3645_v50, %v3420_v34 }
  0xa6   : > { %733 = vperm.xlu1 %3433, %v664_v44   ;;  %757 = vperm.xlu0 %3432, %v672_v40   ;;  %v3426_v44 = vunpack.i.h.bf16 %v3424_v21  ;;  %v3204_v40 = vpack.c.bf16 %v451_v22, %v451_v22  ;;  %v3429_v5 = vpop.permute.xlu1 %3428  ;;  %v675_v41 = vunpack.c.l.b16 %v3219_v39  ;;  %v467_v47 = vmax.f32 %v3647_v51, %v3421_v30 }
  0xa7   : > { %v3431_v18 = vunpack.i.h.bf16 %v3429_v5  ;;  %v473_v50 = vsel %vm3705_vm2, 0, %v472_v52  ;;  %v476_v54 = vsel %vm3705_vm2, 0, %v475_v48  ;;  %v3430_v51 = vunpack.i.l.bf16 %v3429_v5 }
  0xa8   : > { %v660_v19 = vunpack.c.l.b16 %v3204_v40  ;;  %474 = vst [vmem:[#allocation2] sm:$0x1] %v473_v50  ;;  %477 = vst [vmem:[#allocation2 + $0x8] sm:$0x1] %v476_v54  ;;  %v3220_v55 = vpack.c.bf16 %v467_v47, %v467_v47  ;;  %v444_v56 = vmax.f32 %v3656_v59, %v3425_v46  ;;  %v452_v61 = vmax.f32 %v3658_v60, %v3426_v44 }
  0xa9   : > { %499 = vst.msk [vmem:[#allocation2] sm:$0xf] %vm498_vm3, %v3442_v0  ;;  %502 = vst.msk [vmem:[#allocation2 + $0x8] sm:$0xf] %vm498_vm3, %v3442_v0  ;;  %v479_v59 = vsel %vm3705_vm2, 0, %v478_v3  ;;  %v460_v60 = vmax.f32 %v3663_v62, %v3430_v51  ;;  %v468_v11 = vmax.f32 %v3665_v63, %v3431_v18  ;;  %v482_v57 = vsel %vm3705_vm2, 0, %v481_v4 }
  0xaa   : > { %688 = vperm.xlu1 %3433, %v649_v53   ;;  %712 = vperm.xlu0 %3432, %v657_v49   ;;  %v652_v53 = vunpack.c.l.b16 %v3196_v45  ;;  %v3212_v49 = vpack.c.bf16 %v459_v31, %v459_v31  ;;  %509 = vst.msk [vmem:[#allocation2] sm:$0xf] %vm508_vm4, %v3442_v0  ;;  %512 = vst.msk [vmem:[#allocation2 + $0x8] sm:$0xf] %vm508_vm4, %v3442_v0  ;;  %v3197_v7 = vpack.c.bf16 %v444_v56, %v444_v56  ;;  %v486_v62 = vld [vmem:[#allocation2 + $0x4] sm:$0x1] }
  0xab   : > { %480 = vst [vmem:[#allocation2 + $0x10] sm:$0x1] %v479_v59  ;;  %v3205_v9 = vpack.c.bf16 %v452_v61, %v452_v61  ;;  %483 = vst [vmem:[#allocation2 + $0x18] sm:$0x1] %v482_v57  ;;  %v489_v63 = vld [vmem:[#allocation2 + $0xc] sm:$0x1]  ;;  %v3213_v15 = vpack.c.bf16 %v460_v60, %v460_v60  ;;  %v3221_v16 = vpack.c.bf16 %v468_v11, %v468_v11 }
  0xac   : > { %504 = vst.msk [vmem:[#allocation2 + $0x10] sm:$0xf] %vm498_vm3, %v3442_v0  ;;  %506 = vst.msk [vmem:[#allocation2 + $0x18] sm:$0xf] %vm498_vm3, %v3442_v0  ;;  %v487_v1 = vsel %vm3729_vm6, 0, %v486_v62  ;;  %v653_v24 = vunpack.c.l.b16 %v3197_v7  ;;  %v496_v10 = vsel %vm3729_vm6, 0, %v495_v20 }
  0xad   : > { %514 = vst.msk [vmem:[#allocation2 + $0x10] sm:$0xf] %vm508_vm4, %v3442_v0  ;;  %516 = vst.msk [vmem:[#allocation2 + $0x18] sm:$0xf] %vm508_vm4, %v3442_v0  ;;  %v661_v29 = vunpack.c.l.b16 %v3205_v9  ;;  %v669_v23 = vunpack.c.l.b16 %v3213_v15  ;;  %vm956_vm2 = vcmask 65544   ;;  %vm2313_vm4 = vcmask 1046532  }
  0xae   : > { %736 = vperm.xlu1 %3433, %v665_v58   ;;  %760 = vperm.xlu0 %3432, %v673_v13   ;;  %v668_v58 = vunpack.c.l.b16 %v3212_v49  ;;  %v676_v13 = vunpack.c.l.b16 %v3220_v55  ;;  %488 = vst [vmem:[#allocation2 + $0x4] sm:$0x1] %v487_v1  ;;  %497 = vst [vmem:[#allocation2 + $0x1c] sm:$0x1] %v496_v10 }
  0xaf   : > { %501 = vst.msk [vmem:[#allocation2 + $0x4] sm:$0x1] %vm500_vm7, %v3442_v0  ;;  %507 = vst.msk [vmem:[#allocation2 + $0x1c] sm:$0x1] %vm500_vm7, %v3442_v0 }
  0xb0   : > { %511 = vst.msk [vmem:[#allocation2 + $0x4] sm:$0x1] %vm510_vm8, %v3442_v0  ;;  %517 = vst.msk [vmem:[#allocation2 + $0x1c] sm:$0x1] %vm510_vm8, %v3442_v0 }
  0xb1   : > { %vm3859_vm3 = vmand %vm956_vm2, %vm470_vm1  ;;  %vm2312_vm1 = vcmask 1042432   ;;  %vm1269_vm2 = vcmask 1041408  }
  0xb2   : > { %691 = vperm.xlu1 %3433, %v650_v14   ;;  %715 = vperm.xlu0 %3432, %v658_v2   ;;  %v490_v14 = vsel %vm3729_vm6, 0, %v489_v63  ;;  %v492_v2 = vld [vmem:[#allocation2 + $0x14] sm:$0x1]  ;;  %vm3899_vm5 = vmor %vm2312_vm1, %vm2313_vm4  ;;  %vm2955_vm1 = vcmask 523264   ;;  %vm2953_vm4 = vcmask 519168  }
  0xb3   : > { %491 = vst [vmem:[#allocation2 + $0xc] sm:$0x1] %v490_v14  ;;  %v493_v17 = vsel %vm3729_vm6, 0, %v492_v2  ;;  %vm1559_vm6 = vsmask.f32 3328 }
  0xb4   : > { %503 = vst.msk [vmem:[#allocation2 + $0xc] sm:$0x1] %vm500_vm7, %v3442_v0  ;;  %494 = vst [vmem:[#allocation2 + $0x14] sm:$0x1] %v493_v17 }
  0xb5   : > { %513 = vst.msk [vmem:[#allocation2 + $0xc] sm:$0x1] %vm510_vm8, %v3442_v0 }
  0xb6   : > { %739 = vperm.xlu1 %3433, %v666_v25   ;;  %763 = vperm.xlu0 %3432, %v674_v12   ;;  %505 = vst.msk [vmem:[#allocation2 + $0x14] sm:$0x1] %vm500_vm7, %v3442_v0  ;;  %v677_v25 = vunpack.c.l.b16 %v3221_v16  ;;  %vm1560_vm7 = vsmask.f32 7440 }
  0xb7   : > { %515 = vst.msk [vmem:[#allocation2 + $0x14] sm:$0x1] %vm510_vm8, %v3442_v0  ;;  %vm3958_vm8 = vmor %vm1559_vm6, %vm1560_vm7  ;;  %vm2967_vm6 = vcmask 15368  }
  0xba   : > { %694 = vperm.xlu1 %3433, %v651_v38   ;;  %718 = vperm.xlu0 %3432, %v659_v43   ;;  %v774_v38 = vlaneseq }
  0xbc   : > { %v775_v0 = vand.u32 127, %v774_v38 }
  0xbe   : > { %742 = vperm.xlu1 %3433, %v667_v8   ;;  %766 = vperm.xlu0 %3432, %v675_v41   ;;  %v776_v45 = vadd.s32 4294967295, %v775_v0  ;;  %v3775_v8 = vshrl.u32 %v774_v38, 7 }
  0xc0   : > { %v3778_v5 = vsub.s32 %v776_v45, %v3775_v8 }
  0xc2   : > { %697 = vperm.xlu1 %3433, %v652_v53   ;;  %721 = vperm.xlu0 %3432, %v660_v19  }
  0xc6   : > { %745 = vperm.xlu1 %3433, %v668_v58   ;;  %769 = vperm.xlu0 %3432, %v676_v13  }
  0xca   : > { %700 = vperm.xlu1 %3433, %v653_v24   ;;  %724 = vperm.xlu0 %3432, %v661_v29  }
  0xce   : > { %748 = vperm.xlu1 %3433, %v669_v23   ;;  %772 = vperm.xlu0 %3432, %v677_v25  }
 0x110   : > { %v683_v26 = vpop.permute.xlu1 %682  ;;  %v680_v27 = vpop.permute.xlu0 %679 }
 0x111   : > { %v784_v47 = vrot.slane %v683_v26, %v3778_v5  ;;  %v780_v42 = vrot.slane %v680_v27, %v3778_v5 }
 0x113   : > { %v906_v11 = vsel %vm905_vm9, %v784_v47, %v780_v42 }
 0x115   : > { %v704_v12 = vpop.permute.xlu1 %703  ;;  %v707_v28 = vpop.permute.xlu0 %706 }
 0x116   : > { %v812_v52 = vrot.slane %v704_v12, %v3778_v5  ;;  %v816_v48 = vrot.slane %v707_v28, %v3778_v5 }
 0x118   : > { %v917_v6 = vsel %vm905_vm9, %v816_v48, %v812_v52  ;;  %v967_v48 = vld [vmem:[#allocation2 + $0x10] sm:$0xf] }
 0x119   : > { %v728_v33 = vpop.permute.xlu1 %727  ;;  %v731_v35 = vpop.permute.xlu0 %730 }
 0x11a   : > { %v844_v50 = vrot.slane %v728_v33, %v3778_v5  ;;  %v848_v54 = vrot.slane %v731_v35, %v3778_v5 }
 0x11c   : > { %v923_v57 = vsel %vm905_vm9, %v848_v54, %v844_v50 }
 0x11d   : > { %v752_v36 = vpop.permute.xlu1 %751  ;;  %v755_v32 = vpop.permute.xlu0 %754 }
 0x11e   : > { %v876_v19 = vrot.slane %v752_v36, %v3778_v5  ;;  %v880_v51 = vrot.slane %v755_v32, %v3778_v5 }
 0x120   : > { %v929_v58 = vsel %vm905_vm9, %v880_v51, %v876_v19  ;;  %vm3455_vm9 = vmmov 0  }
 0x121   : > { %v686_v34 = vpop.permute.xlu1 %685  ;;  %v710_v37 = vpop.permute.xlu0 %709 }
 0x122   : > { %v788_v49 = vrot.slane %v686_v34, %v3778_v5  ;;  %v820_v55 = vrot.slane %v710_v37, %v3778_v5  ;;  %v953_v34 = vld [vmem:[#allocation2] sm:$0xf] }
 0x124   : > { %v908_v13 = vsel %vm907_vm10, %v788_v49, %v906_v11  ;;  %v918_v7 = vsel %vm907_vm10, %v820_v55, %v917_v6 }
 0x125   : > { %v3767_v21 = vpop.permute.xlu1 %733  ;;  %v3769_v22 = vpop.permute.xlu0 %757 }
 0x126   : > { %v852_v63 = vrot.slane %v3767_v21, %v3778_v5  ;;  %v884_v1 = vrot.slane %v3769_v22, %v3778_v5  ;;  %v961_v21 = vld [vmem:[#allocation2 + $0x8] sm:$0xf] }
 0x128   : > { %v924_v35 = vsel %vm907_vm10, %v852_v63, %v923_v57  ;;  %v930_v36 = vsel %vm907_vm10, %v884_v1, %v929_v58  ;;  %v970_v63 = vld [vmem:[#allocation2 + $0x14] sm:$0x1]  ;;  %vm1098_vm10 = vcmask 64512  }
 0x129   : > { %v689_v43 = vpop.permute.xlu1 %688  ;;  %v713_v30 = vpop.permute.xlu0 %712 }
 0x12a   : > { %v792_v56 = vrot.slane %v689_v43, %v3778_v5  ;;  %v824_v61 = vrot.slane %v713_v30, %v3778_v5 }
 0x12c   : > { %v910_v14 = vsel %vm909_vm11, %v792_v56, %v908_v13  ;;  %v919_v24 = vsel %vm909_vm11, %v824_v61, %v918_v7  ;;  %v3444_v13 = vmov 1983009808  }
 0x12d   : > { %v3771_v39 = vpop.permute.xlu1 %736  ;;  %v3773_v44 = vpop.permute.xlu0 %760  ;;  %v997_v7 = vunpack.c.l.s4 %v3444_v13 }
 0x12e   : > { %v856_v29 = vrot.slane %v3771_v39, %v3778_v5  ;;  %v888_v15 = vrot.slane %v3773_v44, %v3778_v5 }
 0x130   : > { %v925_v38 = vsel %vm909_vm11, %v856_v29, %v924_v35  ;;  %v931_v43 = vsel %vm909_vm11, %v888_v15, %v930_v36  ;;  %vm1102_vm11 = vcmask 130048  }
 0x131   : > { %v692_v46 = vpop.permute.xlu1 %691  ;;  %v716_v40 = vpop.permute.xlu0 %715 }
 0x132   : > { %v796_v3 = vrot.slane %v692_v46, %v3778_v5  ;;  %v828_v4 = vrot.slane %v716_v40, %v3778_v5 }
 0x134   : > { %v912_v16 = vsel %vm911_vm12, %v796_v3, %v910_v14  ;;  %v920_v2 = vsel %vm911_vm12, %v828_v4, %v919_v24  ;;  %v976_v24 = vld [vmem:[#allocation2 + $0x1c] sm:$0x1] }
 0x135   : > { %v3780_v31 = vpop.permute.xlu1 %739  ;;  %v3782_v41 = vpop.permute.xlu0 %763 }
 0x136   : > { %v860_v10 = vrot.slane %v3780_v31, %v3778_v5  ;;  %v892_v23 = vrot.slane %v3782_v41, %v3778_v5 }
 0x138   : > { %v926_v45 = vsel %vm911_vm12, %v860_v10, %v925_v38  ;;  %v932_v46 = vsel %vm911_vm12, %v892_v23, %v931_v43  ;;  %v998_v10 = vunpack.c.0.s8 %v997_v7  ;;  %vm1105_vm12 = vcmask 195584  }
 0x139   : > { %v695_v53 = vpop.permute.xlu1 %694  ;;  %v719_v18 = vpop.permute.xlu0 %718 }
 0x13a   : > { %v800_v9 = vrot.slane %v695_v53, %v3778_v5  ;;  %v832_v62 = vrot.slane %v719_v18, %v3778_v5  ;;  %v973_v18 = vld [vmem:[#allocation2 + $0x18] sm:$0xf] }
 0x13c   : > { %v914_v27 = vsel %vm913_vm13, %v800_v9, %v912_v16  ;;  %v921_v12 = vsel %vm913_vm13, %v832_v62, %v920_v2 }
 0x13d   : > { %v743_v59 = vpop.permute.xlu1 %742  ;;  %v767_v60 = vpop.permute.xlu0 %766 }
 0x13e   : > { %v864_v28 = vrot.slane %v743_v59, %v3778_v5  ;;  %v896_v33 = vrot.slane %v767_v60, %v3778_v5  ;;  %v958_v59 = vld [vmem:[#allocation2 + $0x4] sm:$0x1]  ;;  %v964_v60 = vld [vmem:[#allocation2 + $0xc] sm:$0x1] }
 0x140   : > { %v927_v41 = vsel %vm913_vm13, %v864_v28, %v926_v45  ;;  %v933_v47 = vsel %vm913_vm13, %v896_v33, %v932_v46  ;;  %vm1108_vm13 = vcmask 261120  }
 0x141   : > { %v698_v17 = vpop.permute.xlu1 %697  ;;  %v722_v20 = vpop.permute.xlu0 %721 }
 0x142   : > { %v804_v25 = vrot.slane %v698_v17, %v3778_v5  ;;  %v836_v26 = vrot.slane %v722_v20, %v3778_v5 }
 0x144   : > { %v916_v37 = vsel %vm915_vm14, %v804_v25, %v914_v27  ;;  %v922_v22 = vsel %vm915_vm14, %v836_v26, %v921_v12 }
 0x145   : > { %v935_v30 = vpack.c.b16 %v916_v37, %v916_v37  ;;  %v937_v0 = vpack.c.b16 %v922_v22, %v922_v22  ;;  %v746_v39 = vpop.permute.xlu1 %745  ;;  %v770_v44 = vpop.permute.xlu0 %769  ;;  %v3882_v37 = vsub.s32 %v998_v10, %v3775_v8 }
 0x146   : > { %v868_v40 = vrot.slane %v746_v39, %v3778_v5  ;;  %v900_v31 = vrot.slane %v770_v44, %v3778_v5 }
 0x147   : > { %v954_v42 = vsel %vm3832_vm0, %v935_v30, %v953_v34  ;;  %v962_v52 = vsel %vm3832_vm0, %v937_v0, %v961_v21 }
 0x148   : > { %955 = vst [vmem:[#allocation2] sm:$0xf] %v954_v42  ;;  %963 = vst [vmem:[#allocation2 + $0x8] sm:$0xf] %v962_v52  ;;  %v928_v53 = vsel %vm915_vm14, %v868_v40, %v927_v41  ;;  %v934_v50 = vsel %vm915_vm14, %v900_v31, %v933_v47  ;;  %vm1111_vm14 = vcmask 326656  }
 0x149   : > { %v939_v54 = vpack.c.b16 %v928_v53, %v928_v53  ;;  %v941_v19 = vpack.c.b16 %v934_v50, %v934_v50  ;;  %v701_v51 = vpop.permute.xlu1 %700  ;;  %v725_v49 = vpop.permute.xlu0 %724 }
 0x14a   : > { %v808_v55 = vrot.slane %v701_v51, %v3778_v5  ;;  %v840_v56 = vrot.slane %v725_v49, %v3778_v5 }
 0x14b   : > { %v968_v61 = vsel %vm3832_vm0, %v939_v54, %v967_v48  ;;  %v974_v3 = vsel %vm3832_vm0, %v941_v19, %v973_v18  ;;  %vm1117_vm0 = vcmask 457728  }
 0x14c   : > { %969 = vst [vmem:[#allocation2 + $0x10] sm:$0xf] %v968_v61  ;;  %975 = vst [vmem:[#allocation2 + $0x18] sm:$0xf] %v974_v3  ;;  %v936_v11 = vpack.c.b16 %v808_v55, %v808_v55  ;;  %v938_v6 = vpack.c.b16 %v840_v56, %v840_v56 }
 0x14d   : > { %v749_v57 = vpop.permute.xlu1 %748  ;;  %v773_v58 = vpop.permute.xlu0 %772 }
 0x14e   : > { %v959_v9 = vsel %vm3859_vm3, %v936_v11, %v958_v59  ;;  %v965_v62 = vsel %vm3859_vm3, %v938_v6, %v964_v60  ;;  %v872_v1 = vrot.slane %v749_v57, %v3778_v5  ;;  %v904_v14 = vrot.slane %v773_v58, %v3778_v5 }
 0x14f   : > { %960 = vst [vmem:[#allocation2 + $0x4] sm:$0x1] %v959_v9  ;;  %966 = vst [vmem:[#allocation2 + $0xc] sm:$0x1] %v965_v62  ;;  %v979_v29 = vld [vmem:[#allocation2] sm:$0xf] }
 0x150   : > { %v980_v15 = vld [vmem:[#allocation2 + $0x8] sm:$0xf]  ;;  %v940_v16 = vpack.c.b16 %v872_v1, %v872_v1  ;;  %v942_v2 = vpack.c.b16 %v904_v14, %v904_v14  ;;  %1125 = vrot.lane.b32.xlu1 %v979_v29, %s3443_s22  ;;  %v3445_v5 = vmov 1934713408   ;;  %v2509_v27 = vld [vmem:[#allocation2] sm:$0xe] }
 0x151   : > { %1127 = vrot.lane.b32.xlu0 %v980_v15, %s3443_s22  ;;  %v1014_v23 = vunpack.c.l.s4 %v3445_v5  ;;  %v2511_v12 = vld [vmem:[#allocation2 + $0x8] sm:$0xe]  ;;  %v986_v28 = vshrl.u32 %v979_v29, 16  ;;  %v987_v33 = vshrl.u32 %v980_v15, 16  ;;  %v1357_v35 = vld [vmem:[#allocation2] sm:$0xf]  ;;  %v985_v30 = vpack.i.b16 %v980_v15, %v979_v29 }
 0x152   : > { %v971_v17 = vsel %vm3859_vm3, %v940_v16, %v970_v63  ;;  %v977_v20 = vsel %vm3859_vm3, %v942_v2, %v976_v24  ;;  %v1358_v36 = vld [vmem:[#allocation2 + $0x8] sm:$0xf]  ;;  %v3879_v34 = vld [vmem:[#allocation2] sm:$0xe]  ;;  %v3161_v39 = vrot.slane %v2509_v27, 9  ;;  %v3162_v45 = vrot.slane %v2511_v12, 9 }
 0x153   : > { %972 = vst [vmem:[#allocation2 + $0x14] sm:$0x1] %v971_v17  ;;  %978 = vst [vmem:[#allocation2 + $0x1c] sm:$0x1] %v977_v20  ;;  %v981_v25 = vld [vmem:[#allocation2 + $0x10] sm:$0xf]  ;;  %v1015_v43 = vunpack.c.0.s8 %v1014_v23  ;;  %v3907_v56 = vrot.slane %v985_v30, %v3882_v37  ;;  %v3913_v59 = vpack.i.b16 %v987_v33, %v986_v28 }
 0x154   : > { %v982_v26 = vld [vmem:[#allocation2 + $0x18] sm:$0xf]  ;;  %1129 = vrot.lane.b32.xlu1 %v981_v25, %s3443_s22  ;;  %v3877_v32 = vld [vmem:[#allocation2 + $0x10] sm:$0xe]  ;;  %v3886_v22 = vld [vmem:[#allocation2 + $0x8] sm:$0xe] }
 0x155   : > { %1131 = vrot.lane.b32.xlu0 %v982_v26, %s3443_s22  ;;  %v3884_v21 = vld [vmem:[#allocation2 + $0x18] sm:$0xe]  ;;  %v3888_v38 = vld [vmem:[#allocation2] sm:$0xf]  ;;  %v992_v46 = vshrl.u32 %v981_v25, 16  ;;  %v991_v40 = vpack.i.b16 %v982_v26, %v981_v25  ;;  %v993_v31 = vshrl.u32 %v982_v26, 16  ;;  %v3904_v55 = vsub.s32 %v1015_v43, %v3775_v8 }
 0x156   : > { %v2510_v0 = vld [vmem:[#allocation2 + $0x4] sm:$0x1]  ;;  %v2512_v44 = vld [vmem:[#allocation2 + $0xc] sm:$0x1]  ;;  %v3163_v41 = vrot.slane %v3877_v32, 9  ;;  %v3164_v52 = vrot.slane %v3884_v21, 9 }
 0x157   : > { %v1359_v47 = vld [vmem:[#allocation2 + $0x10] sm:$0xf]  ;;  %v1360_v42 = vld [vmem:[#allocation2 + $0x18] sm:$0xf]  ;;  %v3174_v48 = vrot.slane %v3879_v34, 9  ;;  %v3175_v53 = vrot.slane %v3886_v22, 9  ;;  %v3915_v60 = vpack.i.b16 %v993_v31, %v992_v46  ;;  %v3918_v11 = vrot.slane %v991_v40, %v3882_v37 }
 0x158   : > { %1365 = vrot.lane.b32.xlu1 %v1357_v35, %s3446_s23  ;;  %v1805_v18 = vshrl.u32 %v3888_v38, 16  ;;  %v2527_v54 = vrot.slane %v2510_v0, 5  ;;  %v2531_v19 = vrot.slane %v2512_v44, 5  ;;  %v2728_v51 = vld [vmem:[#allocation2 + $0x4] sm:$0x1]  ;;  %v1808_v13 = vshll.u32 %v3888_v38, 16 }
 0x159   : > { %1367 = vrot.lane.b32.xlu0 %v1358_v36, %s3446_s23  ;;  %v1798_v49 = vld [vmem:[#allocation2 + $0x8] sm:$0xf]  ;;  %v3909_v3 = vld [vmem:[#allocation2 + $0xc] sm:$0x1]  ;;  %v3911_v4 = vld [vmem:[#allocation2 + $0x10] sm:$0xe]  ;;  %v1011_v30 = vcombine.low %v3907_v56, %v3918_v11 }
 0x15a   : > { %v2514_v61 = vld [vmem:[#allocation2 + $0x14] sm:$0x1]  ;;  %v2516_v8 = vld [vmem:[#allocation2 + $0x1c] sm:$0x1]  ;;  %v3922_v57 = vld [vmem:[#allocation2 + $0x18] sm:$0xe]  ;;  %v2528_v63 = vsel %vm3899_vm5, %v3161_v39, %v2527_v54  ;;  %v2532_v1 = vsel %vm3899_vm5, %v3162_v45, %v2531_v19 }
 0x15b   : > { %v2732_v6 = vld [vmem:[#allocation2 + $0x14] sm:$0x1]  ;;  %v2745_v58 = vrot.slane %v2728_v51, 5  ;;  %v1819_v7 = vshrl.u32 %v1798_v49, 16  ;;  %v1822_v9 = vshll.u32 %v1798_v49, 16  ;;  %v2535_v14 = vrot.slane %v2514_v61, 5 }
 0x15c   : > { %1369 = vrot.lane.b32.xlu1 %v1359_v47, %s3446_s23  ;;  %v1800_v62 = vld [vmem:[#allocation2 + $0x10] sm:$0xf]  ;;  %v2749_v24 = vrot.slane %v3909_v3, 5  ;;  %v1802_v29 = vld [vmem:[#allocation2 + $0x18] sm:$0xf]  ;;  %v2539_v15 = vrot.slane %v2516_v8, 5 }
 0x15d   : > { %1371 = vrot.lane.b32.xlu0 %v1360_v42, %s3446_s23  ;;  %v3176_v16 = vrot.slane %v3911_v4, 9  ;;  %v1797_v2 = vld [vmem:[#allocation2 + $0x4] sm:$0x1]  ;;  %v1833_v17 = vshrl.u32 %v1800_v62, 16  ;;  %v1836_v20 = vshll.u32 %v1800_v62, 16  ;;  %v2753_v10 = vrot.slane %v2732_v6, 5 }
 0x15e   : > { %v3177_v5 = vrot.slane %v3922_v57, 9  ;;  %v1847_v23 = vshrl.u32 %v1802_v29, 16  ;;  %v1850_v25 = vshll.u32 %v1802_v29, 16  ;;  %v2046_v26 = vld [vmem:[#allocation2] sm:$0xf]  ;;  %v1807_v12 = vrot.slane %v1805_v18, 4 }
 0x15f   : > { %v2734_v27 = vld [vmem:[#allocation2 + $0x1c] sm:$0x1]  ;;  %v1810_v28 = vrot.slane %v1808_v13, 5  ;;  %v1821_v33 = vrot.slane %v1819_v7, 4  ;;  %v1824_v35 = vrot.slane %v1822_v9, 5  ;;  %v2536_v36 = vsel %vm3899_vm5, %v3163_v41, %v2535_v14 }
 0x160   : > { %2541 = vrot.lane.b32.xlu1 %v2528_v63, %s3443_s22  ;;  %v1799_v32 = vld [vmem:[#allocation2 + $0xc] sm:$0x1]  ;;  %v1801_v21 = vld [vmem:[#allocation2 + $0x14] sm:$0x1]  ;;  %v1835_v38 = vrot.slane %v1833_v17, 4  ;;  %v1838_v43 = vrot.slane %v1836_v20, 5  ;;  %v2540_v0 = vsel %vm3899_vm5, %v3164_v52, %v2539_v15  ;;  %v2746_v40 = vsel %vm3899_vm5, %v3174_v48, %v2745_v58 }
 0x161   : > { %2543 = vrot.lane.b32.xlu0 %v2532_v1, %s3443_s22  ;;  %v1803_v39 = vld [vmem:[#allocation2 + $0x1c] sm:$0x1]  ;;  %v1849_v44 = vrot.slane %v1847_v23, 4  ;;  %v1852_v45 = vrot.slane %v1850_v25, 5  ;;  %v2055_v46 = vshrl.u32 %v2046_v26, 16  ;;  %v2757_v31 = vrot.slane %v2734_v27, 5 }
 0x162   : > { %v1814_v41 = vshll.u32 %v1797_v2, 16  ;;  %v2047_v47 = vld [vmem:[#allocation2 + $0x4] sm:$0x1]  ;;  %v2058_v42 = vshll.u32 %v2046_v26, 16  ;;  %v1811_v18 = vor.u32 %v1810_v28, %v1807_v12  ;;  %v1825_v54 = vor.u32 %v1824_v35, %v1821_v33  ;;  %v2048_v51 = vld [vmem:[#allocation2 + $0x8] sm:$0xf] }
 0x163   : > { %v1828_v52 = vshll.u32 %v1799_v32, 16  ;;  %v1842_v19 = vshll.u32 %v1801_v21, 16  ;;  %v2750_v49 = vsel %vm3899_vm5, %v3175_v53, %v2749_v24  ;;  %v2754_v34 = vsel %vm3899_vm5, %v3176_v16, %v2753_v10  ;;  %v2050_v57 = vld [vmem:[#allocation2 + $0x10] sm:$0xf]  ;;  %v2049_v13 = vld [vmem:[#allocation2 + $0xc] sm:$0x1] }
 0x164   : > { %2545 = vrot.lane.b32.xlu1 %v2536_v36, %s3443_s22  ;;  %v1839_v61 = vor.u32 %v1838_v43, %v1835_v38  ;;  %v1856_v3 = vshll.u32 %v1803_v39, 16  ;;  %v1853_v48 = vor.u32 %v1852_v45, %v1849_v44  ;;  %v2057_v4 = vrot.slane %v2055_v46, 4  ;;  %v2052_v14 = vld [vmem:[#allocation2 + $0x18] sm:$0xf]  ;;  %v2051_v26 = vld [vmem:[#allocation2 + $0x14] sm:$0x1] }
 0x165   : > { %2547 = vrot.lane.b32.xlu0 %v2540_v0, %s3443_s22  ;;  %v2060_v8 = vrot.slane %v2058_v42, 5  ;;  %v2064_v6 = vshll.u32 %v2047_v47, 16  ;;  %v2758_v22 = vsel %vm3899_vm5, %v3177_v5, %v2757_v31  ;;  %v1816_v58 = vrot.slane %v1814_v41, 5  ;;  %v2053_v35 = vld [vmem:[#allocation2 + $0x1c] sm:$0x1] }
 0x166   : > { %v2069_v53 = vshrl.u32 %v2048_v51, 16  ;;  %v2072_v7 = vshll.u32 %v2048_v51, 16  ;;  %v1812_v9 = vrot.slane %v1811_v18, 4  ;;  %v1826_v62 = vrot.slane %v1825_v54, 4  ;;  %v2297_v21 = vld [vmem:[#allocation2 + $0x4] sm:$0x1] }
 0x167   : > { %v1830_v63 = vrot.slane %v1828_v52, 5  ;;  %v1844_v1 = vrot.slane %v1842_v19, 5  ;;  %v1840_v24 = vrot.slane %v1839_v61, 4  ;;  %v1858_v29 = vrot.slane %v1856_v3, 5  ;;  %v2299_v38 = vld [vmem:[#allocation2 + $0xc] sm:$0x1] }
 0x168   : > { %2759 = vrot.lane.b32.xlu1 %v2746_v40, %s3446_s23  ;;  %v2083_v15 = vshrl.u32 %v2050_v57, 16  ;;  %v2086_v16 = vshll.u32 %v2050_v57, 16  ;;  %v1854_v17 = vrot.slane %v1853_v48, 4  ;;  %v2061_v20 = vor.u32 %v2060_v8, %v2057_v4  ;;  %v2296_v44 = vld [vmem:[#allocation2] sm:$0xe] }
 0x169   : > { %2761 = vrot.lane.b32.xlu0 %v2750_v49, %s3446_s23  ;;  %v3962_v10 = vrot.slane %v2064_v6, 5  ;;  %v2078_v5 = vshll.u32 %v2049_v13, 16  ;;  %v2071_v23 = vrot.slane %v2069_v53, 4  ;;  %v2074_v25 = vrot.slane %v2072_v7, 5  ;;  %v2301_v45 = vld [vmem:[#allocation2 + $0x14] sm:$0x1] }
 0x16a   : > { %v2097_v27 = vshrl.u32 %v2052_v14, 16  ;;  %v2100_v12 = vshll.u32 %v2052_v14, 16  ;;  %v3968_v28 = vrot.slane %v3913_v59, %v3882_v37  ;;  %v3972_v33 = vrot.slane %v3915_v60, %v3882_v37  ;;  %v2300_v60 = vld [vmem:[#allocation2 + $0x10] sm:$0xe]  ;;  %v2302_v40 = vld [vmem:[#allocation2 + $0x18] sm:$0xe] }
 0x16b   : > { %v3975_v36 = vrot.slane %v1011_v30, %v3904_v55  ;;  %v1012_v32 = vcombine.high %v3907_v56, %v3918_v11  ;;  %v1817_v43 = vsel %vm3958_vm8, %v1812_v9, %v1816_v58  ;;  %v1831_v59 = vsel %vm3958_vm8, %v1826_v62, %v1830_v63  ;;  %v2303_v31 = vld [vmem:[#allocation2 + $0x1c] sm:$0x1]  ;;  %v2298_v54 = vld [vmem:[#allocation2 + $0x8] sm:$0xe] }
 0x16c   : > { %2763 = vrot.lane.b32.xlu1 %v2754_v34, %s3446_s23  ;;  %v2085_v0 = vrot.slane %v2083_v15, 4  ;;  %v2088_v39 = vrot.slane %v2086_v16, 5  ;;  %v1845_v30 = vsel %vm3958_vm8, %v1840_v24, %v1844_v1  ;;  %v1859_v46 = vsel %vm3958_vm8, %v1854_v17, %v1858_v29  ;;  %v1553_v29 = vld [vmem:[#allocation2 + $0x8] sm:$0xf] }
 0x16d   : > { %2765 = vrot.lane.b32.xlu0 %v2758_v22, %s3446_s23  ;;  %v2080_v56 = vrot.slane %v2078_v5, 5  ;;  %v2092_v11 = vshll.u32 %v2051_v26, 16  ;;  %v2062_v41 = vrot.slane %v2061_v20, 4  ;;  %v2075_v47 = vor.u32 %v2074_v25, %v2071_v23  ;;  %v1551_v22 = vld [vmem:[#allocation2] sm:$0xf] }
 0x16e   : > { %v2099_v42 = vrot.slane %v2097_v27, 4  ;;  %v2102_v18 = vrot.slane %v2100_v12, 5  ;;  %v2317_v52 = vrot.slane %v2297_v21, 5  ;;  %v2321_v19 = vrot.slane %v2299_v38, 5  ;;  %v1555_v27 = vld [vmem:[#allocation2 + $0x10] sm:$0xf] }
 0x16f   : > { %v3150_v51 = vrot.slane %v2300_v60, 9  ;;  %v2325_v49 = vrot.slane %v2301_v45, 5  ;;  %v2089_v34 = vor.u32 %v2088_v39, %v2085_v0  ;;  %v2106_v61 = vshll.u32 %v2053_v35, 16 }
 0x170   : > { %1860 = vrot.lane.b32.xlu1 %v1817_v43, %s3443_s22  ;;  %v3151_v3 = vrot.slane %v2302_v40, 9  ;;  %v2329_v48 = vrot.slane %v2303_v31, 5  ;;  %v3990_v4 = vrot.slane %v1012_v32, %v3904_v55  ;;  %v3148_v8 = vrot.slane %v2296_v44, 9  ;;  %v1552_v32 = vld [vmem:[#allocation2 + $0x4] sm:$0x1] }
 0x171   : > { %1862 = vrot.lane.b32.xlu0 %v1831_v59, %s3443_s22  ;;  %v3149_v6 = vrot.slane %v2298_v54, 9  ;;  %v2326_v57 = vsel %vm3899_vm5, %v3150_v51, %v2325_v49  ;;  %v2094_v58 = vrot.slane %v2092_v11, 5  ;;  %v3222_v13 = vcombine.high %v3975_v36, %v3975_v36  ;;  %v1554_v43 = vld [vmem:[#allocation2 + $0xc] sm:$0x1]  ;;  %v1558_v49 = vld [vmem:[#allocation2 + $0x1c] sm:$0x1] }
 0x172   : > { %v1045_v53 = vcombine.low %v3968_v28, %v3972_v33  ;;  %v2330_v7 = vsel %vm3899_vm5, %v3151_v3, %v2329_v48  ;;  %v2076_v9 = vrot.slane %v2075_v47, 4  ;;  %v2103_v62 = vor.u32 %v2102_v18, %v2099_v42  ;;  %v1557_v18 = vld [vmem:[#allocation2 + $0x18] sm:$0xf] }
 0x173   : > { %v2318_v63 = vsel %vm3899_vm5, %v3148_v8, %v2317_v52  ;;  %v2322_v1 = vsel %vm3899_vm5, %v3149_v6, %v2321_v19  ;;  %v2090_v14 = vrot.slane %v2089_v34, 4  ;;  %v2339_v24 = vpack.i.b16 %v2330_v7, %v2326_v57 }
 0x174   : > { %1864 = vrot.lane.b32.xlu1 %v1845_v30, %s3443_s22  ;;  %v1563_v15 = vshrl.u32 %v1551_v22, 16  ;;  %v1566_v16 = vshll.u32 %v1551_v22, 16  ;;  %v2067_v17 = vsel %vm3958_vm8, %v2062_v41, %v3962_v10  ;;  %v2081_v20 = vsel %vm3958_vm8, %v2076_v9, %v2080_v56  ;;  %v1556_v56 = vld [vmem:[#allocation2 + $0x14] sm:$0x1] }
 0x175   : > { %1866 = vrot.lane.b32.xlu0 %v1859_v46, %s3443_s22  ;;  %v2108_v5 = vrot.slane %v2106_v61, 5  ;;  %v3098_v23 = vcombine.low %v3990_v4, %v3990_v4  ;;  %v2095_v50 = vsel %vm3958_vm8, %v2090_v14, %v2094_v58  ;;  %v4018_v25 = vrot.slane %v1045_v53, %v3904_v55 }
 0x176   : > { %v2333_v26 = vpack.i.b16 %v2322_v1, %v2318_v63  ;;  %v2104_v10 = vrot.slane %v2103_v62, 4  ;;  %v2340_v12 = vshrl.u32 %v2326_v57, 16  ;;  %v2341_v35 = vshrl.u32 %v2330_v7, 16 }
 0x177   : > { %v1577_v21 = vshrl.u32 %v1553_v29, 16  ;;  %v2358_v38 = vrot.slane %v2339_v24, %v3882_v37  ;;  %v1565_v59 = vrot.slane %v1563_v15, 4  ;;  %v1568_v0 = vrot.slane %v1566_v16, 5 }
 0x178   : > { %2110 = vrot.lane.b32.xlu1 %v2067_v17, %s3446_s23  ;;  %v1580_v39 = vshll.u32 %v1553_v29, 16  ;;  %v2109_v44 = vsel %vm3958_vm8, %v2104_v10, %v2108_v5  ;;  %v2334_v60 = vshrl.u32 %v2318_v63, 16  ;;  %v2335_v45 = vshrl.u32 %v2322_v1, 16 }
 0x179   : > { %2112 = vrot.lane.b32.xlu0 %v2081_v20, %s3446_s23  ;;  %v1591_v30 = vshrl.u32 %v1555_v27, 16  ;;  %v2350_v46 = vrot.slane %v2333_v26, %v3882_v37  ;;  %v1572_v11 = vshll.u32 %v1552_v32, 16  ;;  %v1579_v40 = vrot.slane %v1577_v21, 4 }
 0x17a   : > { %v1582_v31 = vrot.slane %v1580_v39, 5  ;;  %v3095_v41 = vcombine.low %v4018_v25, %v4018_v25  ;;  %v3224_v47 = vcombine.high %v3990_v4, %v3990_v4  ;;  %v3223_v42 = vcombine.high %v4018_v25, %v4018_v25 }
 0x17b   : > { %v1586_v54 = vshll.u32 %v1554_v43, 16  ;;  %v2359_v52 = vcombine.low %v2350_v46, %v2358_v38  ;;  %v1046_v19 = vcombine.high %v3968_v28, %v3972_v33  ;;  %v2342_v51 = vpack.i.b16 %v2341_v35, %v2340_v12 }
 0x17c   : > { %2114 = vrot.lane.b32.xlu1 %v2095_v50, %s3446_s23  ;;  %v1569_v34 = vor.u32 %v1568_v0, %v1565_v59  ;;  %v1583_v61 = vor.u32 %v1582_v31, %v1579_v40  ;;  %v1593_v3 = vrot.slane %v1591_v30, 4  ;;  %v1594_v48 = vshll.u32 %v1555_v27, 16 }
 0x17d   : > { %2116 = vrot.lane.b32.xlu0 %v2109_v44, %s3446_s23  ;;  %v1600_v8 = vshll.u32 %v1556_v56, 16  ;;  %v2336_v4 = vpack.i.b16 %v2335_v45, %v2334_v60  ;;  %v1574_v6 = vrot.slane %v1572_v11, 5  ;;  %v1605_v57 = vshrl.u32 %v1557_v18, 16 }
 0x17e   : > { %v1608_v22 = vshll.u32 %v1557_v18, 16  ;;  %v2360_v58 = vcombine.high %v2350_v46, %v2358_v38  ;;  %v1588_v53 = vrot.slane %v1586_v54, 5  ;;  %v1596_v28 = vrot.slane %v1594_v48, 5 }
 0x17f   : > { %v1614_v33 = vshll.u32 %v1558_v49, 16  ;;  %v4037_v7 = vrot.slane %v2359_v52, %v3904_v55  ;;  %v2392_v9 = vrot.slane %v2342_v51, %v3882_v37  ;;  %v1607_v62 = vrot.slane %v1605_v57, 4 }
 0x180   : > { %1071 = vrot.lane.b32.xlu1 %v3222_v13, %s3447_s24  ;;  %v1610_v63 = vrot.slane %v1608_v22, 5  ;;  %v1570_v1 = vrot.slane %v1569_v34, 4  ;;  %v1584_v13 = vrot.slane %v1583_v61, 4  ;;  %v1597_v14 = vor.u32 %v1596_v28, %v1593_v3 }
 0x181   : > { %1081 = vrot.lane.b32.xlu0 %v3098_v23, %s3448_s25  ;;  %v1602_v24 = vrot.slane %v1600_v8, 5  ;;  %v1060_v29 = vrot.slane %v1046_v19, %v3904_v55  ;;  %v2384_v15 = vrot.slane %v2336_v4, %v3882_v37  ;;  %v1616_v17 = vrot.slane %v1614_v33, 5 }
 0x182   : > { %v1611_v16 = vor.u32 %v1610_v63, %v1607_v62  ;;  %v2374_v20 = vrot.slane %v2360_v58, %v3904_v55  ;;  %v1575_v5 = vsel %vm3958_vm8, %v1570_v1, %v1574_v6  ;;  %v1589_v23 = vsel %vm3958_vm8, %v1584_v13, %v1588_v53 }
 0x183   : > { %v1598_v50 = vrot.slane %v1597_v14, 4  ;;  %v3246_v25 = vcombine.high %v4037_v7, %v4037_v7  ;;  %v2393_v26 = vcombine.low %v2384_v15, %v2392_v9  ;;  %v3451_v12 = vmov 0.0  }
 0x184   : > { %1066 = vrot.lane.b32.xlu1 %v3095_v41, %s3449_s26  ;;  %v1612_v27 = vrot.slane %v1611_v16, 4  ;;  %3282 = vmatprep.subr.bf16.mxu1 %v3451_v12  ;;  %v1620_v32 = vpack.i.b16 %v1589_v23, %v1575_v5  ;;  %v3099_v21 = vcombine.low %v1060_v29, %v1060_v29  ;;  %v3155_v43 = vcombine.low %v2374_v20, %v2374_v20 }
 0x185   : > { %1091 = vrot.lane.b32.xlu0 %v3224_v47, %s3450_s27  ;;  %v1603_v10 = vsel %vm3958_vm8, %v1598_v50, %v1602_v24  ;;  %3276 = vmatprep.subr.bf16.mxu0 %v3451_v12  ;;  %v2401_v59 = vrot.slane %v2393_v26, %v3904_v55  ;;  %v1621_v45 = vshrl.u32 %v1575_v5, 16  ;;  %v1622_v2 = vshrl.u32 %v1589_v23, 16 }
 0x186   : > { %v1617_v35 = vsel %vm3958_vm8, %v1612_v27, %v1616_v17  ;;  %v1627_v0 = vshrl.u32 %v1603_v10, 16  ;;  %v1637_v60 = vrot.slane %v1620_v32, %v3882_v37  ;;  %v3225_v30 = vcombine.high %v1060_v29, %v1060_v29  ;;  %3284 = vmatprep.mubr.msk.bf16.mxu1 %vm3455_vm9, %v3451_v12  ;;  %3278 = vmatprep.mubr.msk.bf16.mxu0 %vm3455_vm9, %v3451_v12 }
 0x187   : > { %v1626_v38 = vpack.i.b16 %v1617_v35, %v1603_v10  ;;  %v1628_v39 = vshrl.u32 %v1617_v35, 16  ;;  %v3152_v46 = vcombine.low %v2401_v59, %v2401_v59  ;;  %v2394_v56 = vcombine.high %v2384_v15, %v2392_v9 }
 0x188   : > { %2419 = vrot.lane.b32.xlu1 %v3246_v25, %s3447_s24  ;;  %v1623_v31 = vpack.i.b16 %v1622_v2, %v1621_v45  ;;  %v3248_v41 = vcombine.high %v2374_v20, %v2374_v20  ;;  %v3247_v47 = vcombine.high %v2401_v59, %v2401_v59  ;;  %vm1265_vm3 = vcmask 31744  }
 0x189   : > { %1076 = vrot.lane.b32.xlu0 %v3223_v42, %s3452_s28  ;;  %v1645_v44 = vrot.slane %v1626_v38, %v3882_v37  ;;  %v1629_v40 = vpack.i.b16 %v1628_v39, %v1627_v0  ;;  %v2408_v42 = vrot.slane %v2394_v56, %v3904_v55  ;;  %vm2965_vm5 = vcmask 7168  }
 0x18a   : > { %v1671_v52 = vrot.slane %v1623_v31, %v3882_v37 }
 0x18b   : > { %v1647_v11 = vcombine.high %v1637_v60, %v1645_v44  ;;  %v1679_v54 = vrot.slane %v1629_v40, %v3882_v37  ;;  %v3156_v19 = vcombine.low %v2408_v42, %v2408_v42  ;;  %v1646_v34 = vcombine.low %v1637_v60, %v1645_v44 }
 0x18c   : > { %2429 = vrot.lane.b32.xlu1 %v3155_v43, %s3448_s25  ;;  %v3249_v61 = vcombine.high %v2408_v42, %v2408_v42 }
 0x18d   : > { %1086 = vrot.lane.b32.xlu0 %v3099_v21, %s3453_s29  ;;  %v1661_v18 = vrot.slane %v1647_v11, %v3904_v55  ;;  %v1680_v49 = vcombine.low %v1671_v52, %v1679_v54  ;;  %v4076_v8 = vrot.slane %v1646_v34, %v3904_v55  ;;  %v1681_v57 = vcombine.high %v1671_v52, %v1679_v54 }
 0x18f   : > { %v3124_v51 = vcombine.low %v1661_v18, %v1661_v18  ;;  %v3236_v3 = vcombine.high %v1661_v18, %v1661_v18  ;;  %v1688_v48 = vrot.slane %v1680_v49, %v3904_v55  ;;  %v3234_v6 = vcombine.high %v4076_v8, %v4076_v8 }
 0x190   : > { %2414 = vrot.lane.b32.xlu1 %v3152_v46, %s3449_s26  ;;  %v1695_v58 = vrot.slane %v1681_v57, %v3904_v55 }
 0x191   : > { %1096 = vrot.lane.b32.xlu0 %v3225_v30, %s3454_s30  ;;  %v3121_v4 = vcombine.low %v1688_v48, %v1688_v48  ;;  %v3235_v22 = vcombine.high %v1688_v48, %v1688_v48 }
 0x192   : > { %v3125_v53 = vcombine.low %v1695_v58, %v1695_v58  ;;  %v3237_v28 = vcombine.high %v1695_v58, %v1695_v58 }
 0x194   : > { %2424 = vrot.lane.b32.xlu1 %v3247_v47, %s3452_s28 }
 0x195   : > { %2439 = vrot.lane.b32.xlu0 %v3248_v41, %s3450_s27 }
 0x198   : > { %2434 = vrot.lane.b32.xlu1 %v3156_v19, %s3453_s29 }
 0x199   : > { %1716 = vrot.lane.b32.xlu0 %v3124_v51, %s3448_s25 }
 0x19c   : > { %2444 = vrot.lane.b32.xlu1 %v3249_v61, %s3454_s30 }
 0x19d   : > { %1726 = vrot.lane.b32.xlu0 %v3236_v3, %s3450_s27 }
 0x1a0   : > { %1706 = vrot.lane.b32.xlu1 %v3234_v6, %s3447_s24 }
 0x1a1   : > { %1701 = vrot.lane.b32.xlu0 %v3121_v4, %s3449_s26 }
 0x1a5   : > { %1711 = vrot.lane.b32.xlu0 %v3235_v22, %s3452_s28 }
 0x1a9   : > { %1721 = vrot.lane.b32.xlu0 %v3125_v53, %s3453_s29 }
 0x1ad   : > { %1731 = vrot.lane.b32.xlu0 %v3237_v28, %s3454_s30 }
 0x1c2   : > { %v1126_v33 = vpop.permute.xlu1 %1125 }
 0x1c3   : > { %v1128_v9 = vpop.permute.xlu0 %1127  ;;  %v1136_v23 = vshrl.u32 %v1126_v33, 16 }
 0x1c4   : > { %v1135_v62 = vpack.i.b16 %v1128_v9, %v1126_v33  ;;  %v1137_v50 = vshrl.u32 %v1128_v9, 16 }
 0x1c6   : > { %v1130_v63 = vpop.permute.xlu1 %1129  ;;  %v1152_v14 = vrot.slane %v1135_v62, %v3882_v37  ;;  %v1138_v43 = vpack.i.b16 %v1137_v50, %v1136_v23 }
 0x1c7   : > { %v1132_v1 = vpop.permute.xlu0 %1131  ;;  %v1142_v29 = vshrl.u32 %v1130_v63, 16 }
 0x1c8   : > { %v1141_v13 = vpack.i.b16 %v1132_v1, %v1130_v63  ;;  %v1143_v15 = vshrl.u32 %v1132_v1, 16  ;;  %v1186_v46 = vrot.slane %v1138_v43, %v3882_v37 }
 0x1ca   : > { %v1160_v24 = vrot.slane %v1141_v13, %v3882_v37  ;;  %v1366_v16 = vpop.permute.xlu1 %1365  ;;  %v1144_v27 = vpack.i.b16 %v1143_v15, %v1142_v29 }
 0x1cb   : > { %v1368_v17 = vpop.permute.xlu0 %1367  ;;  %v1376_v22 = vshrl.u32 %v1366_v16, 16 }
 0x1cc   : > { %v1161_v20 = vcombine.low %v1152_v14, %v1160_v24  ;;  %v1162_v5 = vcombine.high %v1152_v14, %v1160_v24  ;;  %v1375_v25 = vpack.i.b16 %v1368_v17, %v1366_v16  ;;  %v1194_v39 = vrot.slane %v1144_v27, %v3882_v37 }
 0x1cd   : > { %v1377_v58 = vshrl.u32 %v1368_v17, 16 }
 0x1ce   : > { %v4095_v26 = vrot.slane %v1161_v20, %v3904_v55  ;;  %v1370_v10 = vpop.permute.xlu1 %1369  ;;  %v1176_v32 = vrot.slane %v1162_v5, %v3904_v55  ;;  %v1392_v59 = vrot.slane %v1375_v25, %v3882_v37  ;;  %v1196_v41 = vcombine.high %v1186_v46, %v1194_v39 }
 0x1cf   : > { %v1372_v35 = vpop.permute.xlu0 %1371  ;;  %v1195_v34 = vcombine.low %v1186_v46, %v1194_v39  ;;  %v1382_v61 = vshrl.u32 %v1370_v10, 16  ;;  %v1378_v29 = vpack.i.b16 %v1377_v58, %v1376_v22 }
 0x1d0   : > { %v1381_v21 = vpack.i.b16 %v1372_v35, %v1370_v10  ;;  %v3226_v38 = vcombine.high %v4095_v26, %v4095_v26  ;;  %v3105_v30 = vcombine.low %v1176_v32, %v1176_v32  ;;  %v3228_v54 = vcombine.high %v1176_v32, %v1176_v32 }
 0x1d1   : > { %v1383_v3 = vshrl.u32 %v1372_v35, 16  ;;  %v1210_v63 = vrot.slane %v1196_v41, %v3904_v55  ;;  %v1203_v14 = vrot.slane %v1195_v34, %v3904_v55  ;;  %v1426_v25 = vrot.slane %v1378_v29, %v3882_v37 }
 0x1d2   : > { %v1400_v0 = vrot.slane %v1381_v21, %v3882_v37  ;;  %1221 = vrot.lane.b32.xlu0 %v3226_v38, %s3447_s24  ;;  %v2542_v44 = vpop.permute.xlu1 %2541 }
 0x1d3   : > { %v2544_v60 = vpop.permute.xlu0 %2543  ;;  %v2552_v56 = vshrl.u32 %v2542_v44, 16  ;;  %v1384_v1 = vpack.i.b16 %v1383_v3, %v1382_v61  ;;  %v3229_v5 = vcombine.high %v1210_v63, %v1210_v63  ;;  %v3102_v50 = vcombine.low %v1203_v14, %v1203_v14 }
 0x1d4   : > { %v1401_v45 = vcombine.low %v1392_v59, %v1400_v0  ;;  %v1402_v2 = vcombine.high %v1392_v59, %v1400_v0  ;;  %v2553_v11 = vshrl.u32 %v2544_v60, 16  ;;  %v2551_v40 = vpack.i.b16 %v2544_v60, %v2542_v44 }
 0x1d5   : > { %v1434_v23 = vrot.slane %v1384_v1, %v3882_v37  ;;  %v3227_v38 = vcombine.high %v1203_v14, %v1203_v14 }
 0x1d6   : > { %1231 = vrot.lane.b32.xlu0 %v3105_v30, %s3448_s25  ;;  %v4107_v31 = vrot.slane %v1401_v45, %v3904_v55  ;;  %v1416_v47 = vrot.slane %v1402_v2, %v3904_v55  ;;  %v2546_v42 = vpop.permute.xlu1 %2545  ;;  %v2554_v48 = vpack.i.b16 %v2553_v11, %v2552_v56  ;;  %v4113_v4 = vrot.slane %v2551_v40, %v3882_v37 }
 0x1d7   : > { %v2548_v18 = vpop.permute.xlu0 %2547  ;;  %v2558_v52 = vshrl.u32 %v2546_v42, 16  ;;  %v1435_v21 = vcombine.low %v1426_v25, %v1434_v23  ;;  %v3106_v45 = vcombine.low %v1210_v63, %v1210_v63  ;;  %v1436_v56 = vcombine.high %v1426_v25, %v1434_v23 }
 0x1d8   : > { %v2557_v19 = vpack.i.b16 %v2548_v18, %v2546_v42  ;;  %v2559_v51 = vshrl.u32 %v2548_v18, 16  ;;  %v3230_v49 = vcombine.high %v4107_v31, %v4107_v31  ;;  %v3232_v62 = vcombine.high %v1416_v47, %v1416_v47 }
 0x1d9   : > { %v3115_v13 = vcombine.low %v1416_v47, %v1416_v47  ;;  %v2602_v24 = vrot.slane %v2554_v48, %v3882_v37  ;;  %v1443_v2 = vrot.slane %v1435_v21, %v3904_v55  ;;  %v1450_v61 = vrot.slane %v1436_v56, %v3904_v55 }
 0x1da   : > { %v2560_v6 = vpack.i.b16 %v2559_v51, %v2558_v52  ;;  %v4116_v57 = vrot.slane %v2557_v19, %v3882_v37  ;;  %1241 = vrot.lane.b32.xlu0 %v3228_v54, %s3450_s27  ;;  %1461 = vrot.lane.b32.xlu1 %v3230_v49, %s3447_s24  ;;  %v4120_v53 = vpop.permute.xlu1 %2759 }
 0x1db   : > { %v4122_v28 = vpop.permute.xlu0 %2761  ;;  %v3112_v18 = vcombine.low %v1443_v2, %v1443_v2 }
 0x1dc   : > { %v2578_v33 = vcombine.high %v4113_v4, %v4116_v57  ;;  %v2610_v9 = vrot.slane %v2560_v6, %v3882_v37  ;;  %v2769_v29 = vpack.i.b16 %v4122_v28, %v4120_v53  ;;  %v2577_v25 = vcombine.low %v4113_v4, %v4116_v57 }
 0x1de   : > { %1481 = vrot.lane.b32.xlu0 %v3232_v62, %s3450_s27  ;;  %1471 = vrot.lane.b32.xlu1 %v3115_v13, %s3448_s25  ;;  %v4132_v15 = vpop.permute.xlu1 %2763  ;;  %v4137_v17 = vrot.slane %v2578_v33, %v3904_v55  ;;  %v2611_v20 = vcombine.low %v2602_v24, %v2610_v9  ;;  %v2612_v59 = vcombine.high %v2602_v24, %v2610_v9  ;;  %v2770_v24 = vshrl.u32 %v4120_v53, 16 }
 0x1df   : > { %v4134_v16 = vpop.permute.xlu0 %2765  ;;  %v2776_v58 = vshrl.u32 %v4132_v15, 16  ;;  %v3231_v62 = vcombine.high %v1443_v2, %v1443_v2 }
 0x1e0   : > { %v3168_v35 = vcombine.low %v4137_v17, %v4137_v17  ;;  %v2619_v32 = vrot.slane %v2611_v20, %v3904_v55  ;;  %v4170_v41 = vrot.slane %v2612_v59, %v3904_v55  ;;  %v2775_v33 = vpack.i.b16 %v4134_v16, %v4132_v15 }
 0x1e1   : > { %v2777_v9 = vshrl.u32 %v4134_v16, 16  ;;  %v2771_v15 = vshrl.u32 %v4122_v28, 16 }
 0x1e2   : > { %1246 = vrot.lane.b32.xlu0 %v3229_v5, %s3454_s30  ;;  %1216 = vrot.lane.b32.xlu1 %v3102_v50, %s3449_s26  ;;  %v4143_v27 = vpop.permute.xlu1 %1860  ;;  %v3165_v60 = vcombine.low %v2619_v32, %v2619_v32  ;;  %v3251_v42 = vcombine.high %v2619_v32, %v2619_v32  ;;  %v3169_v34 = vcombine.low %v4170_v41, %v4170_v41 }
 0x1e3   : > { %v4145_v10 = vpop.permute.xlu0 %1862  ;;  %v2778_v53 = vpack.i.b16 %v2777_v9, %v2776_v58  ;;  %v4208_v28 = vrot.slane %v2775_v33, %v3882_v37 }
 0x1e4   : > { %v1870_v43 = vpack.i.b16 %v4145_v10, %v4143_v27 }
 0x1e5   : > { %v4226_v56 = vrot.slane %v2778_v53, %v3882_v37 }
 0x1e6   : > { %2647 = vrot.lane.b32.xlu0 %v3168_v35, %s3448_s25  ;;  %1226 = vrot.lane.b32.xlu1 %v3227_v38, %s3452_s28  ;;  %v4154_v0 = vpop.permute.xlu1 %1864  ;;  %v4162_v30 = vrot.slane %v1870_v43, %v3882_v37  ;;  %v3116_v35 = vcombine.low %v1450_v61, %v1450_v61  ;;  %v2772_v38 = vpack.i.b16 %v2771_v15, %v2770_v24 }
 0x1e7   : > { %v4156_v39 = vpop.permute.xlu0 %1866  ;;  %v4214_v43 = vrot.slane %v2769_v29, %v3882_v37 }
 0x1e8   : > { %v1876_v44 = vpack.i.b16 %v4156_v39, %v4154_v0 }
 0x1e9   : > { %v2795_v2 = vcombine.low %v4214_v43, %v4208_v28 }
 0x1ea   : > { %v4165_v46 = vrot.slane %v1876_v44, %v3882_v37  ;;  %2632 = vrot.lane.b32.xlu0 %v3165_v60, %s3449_s26  ;;  %1236 = vrot.lane.b32.xlu1 %v3106_v45, %s3453_s29  ;;  %v2111_v11 = vpop.permute.xlu1 %2110  ;;  %v4221_v45 = vrot.slane %v2577_v25, %v3904_v55 }
 0x1eb   : > { %v2113_v40 = vpop.permute.xlu0 %2112  ;;  %v2121_v54 = vshrl.u32 %v2111_v11, 16 }
 0x1ec   : > { %v1897_v47 = vcombine.high %v4162_v30, %v4165_v46  ;;  %v2120_v52 = vpack.i.b16 %v2113_v40, %v2111_v11  ;;  %v2122_v19 = vshrl.u32 %v2113_v40, 16  ;;  %v3233_v11 = vcombine.high %v1450_v61, %v1450_v61 }
 0x1ed   : > { %v4230_v40 = vrot.slane %v2772_v38, %v3882_v37  ;;  %v1878_v61 = vshrl.u32 %v4156_v39, 16 }
 0x1ee   : > { %2642 = vrot.lane.b32.xlu0 %v3251_v42, %s3452_s28  ;;  %1456 = vrot.lane.b32.xlu1 %v3112_v18, %s3449_s26  ;;  %v2115_v51 = vpop.permute.xlu1 %2114  ;;  %v4180_v3 = vrot.slane %v1897_v47, %v3904_v55  ;;  %v2123_v63 = vpack.i.b16 %v2122_v19, %v2121_v54  ;;  %v4187_v1 = vrot.slane %v2120_v52, %v3882_v37 }
 0x1ef   : > { %v2117_v49 = vpop.permute.xlu0 %2116  ;;  %v2127_v48 = vshrl.u32 %v2115_v51, 16  ;;  %v4237_v19 = vrot.slane %v2795_v2, %v3904_v55 }
 0x1f0   : > { %v2126_v6 = vpack.i.b16 %v2117_v49, %v2115_v51  ;;  %v2128_v22 = vshrl.u32 %v2117_v49, 16  ;;  %v3240_v50 = vcombine.high %v4180_v3, %v4180_v3  ;;  %v2171_v32 = vrot.slane %v2123_v63, %v3882_v37 }
 0x1f1   : > { %v2829_v51 = vcombine.low %v4230_v40, %v4226_v56  ;;  %v3250_v49 = vcombine.high %v4221_v45, %v4221_v45  ;;  %v1871_v63 = vshrl.u32 %v4143_v27, 16 }
 0x1f2   : > { %v2129_v13 = vpack.i.b16 %v2128_v22, %v2127_v48  ;;  %v4190_v14 = vrot.slane %v2126_v6, %v3882_v37  ;;  %2652 = vrot.lane.b32.xlu0 %v3169_v34, %s3453_s29  ;;  %1466 = vrot.lane.b32.xlu1 %v3231_v62, %s3452_s28  ;;  %v1072_v16 = vpop.permute.xlu1 %1071  ;;  %v1877_v34 = vshrl.u32 %v4154_v0, 16  ;;  %v1896_v62 = vcombine.low %v4162_v30, %v4165_v46 }
 0x1f3   : > { %v1082_v20 = vpop.permute.xlu0 %1081  ;;  %v3254_v0 = vcombine.high %v4237_v19, %v4237_v19  ;;  %v4255_v39 = vrot.slane %v2829_v51, %v3904_v55  ;;  %v3252_v51 = vcombine.high %v4137_v17, %v4137_v17 }
 0x1f4   : > { %v2147_v5 = vcombine.high %v4187_v1, %v4190_v14  ;;  %v4201_v23 = vrot.slane %v2129_v13, %v3882_v37  ;;  %v1872_v13 = vshrl.u32 %v4145_v10, 16  ;;  %v1879_v24 = vpack.i.b16 %v1878_v61, %v1877_v34 }
 0x1f5   : > { %v3178_v27 = vcombine.low %v4255_v39, %v4255_v39 }
 0x1f6   : > { %v2161_v21 = vrot.slane %v2147_v5, %v3904_v55  ;;  %1976 = vrot.lane.b32.xlu0 %v3240_v50, %s3450_s27  ;;  %1476 = vrot.lane.b32.xlu1 %v3116_v35, %s3453_s29  ;;  %v1067_v59 = vpop.permute.xlu1 %1066  ;;  %v2180_v4 = vcombine.low %v2171_v32, %v4201_v23  ;;  %v2181_v58 = vcombine.high %v2171_v32, %v4201_v23 }
 0x1f7   : > { %v1092_v44 = vpop.permute.xlu0 %1091  ;;  %v1101_v57 = vsel %vm1098_vm10, %v3975_v36, %v1067_v59  ;;  %v4267_v23 = vrot.slane %v1896_v62, %v3904_v55  ;;  %v1873_v25 = vpack.i.b16 %v1872_v13, %v1871_v63  ;;  %v1929_v38 = vrot.slane %v1879_v24, %v3882_v37  ;;  %v2945_v63 = vld [vmem:[%s4465_s2] sm:$0xff] }
 0x1f8   : > { %v3142_v60 = vcombine.low %v2161_v21, %v2161_v21  ;;  %v1104_v47 = vsel %vm1102_vm11, %v1101_v57, %v1072_v16  ;;  %v3244_v54 = vcombine.high %v2161_v21, %v2161_v21  ;;  %v2188_v52 = vrot.slane %v2180_v4, %v3904_v55 }
 0x1f9   : > { %v2195_v5 = vrot.slane %v2181_v58, %v3904_v55  ;;  %v2146_v59 = vcombine.low %v4187_v1, %v4190_v14  ;;  %v1921_v57 = vrot.slane %v1873_v25, %v3882_v37 }
 0x1fa   : > { %2216 = vrot.lane.b32.xlu0 %v3142_v60, %s3448_s25  ;;  %1486 = vrot.lane.b32.xlu1 %v3233_v11, %s3454_s30  ;;  %v2420_v36 = vpop.permute.xlu1 %2419  ;;  %v3139_v9 = vcombine.low %v2188_v52, %v2188_v52  ;;  %v3243_v16 = vcombine.high %v2188_v52, %v2188_v52 }
 0x1fb   : > { %v1077_v42 = vpop.permute.xlu0 %1076  ;;  %v3143_v21 = vcombine.low %v2195_v5, %v2195_v5  ;;  %v3245_v14 = vcombine.high %v2195_v5, %v2195_v5  ;;  %v1930_v11 = vcombine.low %v1921_v57, %v1929_v38  ;;  %v1931_v17 = vcombine.high %v1921_v57, %v1929_v38 }
 0x1fc   : > { %v1107_v18 = vsel %vm1105_vm12, %v1104_v47, %v1077_v42  ;;  %v3133_v47 = vcombine.low %v4180_v3, %v4180_v3  ;;  %v2830_v5 = vcombine.high %v4230_v40, %v4226_v56 }
 0x1fd   : > { %v1110_v6 = vsel %vm1108_vm13, %v1107_v18, %v1082_v20 }
 0x1fe   : > { %2226 = vrot.lane.b32.xlu0 %v3244_v54, %s3450_s27  ;;  %2637 = vrot.lane.b32.xlu1 %v3250_v49, %s3447_s24  ;;  %v2430_v48 = vpop.permute.xlu1 %2429  ;;  %v2796_v54 = vcombine.high %v4214_v43, %v4208_v28  ;;  %v1938_v49 = vrot.slane %v1930_v11, %v3904_v55  ;;  %v3253_v43 = vcombine.high %v4170_v41, %v4170_v41 }
 0x1ff   : > { %v1087_v22 = vpop.permute.xlu0 %1086 }
 0x200   : > { %v1113_v33 = vsel %vm1111_vm14, %v1110_v6, %v1087_v22  ;;  %v2810_v61 = vrot.slane %v2796_v54, %v3904_v55  ;;  %v3130_v6 = vcombine.low %v1938_v49, %v1938_v49  ;;  %v3239_v62 = vcombine.high %v1938_v49, %v1938_v49  ;;  %v3109_v54 = vld [vmem:[%s4464_s1 + $0x4] sm:$0xf] }
 0x201   : > { %v1116_v30 = vsel %vm1114_vm15, %v1113_v33, %v1092_v44  ;;  %v3238_v44 = vcombine.high %v4267_v23, %v4267_v23 }
 0x202   : > { %2201 = vrot.lane.b32.xlu0 %v3139_v9, %s3449_s26  ;;  %2855 = vrot.lane.b32.xlu1 %v3254_v0, %s3447_s24  ;;  %v2415_v29 = vpop.permute.xlu1 %2414  ;;  %v3256_v9 = vcombine.high %v2810_v61, %v2810_v61  ;;  %v1945_v0 = vrot.slane %v1931_v17, %v3904_v55 }
 0x203   : > { %v1097_v15 = vpop.permute.xlu0 %1096  ;;  %v2448_v46 = vsel %vm1098_vm10, %v4037_v7, %v2415_v29  ;;  %v1120_v7 = vld [vmem:[%s4464_s1] sm:$0xf] }
 0x204   : > { %v1119_v20 = vsel %vm1117_vm0, %v1116_v30, %v1097_v15  ;;  %v2450_v50 = vsel %vm1102_vm11, %v2448_v46, %v2420_v36  ;;  %v4294_v36 = vrot.slane %v2146_v59, %v3904_v55  ;;  %v3134_v24 = vcombine.low %v1945_v0, %v1945_v0 }
 0x205   : > { %v1315_v10 = vsel %vm1269_vm2, %v1119_v20, 0  ;;  %v3128_v20 = vld [vmem:[%s4464_s1 + $0xc] sm:$0xf] }
 0x206   : > { %2211 = vrot.lane.b32.xlu0 %v3243_v16, %s3452_s28  ;;  %3283 = vmatpush3.bf16.msra.mxu1 %v1315_v10  ;;  %v2425_v53 = vpop.permute.xlu1 %2424  ;;  %v3242_v3 = vcombine.high %v4294_v36, %v4294_v36  ;;  %v3241_v16 = vcombine.high %v1945_v0, %v1945_v0  ;;  %v3181_v10 = vcombine.low %v2810_v61, %v2810_v61 }
 0x207   : > { %2850 = vrot.lane.b32.xlu1 %v3178_v27, %s3449_s26  ;;  %v2440_v35 = vpop.permute.xlu0 %2439  ;;  %3294 = vmatprep.subr.bf16.mxu1 %v3451_v12  ;;  %v2452_v32 = vsel %vm1105_vm12, %v2450_v50, %v2425_v53  ;;  %v3255_v27 = vcombine.high %v4255_v39, %v4255_v39  ;;  %v2844_v50 = vrot.slane %v2830_v5, %v3904_v55 }
 0x208   : > { %v2454_v4 = vsel %vm1108_vm13, %v2452_v32, %v2430_v48 }
 0x209   : > { %3285 = vmatmul.mubr.msk.bf16.vlgmr.msra.gmra.mrb[0].mxu1 %vm1265_vm3, %v1120_v7  ;;  %v3182_v7 = vcombine.low %v2844_v50, %v2844_v50  ;;  %v3257_v25 = vcombine.high %v2844_v50, %v2844_v50 }
 0x20a   : > { %2221 = vrot.lane.b32.xlu0 %v3143_v21, %s3453_s29  ;;  %3296 = vmatprep.mubr.msk.bf16.mxu1 %vm3455_vm9, %v3451_v12  ;;  %v2435_v60 = vpop.permute.xlu1 %2434 }
 0x20b   : > { %1956 = vrot.lane.b32.xlu1 %v3238_v44, %s3447_s24  ;;  %v1717_v2 = vpop.permute.xlu0 %1716  ;;  %v2456_v1 = vsel %vm1111_vm14, %v2454_v4, %v2435_v60 }
 0x20c   : > { %v2458_v42 = vsel %vm1114_vm15, %v2456_v1, %v2440_v35 }
 0x20e   : > { %2231 = vrot.lane.b32.xlu0 %v3245_v14, %s3454_s30  ;;  %v2445_v37 = vpop.permute.xlu1 %2444 }
 0x20f   : > { %1966 = vrot.lane.b32.xlu1 %v3133_v47, %s3448_s25  ;;  %v1727_v18 = vpop.permute.xlu0 %1726  ;;  %v4304_v52 = vsel %vm1117_vm0, %v2458_v42, %v2445_v37 }
 0x212   : > { %2657 = vrot.lane.b32.xlu0 %v3252_v51, %s3450_s27  ;;  %v1707_v48 = vpop.permute.xlu1 %1706 }
 0x213   : > { %2206 = vrot.lane.b32.xlu1 %v3242_v3, %s3447_s24  ;;  %v1702_v34 = vpop.permute.xlu0 %1701 }
 0x214   : > { %v1735_v28 = vsel %vm1098_vm10, %v4076_v8, %v1702_v34 }
 0x215   : > { %v1737_v22 = vsel %vm1102_vm11, %v1735_v28, %v1707_v48 }
 0x216   : > { %2662 = vrot.lane.b32.xlu0 %v3253_v43, %s3454_s30 }
 0x217   : > { %1951 = vrot.lane.b32.xlu1 %v3130_v6, %s3449_s26  ;;  %v1712_v58 = vpop.permute.xlu0 %1711 }
 0x218   : > { %v1739_v33 = vsel %vm1105_vm12, %v1737_v22, %v1712_v58 }
 0x219   : > { %v1741_v8 = vsel %vm1108_vm13, %v1739_v33, %v1717_v2 }
 0x21a   : > { %2875 = vrot.lane.b32.xlu0 %v3256_v9, %s3450_s27  ;;  %v3119_v9 = vld [vmem:[%s4464_s1 + $0x8] sm:$0xf]  ;;  %s3061_s27 = sshll.u32 %s4483_s16, 2 }
 0x21b   : > { %1961 = vrot.lane.b32.xlu1 %v3239_v62, %s3452_s28  ;;  %v1722_v41 = vpop.permute.xlu0 %1721 }
 0x21c   : > { %v1743_v13 = vsel %vm1111_vm14, %v1741_v8, %v1722_v41 }
 0x21d   : > { %v1745_v29 = vsel %vm1114_vm15, %v1743_v13, %v1727_v18 }
 0x21e   : > { %2948 = vperm.xlu0 %3432, %v2945_v63  }
 0x21f   : > { %1971 = vrot.lane.b32.xlu1 %v3134_v24, %s3453_s29  ;;  %v1732_v15 = vpop.permute.xlu0 %1731 }
 0x220   : > { %v1747_v30 = vsel %vm1117_vm0, %v1745_v29, %v1732_v15 }
 0x221   : > { %v1753_v46 = vsel %vm1269_vm2, %v1747_v30, 0 }
 0x222   : > { %3295 = vmatpush3.bf16.msra.mxu1 %v1753_v46 }
 0x223   : > { %1981 = vrot.lane.b32.xlu1 %v3241_v16, %s3454_s30  ;;  %3306 = vmatprep.subr.bf16.mxu1 %v3451_v12 }
 0x225   : > { %3297 = vmatmul.mubr.msk.bf16.vlgmr.msra.gmra.mrb[4].mxu1 %vm1265_vm3, %v3128_v20 }
 0x226   : > { %3308 = vmatprep.mubr.msk.bf16.mxu1 %vm3455_vm9, %v3451_v12 }
 0x227   : > { %2860 = vrot.lane.b32.xlu1 %v3255_v27, %s3452_s28 }
 0x22b   : > { %2865 = vrot.lane.b32.xlu1 %v3181_v10, %s3448_s25 }
 0x22f   : > { %2870 = vrot.lane.b32.xlu1 %v3182_v7, %s3453_s29 }
 0x233   : > { %2880 = vrot.lane.b32.xlu1 %v3257_v25, %s3454_s30  ;;  %s207_s30 = scalar_lea.vmem %s4466_s3, %s3061_s27 }
 0x244   : > { %v1222_v56 = vpop.permute.xlu0 %1221 }
 0x248   : > { %v1232_v40 = vpop.permute.xlu0 %1231 }
 0x24c   : > { %v1462_v39 = vpop.permute.xlu1 %1461  ;;  %v1242_v53 = vpop.permute.xlu0 %1241 }
 0x250   : > { %v1482_v35 = vpop.permute.xlu0 %1481  ;;  %v1472_v32 = vpop.permute.xlu1 %1471 }
 0x254   : > { %v1247_v21 = vpop.permute.xlu0 %1246  ;;  %v1217_v38 = vpop.permute.xlu1 %1216 }
 0x255   : > { %v1250_v59 = vsel %vm1098_vm10, %v4095_v26, %v1217_v38 }
 0x256   : > { %v1252_v4 = vsel %vm1102_vm11, %v1250_v59, %v1222_v56 }
 0x258   : > { %v2648_v55 = vpop.permute.xlu0 %2647  ;;  %v1227_v44 = vpop.permute.xlu1 %1226 }
 0x259   : > { %v1254_v57 = vsel %vm1105_vm12, %v1252_v4, %v1227_v44 }
 0x25a   : > { %v1256_v1 = vsel %vm1108_vm13, %v1254_v57, %v1232_v40 }
 0x25c   : > { %v2633_v60 = vpop.permute.xlu0 %2632  ;;  %v1237_v2 = vpop.permute.xlu1 %1236 }
 0x25d   : > { %v1258_v14 = vsel %vm1111_vm14, %v1256_v1, %v1237_v2  ;;  %v2666_v15 = vsel %vm1098_vm10, %v4221_v45, %v2633_v60 }
 0x25e   : > { %v1260_v11 = vsel %vm1114_vm15, %v1258_v14, %v1242_v53 }
 0x25f   : > { %v1262_v42 = vsel %vm1117_vm0, %v1260_v11, %v1247_v21  ;;  %v3172_v11 = vld [vmem:[%s4464_s1 + $0x1c] sm:$0xf] }
 0x260   : > { %v2643_v47 = vpop.permute.xlu0 %2642  ;;  %v1457_v37 = vpop.permute.xlu1 %1456  ;;  %v1270_v26 = vsel %vm1269_vm2, %v1262_v42, 0 }
 0x261   : > { %v1490_v18 = vsel %vm1098_vm10, %v4107_v31, %v1457_v37  ;;  %3277 = vmatpush3.bf16.msra.mxu0 %v1270_v26  ;;  %v3137_v37 = vld [vmem:[%s4464_s1 + $0x10] sm:$0xf] }
 0x262   : > { %3288 = vmatprep.subr.bf16.mxu0 %v3451_v12  ;;  %v1492_v3 = vsel %vm1102_vm11, %v1490_v18, %v1462_v39  ;;  %v2466_v18 = vsel %vm1269_vm2, %v4304_v52, 0  ;;  %v3159_v52 = vld [vmem:[%s4464_s1 + $0x18] sm:$0xf] }
 0x264   : > { %v2653_v51 = vpop.permute.xlu0 %2652  ;;  %v1467_v49 = vpop.permute.xlu1 %1466  ;;  %3279 = vmatmul.mubr.msk.bf16.vlgmr.msra.gmra.mrb[0].mxu0 %vm1265_vm3, %v3109_v54 }
 0x265   : > { %v1494_v34 = vsel %vm1105_vm12, %v1492_v3, %v1467_v49  ;;  %3290 = vmatprep.mubr.msk.bf16.mxu0 %vm3455_vm9, %v3451_v12 }
 0x266   : > { %v1496_v31 = vsel %vm1108_vm13, %v1494_v34, %v1472_v32 }
 0x268   : > { %v1977_v61 = vpop.permute.xlu0 %1976  ;;  %v1477_v48 = vpop.permute.xlu1 %1476 }
 0x269   : > { %v1498_v28 = vsel %vm1111_vm14, %v1496_v31, %v1477_v48 }
 0x26a   : > { %v1500_v6 = vsel %vm1114_vm15, %v1498_v28, %v1482_v35 }
 0x26c   : > { %v2217_v43 = vpop.permute.xlu0 %2216  ;;  %v1487_v17 = vpop.permute.xlu1 %1486 }
 0x26d   : > { %v1502_v22 = vsel %vm1117_vm0, %v1500_v6, %v1487_v17  ;;  %v3185_v6 = vld [vmem:[%s4464_s1 + $0x20] sm:$0xf] }
 0x26e   : > { %v1508_v58 = vsel %vm1269_vm2, %v1502_v22, 0 }
 0x26f   : > { %3289 = vmatpush3.bf16.msra.mxu0 %v1508_v58 }
 0x270   : > { %v2227_v33 = vpop.permute.xlu0 %2226  ;;  %v2638_v62 = vpop.permute.xlu1 %2637  ;;  %3300 = vmatprep.subr.bf16.mxu0 %v3451_v12 }
 0x271   : > { %v2668_v46 = vsel %vm1102_vm11, %v2666_v15, %v2638_v62 }
 0x272   : > { %3291 = vmatmul.mubr.msk.bf16.vlgmr.msra.gmra.mrb[4].mxu0 %vm1265_vm3, %v3119_v9  ;;  %v2670_v20 = vsel %vm1105_vm12, %v2668_v46, %v2643_v47 }
 0x273   : > { %3302 = vmatprep.mubr.msk.bf16.mxu0 %vm3455_vm9, %v3451_v12  ;;  %v2672_v25 = vsel %vm1108_vm13, %v2670_v20, %v2648_v55 }
 0x274   : > { %v2202_v0 = vpop.permute.xlu0 %2201  ;;  %v2856_v8 = vpop.permute.xlu1 %2855 }
 0x275   : > { %v2235_v5 = vsel %vm1098_vm10, %v4294_v36, %v2202_v0  ;;  %v2674_v36 = vsel %vm1111_vm14, %v2672_v25, %v2653_v51 }
 0x278   : > { %v2212_v41 = vpop.permute.xlu0 %2211 }
 0x279   : > { %v2851_v63 = vpop.permute.xlu1 %2850 }
 0x27a   : > { %v2884_v54 = vsel %vm1098_vm10, %v4237_v19, %v2851_v63 }
 0x27b   : > { %v2886_v3 = vsel %vm1102_vm11, %v2884_v54, %v2856_v8 }
 0x27c   : > { %v2222_v13 = vpop.permute.xlu0 %2221 }
 0x27d   : > { %v1957_v24 = vpop.permute.xlu1 %1956 }
 0x280   : > { %v2232_v29 = vpop.permute.xlu0 %2231 }
 0x281   : > { %v1967_v30 = vpop.permute.xlu1 %1966 }
 0x284   : > { %v2658_v16 = vpop.permute.xlu0 %2657 }
 0x285   : > { %v2207_v27 = vpop.permute.xlu1 %2206  ;;  %v2676_v32 = vsel %vm1114_vm15, %v2674_v36, %v2658_v16 }
 0x286   : > { %v2237_v10 = vsel %vm1102_vm11, %v2235_v5, %v2207_v27 }
 0x287   : > { %v2239_v50 = vsel %vm1105_vm12, %v2237_v10, %v2212_v41 }
 0x288   : > { %v2241_v7 = vsel %vm1108_vm13, %v2239_v50, %v2217_v43  ;;  %v2663_v39 = vpop.permute.xlu0 %2662 }
 0x289   : > { %v2243_v45 = vsel %vm1111_vm14, %v2241_v7, %v2222_v13  ;;  %v1952_v56 = vpop.permute.xlu1 %1951  ;;  %v2678_v38 = vsel %vm1117_vm0, %v2676_v32, %v2663_v39 }
 0x28a   : > { %v1985_v40 = vsel %vm1098_vm10, %v4267_v23, %v1952_v56  ;;  %v2245_v53 = vsel %vm1114_vm15, %v2243_v45, %v2227_v33  ;;  %v3146_v23 = vld [vmem:[%s4464_s1 + $0x14] sm:$0xf]  ;;  %v2684_v4 = vsel %vm1269_vm2, %v2678_v38, 0 }
 0x28b   : > { %v2247_v35 = vsel %vm1117_vm0, %v2245_v53, %v2232_v29  ;;  %v1987_v59 = vsel %vm1102_vm11, %v1985_v40, %v1957_v24 }
 0x28c   : > { %v2253_v21 = vsel %vm1269_vm2, %v2247_v35, 0  ;;  %v2876_v31 = vpop.permute.xlu0 %2875 }
 0x28d   : > { %v1962_v55 = vpop.permute.xlu1 %1961  ;;  %3307 = vmatpush3.bf16.msra.mxu1 %v2253_v21 }
 0x28e   : > { %v1989_v44 = vsel %vm1105_vm12, %v1987_v59, %v1962_v55  ;;  %3318 = vmatprep.subr.bf16.mxu1 %v3451_v12 }
 0x28f   : > { %v1991_v57 = vsel %vm1108_vm13, %v1989_v44, %v1967_v30 }
 0x290   : > { %3309 = vmatmul.mubr.msk.bf16.vlgmr.msra.gmra.mrb[8].mxu1 %vm1265_vm3, %v3146_v23 }
 0x291   : > { %v1972_v60 = vpop.permute.xlu1 %1971  ;;  %3319 = vmatpush3.bf16.msra.mxu1 %v2684_v4  ;;  %3320 = vmatprep.mubr.msk.bf16.mxu1 %vm3455_vm9, %v3451_v12 }
 0x292   : > { %v1993_v2 = vsel %vm1111_vm14, %v1991_v57, %v1972_v60 }
 0x293   : > { %v1995_v14 = vsel %vm1114_vm15, %v1993_v2, %v1977_v61 }
 0x295   : > { %v1982_v1 = vpop.permute.xlu1 %1981 }
 0x296   : > { %v1997_v47 = vsel %vm1117_vm0, %v1995_v14, %v1982_v1 }
 0x297   : > { %v2003_v42 = vsel %vm1269_vm2, %v1997_v47, 0 }
 0x298   : > { %3301 = vmatpush3.bf16.msra.mxu0 %v2003_v42  ;;  %3321 = vmatmul.mubr.msk.bf16.vlgmr.msra.gmra.mrb[12].mxu1 %vm1265_vm3, %v3172_v11 }
 0x299   : > { %v2861_v26 = vpop.permute.xlu1 %2860  ;;  %3312 = vmatprep.subr.bf16.mxu0 %v3451_v12 }
 0x29a   : > { %v2888_v49 = vsel %vm1105_vm12, %v2886_v3, %v2861_v26 }
 0x29b   : > { %3303 = vmatmul.mubr.msk.bf16.vlgmr.msra.gmra.mrb[8].mxu0 %vm1265_vm3, %v3137_v37 }
 0x29c   : > { %3313 = vmatpush3.bf16.msra.mxu0 %v2466_v18  ;;  %3314 = vmatprep.mubr.msk.bf16.mxu0 %vm3455_vm9, %v3451_v12 }
 0x29d   : > { %v2866_v51 = vpop.permute.xlu1 %2865  ;;  %3324 = vmatprep.subr.bf16.mxu0 %v3451_v12  ;;  %v2949_v1 = vpop.permute.xlu0 %2948 }
 0x29e   : > { %v2890_v34 = vsel %vm1108_vm13, %v2888_v49, %v2866_v51 }
 0x2a1   : > { %v2871_v61 = vpop.permute.xlu1 %2870 }
 0x2a2   : > { %v2892_v19 = vsel %vm1111_vm14, %v2890_v34, %v2871_v61 }
 0x2a3   : > { %3315 = vmatmul.mubr.msk.bf16.vlgmr.msra.gmra.mrb[12].mxu0 %vm1265_vm3, %v3159_v52  ;;  %v2894_v28 = vsel %vm1114_vm15, %v2892_v19, %v2876_v31 }
 0x2a4   : > { %3326 = vmatprep.mubr.msk.bf16.mxu0 %vm3455_vm9, %v3451_v12 }
 0x2a5   : > { %v2881_v48 = vpop.permute.xlu1 %2880 }
 0x2a6   : > { %v2896_v43 = vsel %vm1117_vm0, %v2894_v28, %v2881_v48 }
 0x2a7   : > { %v2902_v17 = vsel %vm1269_vm2, %v2896_v43, 0 }
 0x2a8   : > { %3325 = vmatpush3.bf16.msra.mxu0 %v2902_v17 }
 0x2ab   : > { %3327 = vmatmul.mubr.msk.bf16.vlgmr.msra.gmra.mrb[16].mxu0 %vm1265_vm3, %v3185_v6 }
 0x2dc   : > { %v1351_v22 = vpop.f32.mrb[0].mxu1 }
 0x2dd   : > { %v3286_v58 = vpop.f32.mrb[1].mxu1 }
 0x2de   : > { %v1354_v33 = vpop.f32.mrb[2].mxu1 }
 0x2df   : > { %v3287_v9 = vpop.f32.mrb[3].mxu1 }
 0x2f8   : > { %v1789_v62 = vpop.f32.mrb[4].mxu1 }
 0x2f9   : > { %v3298_v12 = vpop.f32.mrb[5].mxu1 }
 0x2fa   : > { %v1792_v0 = vpop.f32.mrb[6].mxu1 }
 0x2fb   : > { %v3299_v8 = vpop.f32.mrb[7].mxu1 }
 0x337   : > { %v1306_v41 = vpop.f32.mrb[0].mxu0 }
 0x338   : > { %v3280_v63 = vpop.f32.mrb[1].mxu0  ;;  %v1352_v13 = vadd.f32 %v1351_v22, %v1306_v41 }
 0x339   : > { %v1309_v24 = vpop.f32.mrb[2].mxu0 }
 0x33a   : > { %v3281_v29 = vpop.f32.mrb[3].mxu0 }
 0x345   : > { %v1544_v15 = vpop.f32.mrb[4].mxu0 }
 0x346   : > { %v1550_v30 = vadd.f32 %v1544_v15, %v1352_v13  ;;  %v3292_v46 = vpop.f32.mrb[5].mxu0 }
 0x347   : > { %v1547_v16 = vpop.f32.mrb[6].mxu0 }
 0x348   : > { %v1795_v20 = vadd.f32 %v1789_v62, %v1550_v30  ;;  %v3293_v5 = vpop.f32.mrb[7].mxu0 }
 0x363   : > { %v2289_v27 = vpop.f32.mrb[8].mxu1 }
 0x364   : > { %v3310_v10 = vpop.f32.mrb[9].mxu1 }
 0x365   : > { %v2292_v50 = vpop.f32.mrb[10].mxu1 }
 0x366   : > { %v3311_v7 = vpop.f32.mrb[11].mxu1 }
 0x36b   : > { %v2720_v25 = vpop.f32.mrb[12].mxu1 }
 0x36c   : > { %v3322_v45 = vpop.f32.mrb[13].mxu1 }
 0x36d   : > { %v2723_v56 = vpop.f32.mrb[14].mxu1 }
 0x36e   : > { %v2039_v40 = vpop.f32.mrb[8].mxu0  ;;  %v3323_v39 = vpop.f32.mrb[15].mxu1 }
 0x36f   : > { %v2045_v53 = vadd.f32 %v2039_v40, %v1795_v20  ;;  %v3304_v36 = vpop.f32.mrb[9].mxu0 }
 0x370   : > { %v2042_v35 = vpop.f32.mrb[10].mxu0 }
 0x371   : > { %v2295_v32 = vadd.f32 %v2289_v27, %v2045_v53  ;;  %v3305_v21 = vpop.f32.mrb[11].mxu0 }
 0x376   : > { %v2502_v38 = vpop.f32.mrb[12].mxu0 }
 0x377   : > { %v2508_v59 = vadd.f32 %v2502_v38, %v2295_v32  ;;  %v3316_v55 = vpop.f32.mrb[13].mxu0 }
 0x378   : > { %v2505_v23 = vpop.f32.mrb[14].mxu0 }
 0x379   : > { %v2726_v44 = vadd.f32 %v2720_v25, %v2508_v59  ;;  %v3317_v4 = vpop.f32.mrb[15].mxu0 }
 0x37e   : > { %v2938_v57 = vpop.f32.mrb[16].mxu0 }
 0x37f   : > { %v2944_v60 = vadd.f32 %v2938_v57, %v2726_v44  ;;  %v3328_v2 = vpop.f32.mrb[17].mxu0 }
 0x380   : > { %v2941_v14 = vpop.f32.mrb[18].mxu0 }
 0x381   : > { %v2951_v11 = vadd.f32 %v2949_v1, %v2944_v60  ;;  %v3329_v47 = vpop.f32.mrb[19].mxu0 }
 0x383   : > { %v2952_v42 = vpack.c.bf16 %v2951_v11, %v2951_v11  ;;  %v2956_v37 = vsel %vm2955_vm1, %v2951_v11, 0.0 }
 0x384   : > { %2957 = vadd.xlane.f32.xlu1 %v2956_v37 }
 0x385   : > { %2954 = vst.msk [vmem:[%s207_s30] sm:$0xf] %vm2953_vm4, %v2952_v42 }
 0x411   : > { %v2958_v26 = vpop.xlane.xlu1 %2957 }
 0x412   : > { %v2959_v18 = vmul.f32 0.015625, %v2958_v26  ;;  %2966 = vst.msk [vmem:[%s211_s8] sm:$0xff] %vm2965_vm5, %v2958_v26 }
 0x414   : > { %v2960_v54 = vsub.f32 %v2951_v11, %v2959_v18 }
 0x416   : > { %v2961_v51 = vmul.f32 %v2960_v54, %v2960_v54 }
 0x418   : > { %v2962_v3 = vsel %vm2955_vm1, %v2961_v51, 0.0 }
 0x419   : > { %2963 = vadd.xlane.f32.xlu0 %v2962_v3 }
 0x4a6   : > { %v2964_v49 = vpop.xlane.xlu0 %2963 }
 0x4a7   : > { %2968 = vst.msk [vmem:[%s211_s8] sm:$0xff] %vm2967_vm6, %v2964_v49 }
 0x4a8 PF: > { %s15_s15 = sadd.s32 1, %s3440_s15  }
 0x4a9   : > { %p12_p5 = scmp.ge.s32.totalorder %s15_s15, 4  }
 0x4ab   :  { %14 = sbr.rel (!%p12_p5) target bundleno = 1 (0x1), region = 82 }

// kernel: down_block.4
= control target key start
LH: loop header
LB: loop body
LE: loop exit
PB: predicated region body
PF: predicated region fallthrough
CT: control target
= control target key end

     0   :  { %s3551_s21 = smov 0   ;;  %s4928_s0 = inlined_call_operand.vmem [shape: bf16[2,8,64], index: 0, kind: input, shape index: {}]   ;;  %s4929_s1 = inlined_call_operand.vmem [shape: f32[8,1], index: 1, kind: input, shape index: {}]   ;;  %s4930_s2 = inlined_call_operand.vmem [shape: f32[8,1], index: 2, kind: input, shape index: {}]   ;;  %s4931_s3 = inlined_call_operand.vmem [shape: bf16[9,8,8], index: 3, kind: input, shape index: {}]   ;;  %s4932_s4 = inlined_call_operand.vmem [shape: f32[8,1], index: 4, kind: input, shape index: {}]   ;;  %s4933_s5 = inlined_call_operand.vmem [shape: bf16[2,8,64], index: 5, kind: output, shape index: {0}]   ;;  %s4934_s6 = inlined_call_operand.vmem [shape: f32[2,8,2], index: 6, kind: output, shape index: {1}]  }
   0x1 LB: > { %s3253_s22 = sadd.s32 4294967295, %s3492_s21   ;;  %p3257_p0 = scmp.ge.s32.totalorder %s3492_s21, 1  ;;  %s3492_s21 = sphi %s3551_s21, %s17_s21  }
   0x2   : > { %p214_p1 = scmp.lt.s32.totalorder %s3492_s21, 3 }
   0x4   : > { %p215_p2 = pnand %p3257_p0, %p214_p1 }
   0x6   : > { %218 = sbr.rel (%p215_p2) target bundleno = 1306 (0x51a), region = 40 }
   0xd   : > { %v261_v0 = vld [vmem:[%s4929_s1] sm:$0xff]  ;;  %v4935_v1 = vmov 0   ;;  %p246_p3 = scmp.lt.s32.totalorder %s3253_s22, 1  ;;  %s3495_s7 = smov 104   ;;  %vm434_vm0 = vcmask 73728   ;;  %vm487_vm3 = vcmask 3072   ;;  %v303_v16 = vlaneseq }
   0xe   : > { %3485 = vset.pattern.permute.xlu0 %v4935_v1  ;;  %v268_v2 = vld [vmem:[%s4930_s2] sm:$0xff]  ;;  %s3496_s8 = smov 120   ;;  %s3497_s9 = smov 88   ;;  %vm435_vm1 = vsmask.f32 256  ;;  %vm505_vm4 = vcmask 76872  }
   0xf   : > { %264 = vperm.xlu0 %3485, %v261_v0   ;;  %s4985_s22 = smov (!%p246_p3, %s3253_s22), 1  ;;  %s3498_s10 = smov 112   ;;  %v440_v10 = vld [vmem:[#allocation2 + $0x8] sm:$0x1]  ;;  %vm3576_vm2 = vmand %vm434_vm0, %vm435_vm1  ;;  %v3502_v14 = vmov 1983009808  }
  0x10   : > { %s3258_s27 = sshll.u32 %s4985_s22, 2  ;;  %s3499_s11 = smov 72   ;;  %v441_v12 = vsel %vm3576_vm2, 0, %v440_v10  ;;  %v301_v15 = vunpack.c.l.s4 %v3502_v14  ;;  %v304_v19 = vshrl.u32 %v303_v16, 7  ;;  %v3503_v22 = vmov 1934713408  }
  0x11   : > { %s249_s30 = scalar_lea.vmem %s4928_s0, %s3258_s27  ;;  %s3500_s12 = smov 96   ;;  %442 = vst [vmem:[#allocation2 + $0x8] sm:$0x1] %v441_v12  ;;  %v365_v23 = vunpack.c.l.s4 %v3503_v22  ;;  %v437_v38 = vld [vmem:[#allocation2] sm:$0x1]  ;;  %vm489_vm7 = vcmask 0  }
  0x12   : > { %v259_v3 = vld [vmem:[%s249_s30] sm:$0xf]  ;;  %s3501_s13 = smov 80   ;;  %491 = vst.msk [vmem:[#allocation2 + $0x8] sm:$0xf] %vm487_vm3, %v4935_v1  ;;  %v302_v18 = vunpack.c.0.s8 %v301_v15  ;;  %v438_v41 = vsel %vm3576_vm2, 0, %v437_v38  ;;  %s253_s28 = scalar_lea.vmem %s4933_s5, %s3258_s27 }
  0x13   : > { %271 = vperm.xlu0 %3485, %v268_v2   ;;  %v260_v4 = vunpack.c.l.bf16 %v259_v3  ;;  %509 = vst.msk [vmem:[#allocation2 + $0x8] sm:$0xf] %vm505_vm4, %v4935_v1  ;;  %v366_v31 = vunpack.c.0.s8 %v365_v23  ;;  %439 = vst [vmem:[#allocation2] sm:$0x1] %v438_v41  ;;  %v446_v52 = vld [vmem:[#allocation2 + $0x18] sm:$0x1] }
  0x14   : > { %v3586_v25 = vsub.s32 %v302_v18, %v304_v19  ;;  %488 = vst.msk [vmem:[#allocation2] sm:$0xf] %vm487_vm3, %v4935_v1  ;;  %v443_v53 = vld [vmem:[#allocation2 + $0x10] sm:$0x1]  ;;  %v447_v60 = vsel %vm3576_vm2, 0, %v446_v52  ;;  %s3504_s14 = smov 1  }
  0x15   : > { %v3594_v43 = vsub.s32 %v366_v31, %v304_v19  ;;  %506 = vst.msk [vmem:[#allocation2] sm:$0xf] %vm505_vm4, %v4935_v1  ;;  %v444_v61 = vsel %vm3576_vm2, 0, %v443_v53  ;;  %448 = vst [vmem:[#allocation2 + $0x18] sm:$0x1] %v447_v60  ;;  %vm507_vm8 = vcmask 73800  }
  0x16   : > { %445 = vst [vmem:[#allocation2 + $0x10] sm:$0x1] %v444_v61  ;;  %495 = vst.msk [vmem:[#allocation2 + $0x18] sm:$0xf] %vm487_vm3, %v4935_v1  ;;  %vm461_vm5 = vsmask.f32 7938 }
  0x17   : > { %493 = vst.msk [vmem:[#allocation2 + $0x10] sm:$0xf] %vm487_vm3, %v4935_v1  ;;  %v452_v38 = vld [vmem:[#allocation2 + $0x28] sm:$0x1]  ;;  %vm3650_vm6 = vmand %vm434_vm0, %vm461_vm5  ;;  %v466_v53 = vld [vmem:[#allocation2 + $0xc] sm:$0x1] }
  0x18   : > { %513 = vst.msk [vmem:[#allocation2 + $0x18] sm:$0xf] %vm505_vm4, %v4935_v1  ;;  %511 = vst.msk [vmem:[#allocation2 + $0x10] sm:$0xf] %vm505_vm4, %v4935_v1  ;;  %vm667_vm9 = vcmask 68616   ;;  %s3505_s15 = smov 127  }
  0x19   : > { %vm3759_vm10 = vmand %vm667_vm9, %vm461_vm5  ;;  %vm672_vm11 = vcmask 65544   ;;  %vm2377_vm13 = vcmask 1042432   ;;  %vm2378_vm14 = vcmask 1046532   ;;  %s3506_s16 = smov 126   ;;  %vm1369_vm0 = vsmask.f32 3328 }
  0x1a   : > { %vm3790_vm12 = vmand %vm672_vm11, %vm435_vm1  ;;  %vm1370_vm1 = vsmask.f32 7440  ;;  %s3507_s17 = smov 32   ;;  %s3508_s18 = smov 8   ;;  %vm851_vm5 = vcmask 130048   ;;  %vm863_vm9 = vcmask 392192  }
  0x1b   : > { %vm3901_vm15 = vmor %vm2377_vm13, %vm2378_vm14  ;;  %s3509_s19 = smov 40   ;;  %s3510_s20 = smov 16   ;;  %vm1042_vm11 = vcmask 1043456   ;;  %vm3153_vm13 = vcmask 519168   ;;  %vm3165_vm14 = vcmask 7168  }
  0x1c   : > { %s3511_s23 = smov 48   ;;  %s3513_s24 = smov 24  }
  0x1d   : > { %s3514_s25 = smov 56   ;;  %s3260_s29 = sshll.u32 %s4985_s22, 3 }
  0x8e   : > { %v265_v5 = vpop.permute.xlu0 %264 }
  0x8f   : > { %v267_v6 = vmul.f32 %v265_v5, %v260_v4 }
  0x92   : > { %v272_v7 = vpop.permute.xlu0 %271 }
  0x93   : > { %v274_v8 = vadd.f32 %v272_v7, %v267_v6 }
  0x95   : > { %v275_v9 = vmax.f32 %v274_v8, 0.0 }
  0x97   : > { %283 = vrot.lane.b32.xlu0 %v275_v9, %s3495_s7  ;;  %277 = vrot.lane.b32.xlu1 %v275_v9, %s3496_s8  ;;  %s257_s8 = scalar_lea.vmem %s4934_s6, %s3260_s29 }
  0x9b   : > { %289 = vrot.lane.b32.xlu0 %v275_v9, %s3497_s9  ;;  %280 = vrot.lane.b32.xlu1 %v275_v9, %s3498_s10 }
  0x9f   : > { %295 = vrot.lane.b32.xlu0 %v275_v9, %s3499_s11  ;;  %286 = vrot.lane.b32.xlu1 %v275_v9, %s3500_s12 }
  0xa3   : > { %292 = vrot.lane.b32.xlu1 %v275_v9, %s3501_s13 }
 0x109   : > { %v284_v13 = vpop.permute.xlu0 %283  ;;  %v278_v17 = vpop.permute.xlu1 %277 }
 0x10a   : > { %v314_v26 = vcombine.low %v278_v17, %v284_v13  ;;  %v315_v30 = vcombine.high %v278_v17, %v284_v13 }
 0x10c   : > { %v322_v35 = vrot.slane %v314_v26, %v3586_v25  ;;  %v329_v42 = vrot.slane %v315_v30, %v3586_v25 }
 0x10d   : > { %v290_v20 = vpop.permute.xlu0 %289  ;;  %v281_v21 = vpop.permute.xlu1 %280 }
 0x10e   : > { %v298_v24 = vcombine.low %v275_v9, %v281_v21  ;;  %v299_v27 = vcombine.high %v275_v9, %v281_v21 }
 0x110   : > { %v306_v32 = vrot.slane %v298_v24, %v3586_v25  ;;  %v313_v36 = vrot.slane %v299_v27, %v3586_v25 }
 0x111   : > { %v296_v28 = vpop.permute.xlu0 %295  ;;  %v287_v29 = vpop.permute.xlu1 %286 }
 0x112   : > { %v346_v33 = vcombine.low %v290_v20, %v296_v28  ;;  %v347_v34 = vcombine.high %v290_v20, %v296_v28  ;;  %v362_v44 = vcombine.low %v306_v32, %v322_v35  ;;  %v363_v45 = vcombine.high %v306_v32, %v322_v35 }
 0x113   : > { %v378_v50 = vcombine.low %v313_v36, %v329_v42  ;;  %v379_v51 = vcombine.high %v313_v36, %v329_v42 }
 0x114   : > { %v354_v46 = vrot.slane %v346_v33, %v3586_v25  ;;  %v361_v47 = vrot.slane %v347_v34, %v3586_v25  ;;  %v370_v58 = vrot.slane %v362_v44, %v3594_v43  ;;  %v377_v59 = vrot.slane %v363_v45, %v3594_v43  ;;  %v449_v44 = vld [vmem:[#allocation2 + $0x20] sm:$0x1] }
 0x115   : > { %v293_v37 = vpop.permute.xlu1 %292  ;;  %v386_v3 = vrot.slane %v378_v50, %v3594_v43  ;;  %v393_v4 = vrot.slane %v379_v51, %v3594_v43 }
 0x116   : > { %v330_v39 = vcombine.low %v287_v29, %v293_v37  ;;  %v331_v40 = vcombine.high %v287_v29, %v293_v37 }
 0x118   : > { %v338_v48 = vrot.slane %v330_v39, %v3586_v25  ;;  %v345_v49 = vrot.slane %v331_v40, %v3586_v25 }
 0x11a   : > { %v394_v54 = vcombine.low %v338_v48, %v354_v46  ;;  %v395_v55 = vcombine.high %v338_v48, %v354_v46  ;;  %v410_v56 = vcombine.low %v345_v49, %v361_v47  ;;  %v411_v57 = vcombine.high %v345_v49, %v361_v47  ;;  %v458_v47 = vld [vmem:[#allocation2 + $0x38] sm:$0x1]  ;;  %v455_v48 = vld [vmem:[#allocation2 + $0x30] sm:$0x1] }
 0x11c   : > { %v402_v62 = vrot.slane %v394_v54, %v3594_v43  ;;  %v409_v63 = vrot.slane %v395_v55, %v3594_v43  ;;  %v418_v0 = vrot.slane %v410_v56, %v3594_v43  ;;  %v425_v2 = vrot.slane %v411_v57, %v3594_v43  ;;  %v463_v54 = vld [vmem:[#allocation2 + $0x4] sm:$0x1] }
 0x11d   : > { %v453_v56 = vsel %vm3576_vm2, 0, %v452_v38  ;;  %v450_v57 = vsel %vm3576_vm2, 0, %v449_v44  ;;  %v464_v11 = vsel %vm3650_vm6, 0, %v463_v54 }
 0x11e   : > { %v427_v5 = vcombine.high %v370_v58, %v402_v62  ;;  %v426_v6 = vcombine.low %v370_v58, %v402_v62  ;;  %v429_v7 = vcombine.high %v377_v59, %v409_v63  ;;  %v428_v8 = vcombine.low %v377_v59, %v409_v63  ;;  %v472_v58 = vld [vmem:[#allocation2 + $0x1c] sm:$0x1]  ;;  %v469_v59 = vld [vmem:[#allocation2 + $0x14] sm:$0x1]  ;;  %454 = vst [vmem:[#allocation2 + $0x28] sm:$0x1] %v453_v56 }
 0x11f   : > { %v431_v9 = vcombine.high %v386_v3, %v418_v0  ;;  %v430_v10 = vcombine.low %v386_v3, %v418_v0  ;;  %v433_v12 = vcombine.high %v393_v4, %v425_v2  ;;  %v432_v19 = vcombine.low %v393_v4, %v425_v2  ;;  %451 = vst [vmem:[#allocation2 + $0x20] sm:$0x1] %v450_v57  ;;  %v478_v3 = vld [vmem:[#allocation2 + $0x2c] sm:$0x1] }
 0x120   : > { %v3376_v13 = vpack.c.bf16 %v427_v5, %v427_v5  ;;  %v3375_v14 = vpack.c.bf16 %v426_v6, %v426_v6  ;;  %v3378_v15 = vpack.c.bf16 %v429_v7, %v429_v7  ;;  %v3377_v16 = vpack.c.bf16 %v428_v8, %v428_v8  ;;  %499 = vst.msk [vmem:[#allocation2 + $0x28] sm:$0xf] %vm487_vm3, %v4935_v1  ;;  %v475_v7 = vld [vmem:[#allocation2 + $0x24] sm:$0x1] }
 0x121   : > { %v3380_v17 = vpack.c.bf16 %v431_v9, %v431_v9  ;;  %v3379_v18 = vpack.c.bf16 %v430_v10, %v430_v10  ;;  %v3624_v26 = vpack.c.bf16 %v433_v12, %v433_v12  ;;  %v3630_v32 = vpack.c.bf16 %v432_v19, %v432_v19  ;;  %497 = vst.msk [vmem:[#allocation2 + $0x20] sm:$0xf] %vm487_vm3, %v4935_v1  ;;  %v484_v12 = vld [vmem:[#allocation2 + $0x3c] sm:$0x1] }
 0x122   : > { %v564_v20 = vshrl.u32 %v3376_v13, 16  ;;  %v556_v21 = vshrl.u32 %v3375_v14, 16  ;;  %v567_v22 = vshll.u32 %v3376_v13, 16  ;;  %v580_v23 = vshrl.u32 %v3378_v15, 16  ;;  %517 = vst.msk [vmem:[#allocation2 + $0x28] sm:$0xf] %vm505_vm4, %v4935_v1 }
 0x123   : > { %v572_v24 = vshrl.u32 %v3377_v16, 16  ;;  %v559_v29 = vshll.u32 %v3375_v14, 16  ;;  %v596_v30 = vshrl.u32 %v3380_v17, 16  ;;  %v588_v31 = vshrl.u32 %v3379_v18, 16  ;;  %515 = vst.msk [vmem:[#allocation2 + $0x20] sm:$0xf] %vm505_vm4, %v4935_v1 }
 0x124   : > { %v3626_v27 = vrot.slane %v564_v20, 7  ;;  %v3628_v28 = vrot.slane %v556_v21, 7  ;;  %v3634_v35 = vrot.slane %v580_v23, 7  ;;  %v583_v39 = vshll.u32 %v3378_v15, 16  ;;  %465 = vst [vmem:[#allocation2 + $0x4] sm:$0x1] %v464_v11 }
 0x125   : > { %v3636_v36 = vrot.slane %v572_v24, 7  ;;  %v3638_v37 = vrot.slane %v596_v30, 7  ;;  %v575_v40 = vshll.u32 %v3377_v16, 16  ;;  %v3642_v41 = vrot.slane %v588_v31, 7  ;;  %490 = vst.msk [vmem:[#allocation2 + $0x4] sm:$0x1] %vm489_vm7, %v4935_v1 }
 0x126   : > { %v569_v33 = vor.u32 %v567_v22, %v3626_v27  ;;  %v561_v34 = vor.u32 %v559_v29, %v3628_v28  ;;  %v612_v42 = vshrl.u32 %v3624_v26, 16  ;;  %v599_v45 = vshll.u32 %v3380_v17, 16  ;;  %508 = vst.msk [vmem:[#allocation2 + $0x4] sm:$0x1] %vm507_vm8, %v4935_v1  ;;  %v481_v13 = vld [vmem:[#allocation2 + $0x34] sm:$0x1] }
 0x127   : > { %v604_v46 = vshrl.u32 %v3630_v32, 16  ;;  %v585_v49 = vor.u32 %v583_v39, %v3634_v35  ;;  %v577_v50 = vor.u32 %v575_v40, %v3636_v36  ;;  %v591_v51 = vshll.u32 %v3379_v18, 16  ;;  %v669_v29 = vld [vmem:[#allocation2] sm:$0xf] }
 0x128   : > { %623 = vrot.lane.b32.xlu0 %v569_v33, %s3504_s14  ;;  %619 = vrot.lane.b32.xlu1 %v561_v34, %s3504_s14  ;;  %v601_v55 = vor.u32 %v599_v45, %v3638_v37  ;;  %v3662_v61 = vrot.slane %v612_v42, 7  ;;  %v459_v62 = vsel %vm3576_vm2, 0, %v458_v47  ;;  %v456_v63 = vsel %vm3576_vm2, 0, %v455_v48  ;;  %v689_v34 = vld [vmem:[#allocation2 + $0x18] sm:$0xf]  ;;  %vm3990_vm2 = vmor %vm1369_vm0, %vm1370_vm1 }
 0x129   : > { %v593_v60 = vor.u32 %v591_v51, %v3642_v41  ;;  %v3668_v0 = vrot.slane %v604_v46, 7  ;;  %460 = vst [vmem:[#allocation2 + $0x38] sm:$0x1] %v459_v62  ;;  %457 = vst [vmem:[#allocation2 + $0x30] sm:$0x1] %v456_v63  ;;  %v467_v2 = vsel %vm3650_vm6, 0, %v466_v53 }
 0x12a   : > { %503 = vst.msk [vmem:[#allocation2 + $0x38] sm:$0xf] %vm487_vm3, %v4935_v1  ;;  %501 = vst.msk [vmem:[#allocation2 + $0x30] sm:$0xf] %vm487_vm3, %v4935_v1  ;;  %v473_v4 = vsel %vm3650_vm6, 0, %v472_v58  ;;  %v470_v5 = vsel %vm3650_vm6, 0, %v469_v59 }
 0x12b   : > { %468 = vst [vmem:[#allocation2 + $0xc] sm:$0x1] %v467_v2  ;;  %v479_v6 = vsel %vm3650_vm6, 0, %v478_v3  ;;  %521 = vst.msk [vmem:[#allocation2 + $0x38] sm:$0xf] %vm505_vm4, %v4935_v1  ;;  %v476_v8 = vsel %vm3650_vm6, 0, %v475_v7 }
 0x12c   : > { %631 = vrot.lane.b32.xlu0 %v585_v49, %s3504_s14  ;;  %627 = vrot.lane.b32.xlu1 %v577_v50, %s3504_s14  ;;  %519 = vst.msk [vmem:[#allocation2 + $0x30] sm:$0xf] %vm505_vm4, %v4935_v1  ;;  %474 = vst [vmem:[#allocation2 + $0x1c] sm:$0x1] %v473_v4  ;;  %v615_v9 = vshll.u32 %v3624_v26, 16  ;;  %v607_v10 = vshll.u32 %v3630_v32, 16 }
 0x12d   : > { %492 = vst.msk [vmem:[#allocation2 + $0xc] sm:$0x1] %vm489_vm7, %v4935_v1  ;;  %471 = vst [vmem:[#allocation2 + $0x14] sm:$0x1] %v470_v5  ;;  %v485_v16 = vsel %vm3650_vm6, 0, %v484_v12  ;;  %v482_v17 = vsel %vm3650_vm6, 0, %v481_v13 }
 0x12e   : > { %480 = vst [vmem:[#allocation2 + $0x2c] sm:$0x1] %v479_v6  ;;  %510 = vst.msk [vmem:[#allocation2 + $0xc] sm:$0x1] %vm507_vm8, %v4935_v1  ;;  %v617_v14 = vor.u32 %v615_v9, %v3662_v61  ;;  %v609_v15 = vor.u32 %v607_v10, %v3668_v0  ;;  %v570_v18 = vrot.slane %v3626_v27, 4  ;;  %v562_v19 = vrot.slane %v3628_v28, 4 }
 0x12f   : > { %496 = vst.msk [vmem:[#allocation2 + $0x1c] sm:$0x1] %vm489_vm7, %v4935_v1  ;;  %494 = vst.msk [vmem:[#allocation2 + $0x14] sm:$0x1] %vm489_vm7, %v4935_v1  ;;  %v586_v20 = vrot.slane %v3634_v35, 4  ;;  %v578_v21 = vrot.slane %v3636_v36, 4 }
 0x130   : > { %639 = vrot.lane.b32.xlu0 %v601_v55, %s3504_s14  ;;  %635 = vrot.lane.b32.xlu1 %v593_v60, %s3504_s14  ;;  %500 = vst.msk [vmem:[#allocation2 + $0x2c] sm:$0x1] %vm489_vm7, %v4935_v1  ;;  %477 = vst [vmem:[#allocation2 + $0x24] sm:$0x1] %v476_v8  ;;  %v602_v22 = vrot.slane %v3638_v37, 4  ;;  %v594_v23 = vrot.slane %v3642_v41, 4 }
 0x131   : > { %514 = vst.msk [vmem:[#allocation2 + $0x1c] sm:$0x1] %vm507_vm8, %v4935_v1  ;;  %512 = vst.msk [vmem:[#allocation2 + $0x14] sm:$0x1] %vm507_vm8, %v4935_v1  ;;  %v618_v24 = vrot.slane %v3662_v61, 4  ;;  %v610_v26 = vrot.slane %v3668_v0, 4 }
 0x132   : > { %518 = vst.msk [vmem:[#allocation2 + $0x2c] sm:$0x1] %vm507_vm8, %v4935_v1  ;;  %486 = vst [vmem:[#allocation2 + $0x3c] sm:$0x1] %v485_v16  ;;  %v677_v28 = vld [vmem:[#allocation2 + $0x8] sm:$0xf] }
 0x133   : > { %498 = vst.msk [vmem:[#allocation2 + $0x24] sm:$0x1] %vm489_vm7, %v4935_v1  ;;  %483 = vst [vmem:[#allocation2 + $0x34] sm:$0x1] %v482_v17  ;;  %v683_v35 = vld [vmem:[#allocation2 + $0x10] sm:$0xf] }
 0x134   : > { %516 = vst.msk [vmem:[#allocation2 + $0x24] sm:$0x1] %vm507_vm8, %v4935_v1  ;;  %647 = vrot.lane.b32.xlu0 %v617_v14, %s3504_s14  ;;  %643 = vrot.lane.b32.xlu1 %v609_v15, %s3504_s14  ;;  %v701_v40 = vld [vmem:[#allocation2 + $0x28] sm:$0xf]  ;;  %v695_v41 = vld [vmem:[#allocation2 + $0x20] sm:$0xf] }
 0x135   : > { %504 = vst.msk [vmem:[#allocation2 + $0x3c] sm:$0x1] %vm489_vm7, %v4935_v1  ;;  %502 = vst.msk [vmem:[#allocation2 + $0x34] sm:$0x1] %vm489_vm7, %v4935_v1  ;;  %v713_v49 = vld [vmem:[#allocation2 + $0x38] sm:$0xf] }
 0x136   : > { %522 = vst.msk [vmem:[#allocation2 + $0x3c] sm:$0x1] %vm507_vm8, %v4935_v1  ;;  %520 = vst.msk [vmem:[#allocation2 + $0x34] sm:$0x1] %vm507_vm8, %v4935_v1  ;;  %v707_v50 = vld [vmem:[#allocation2 + $0x30] sm:$0xf] }
 0x137   : > { %v680_v58 = vld [vmem:[#allocation2 + $0xc] sm:$0x1]  ;;  %v674_v59 = vld [vmem:[#allocation2 + $0x4] sm:$0x1]  ;;  %vm3515_vm3 = vmmov 0   ;;  %vm847_vm4 = vcmask 64512  }
 0x138   : > { %625 = vrot.lane.b32.xlu0 %v570_v18, %s3504_s14  ;;  %621 = vrot.lane.b32.xlu1 %v562_v19, %s3504_s14  ;;  %v692_v4 = vld [vmem:[#allocation2 + $0x1c] sm:$0x1]  ;;  %v686_v5 = vld [vmem:[#allocation2 + $0x14] sm:$0x1]  ;;  %vm854_vm6 = vcmask 195584   ;;  %vm857_vm7 = vcmask 261120  }
 0x139   : > { %v704_v9 = vld [vmem:[#allocation2 + $0x2c] sm:$0x1]  ;;  %vm860_vm8 = vcmask 326656  }
 0x13b   : > { %v698_v18 = vld [vmem:[#allocation2 + $0x24] sm:$0x1] }
 0x13c   : > { %633 = vrot.lane.b32.xlu0 %v586_v20, %s3504_s14  ;;  %629 = vrot.lane.b32.xlu1 %v578_v21, %s3504_s14 }
 0x140   : > { %641 = vrot.lane.b32.xlu0 %v602_v22, %s3504_s14  ;;  %637 = vrot.lane.b32.xlu1 %v594_v23, %s3504_s14 }
 0x144   : > { %649 = vrot.lane.b32.xlu0 %v618_v24, %s3504_s14  ;;  %645 = vrot.lane.b32.xlu1 %v610_v26, %s3504_s14 }
 0x19a   : > { %v624_v30 = vpop.permute.xlu0 %623  ;;  %v620_v31 = vpop.permute.xlu1 %619 }
 0x19b   : > { %v678_v32 = vsel %vm3759_vm10, %v624_v30, %v677_v28  ;;  %v670_v33 = vsel %vm3759_vm10, %v620_v31, %v669_v29 }
 0x19c   : > { %679 = vst [vmem:[#allocation2 + $0x8] sm:$0xf] %v678_v32  ;;  %671 = vst [vmem:[#allocation2] sm:$0xf] %v670_v33 }
 0x19e   : > { %v632_v36 = vpop.permute.xlu0 %631  ;;  %v628_v37 = vpop.permute.xlu1 %627 }
 0x19f   : > { %v690_v38 = vsel %vm3759_vm10, %v632_v36, %v689_v34  ;;  %v684_v39 = vsel %vm3759_vm10, %v628_v37, %v683_v35  ;;  %v716_v34 = vld [vmem:[#allocation2 + $0x3c] sm:$0x1] }
 0x1a0   : > { %691 = vst [vmem:[#allocation2 + $0x18] sm:$0xf] %v690_v38  ;;  %685 = vst [vmem:[#allocation2 + $0x10] sm:$0xf] %v684_v39  ;;  %v710_v39 = vld [vmem:[#allocation2 + $0x34] sm:$0x1] }
 0x1a2   : > { %v640_v42 = vpop.permute.xlu0 %639  ;;  %v636_v44 = vpop.permute.xlu1 %635 }
 0x1a3   : > { %v702_v45 = vsel %vm3759_vm10, %v640_v42, %v701_v40  ;;  %v696_v46 = vsel %vm3759_vm10, %v636_v44, %v695_v41  ;;  %v3775_v47 = vld [vmem:[#allocation2 + $0x8] sm:$0xf]  ;;  %v3777_v48 = vld [vmem:[#allocation2] sm:$0xf] }
 0x1a4   : > { %703 = vst [vmem:[#allocation2 + $0x28] sm:$0xf] %v702_v45  ;;  %697 = vst [vmem:[#allocation2 + $0x20] sm:$0xf] %v696_v46  ;;  %880 = vrot.lane.b32.xlu0 %v3775_v47, %s3505_s15  ;;  %878 = vrot.lane.b32.xlu1 %v3777_v48, %s3505_s15  ;;  %v3802_v6 = vld [vmem:[#allocation2 + $0x8] sm:$0xe] }
 0x1a5   : > { %v3804_v10 = vld [vmem:[#allocation2] sm:$0xe]  ;;  %v3806_v12 = vld [vmem:[#allocation2 + $0x8] sm:$0xe]  ;;  %v3340_v23 = vrot.slane %v3802_v6, 9 }
 0x1a6   : > { %v648_v51 = vpop.permute.xlu0 %647  ;;  %v644_v52 = vpop.permute.xlu1 %643  ;;  %v3808_v13 = vld [vmem:[#allocation2] sm:$0xe]  ;;  %v3339_v24 = vrot.slane %v3804_v10, 9  ;;  %v3357_v26 = vrot.slane %v3806_v12, 9  ;;  %v3836_v35 = vld [vmem:[#allocation2 + $0x8] sm:$0xf] }
 0x1a7   : > { %v714_v53 = vsel %vm3759_vm10, %v648_v51, %v713_v49  ;;  %v708_v54 = vsel %vm3759_vm10, %v644_v52, %v707_v50  ;;  %v722_v55 = vld [vmem:[#allocation2 + $0x18] sm:$0xf]  ;;  %v721_v56 = vld [vmem:[#allocation2 + $0x10] sm:$0xf]  ;;  %v3356_v27 = vrot.slane %v3808_v13, 9  ;;  %vm866_vm10 = vcmask 457728  }
 0x1a8   : > { %715 = vst [vmem:[#allocation2 + $0x38] sm:$0xf] %v714_v53  ;;  %709 = vst [vmem:[#allocation2 + $0x30] sm:$0xf] %v708_v54  ;;  %884 = vrot.lane.b32.xlu0 %v722_v55, %s3505_s15  ;;  %882 = vrot.lane.b32.xlu1 %v721_v56, %s3505_s15  ;;  %v3816_v21 = vld [vmem:[#allocation2 + $0x18] sm:$0xe] }
 0x1a9   : > { %v3818_v22 = vld [vmem:[#allocation2 + $0x10] sm:$0xe]  ;;  %v1131_v38 = vld [vmem:[#allocation2 + $0x8] sm:$0xf]  ;;  %v3342_v40 = vrot.slane %v3816_v21, 9  ;;  %v1706_v53 = vshrl.u32 %v3836_v35, 16 }
 0x1aa   : > { %v626_v60 = vpop.permute.xlu0 %625  ;;  %v622_v61 = vpop.permute.xlu1 %621  ;;  %v3341_v41 = vrot.slane %v3818_v22, 9  ;;  %v3855_v49 = vld [vmem:[#allocation2 + $0x10] sm:$0xe]  ;;  %v1133_v50 = vld [vmem:[#allocation2 + $0x18] sm:$0xf]  ;;  %v1709_v54 = vshll.u32 %v3836_v35, 16 }
 0x1ab   : > { %v681_v62 = vsel %vm3790_vm12, %v626_v60, %v680_v58  ;;  %v675_v63 = vsel %vm3790_vm12, %v622_v61, %v674_v59  ;;  %v724_v0 = vld [vmem:[#allocation2 + $0x28] sm:$0xf]  ;;  %v723_v2 = vld [vmem:[#allocation2 + $0x20] sm:$0xf]  ;;  %v1132_v58 = vld [vmem:[#allocation2 + $0x10] sm:$0xf] }
 0x1ac   : > { %682 = vst [vmem:[#allocation2 + $0xc] sm:$0x1] %v681_v62  ;;  %676 = vst [vmem:[#allocation2 + $0x4] sm:$0x1] %v675_v63  ;;  %888 = vrot.lane.b32.xlu0 %v724_v0, %s3505_s15  ;;  %v761_v3 = vcombine.low %v3775_v47, %v724_v0  ;;  %886 = vrot.lane.b32.xlu1 %v723_v2, %s3505_s15  ;;  %v727_v11 = vcombine.low %v3777_v48, %v723_v2  ;;  %v1130_v47 = vld [vmem:[#allocation2] sm:$0xf] }
 0x1ad   : > { %v3853_v48 = vld [vmem:[#allocation2 + $0x18] sm:$0xe]  ;;  %v3858_v51 = vld [vmem:[#allocation2 + $0x28] sm:$0xe]  ;;  %v3860_v52 = vld [vmem:[#allocation2 + $0x20] sm:$0xe] }
 0x1ae   : > { %v634_v7 = vpop.permute.xlu0 %633  ;;  %v630_v8 = vpop.permute.xlu1 %629  ;;  %v3825_v28 = vrot.slane %v761_v3, %v3586_v25  ;;  %v3828_v29 = vrot.slane %v727_v11, %v3586_v25  ;;  %v3866_v60 = vld [vmem:[#allocation2 + $0x28] sm:$0xe]  ;;  %v3868_v61 = vld [vmem:[#allocation2 + $0x20] sm:$0xe] }
 0x1af   : > { %v693_v14 = vsel %vm3790_vm12, %v634_v7, %v692_v4  ;;  %v687_v15 = vsel %vm3790_vm12, %v630_v8, %v686_v5  ;;  %v726_v16 = vld [vmem:[#allocation2 + $0x38] sm:$0xf]  ;;  %v725_v17 = vld [vmem:[#allocation2 + $0x30] sm:$0xf]  ;;  %v3344_v7 = vrot.slane %v3858_v51, 9  ;;  %v3343_v8 = vrot.slane %v3860_v52, 9 }
 0x1b0   : > { %694 = vst [vmem:[#allocation2 + $0x1c] sm:$0x1] %v693_v14  ;;  %688 = vst [vmem:[#allocation2 + $0x14] sm:$0x1] %v687_v15  ;;  %892 = vrot.lane.b32.xlu0 %v726_v16, %s3505_s15  ;;  %v769_v19 = vcombine.low %v722_v55, %v726_v16  ;;  %890 = vrot.lane.b32.xlu1 %v725_v17, %s3505_s15  ;;  %v735_v20 = vcombine.low %v721_v56, %v725_v17  ;;  %v3864_v59 = vld [vmem:[#allocation2 + $0x38] sm:$0xe] }
 0x1b1   : > { %v3880_v11 = vld [vmem:[#allocation2 + $0x30] sm:$0xe]  ;;  %v3882_v4 = vld [vmem:[#allocation2 + $0x38] sm:$0xe]  ;;  %v3358_v14 = vrot.slane %v3855_v49, 9  ;;  %v3361_v16 = vrot.slane %v3866_v60, 9 }
 0x1b2   : > { %v3831_v30 = vrot.slane %v769_v19, %v3586_v25  ;;  %v3834_v31 = vrot.slane %v735_v20, %v3586_v25  ;;  %v642_v32 = vpop.permute.xlu0 %641  ;;  %v638_v33 = vpop.permute.xlu1 %637  ;;  %v1135_v57 = vld [vmem:[#allocation2 + $0x28] sm:$0xf]  ;;  %v3360_v17 = vrot.slane %v3868_v61, 9  ;;  %v1134_v19 = vld [vmem:[#allocation2 + $0x20] sm:$0xf] }
 0x1b3   : > { %v705_v36 = vsel %vm3790_vm12, %v642_v32, %v704_v9  ;;  %v699_v37 = vsel %vm3790_vm12, %v638_v33, %v698_v18  ;;  %v2606_v3 = vld [vmem:[#allocation2 + $0xc] sm:$0x1]  ;;  %v2604_v5 = vld [vmem:[#allocation2 + $0x4] sm:$0x1]  ;;  %v3359_v9 = vrot.slane %v3853_v48, 9 }
 0x1b4   : > { %v777_v42 = vcombine.low %v3825_v28, %v3831_v30  ;;  %v778_v44 = vcombine.high %v3825_v28, %v3831_v30  ;;  %v743_v45 = vcombine.low %v3828_v29, %v3834_v31  ;;  %v744_v46 = vcombine.high %v3828_v29, %v3834_v31  ;;  %706 = vst [vmem:[#allocation2 + $0x2c] sm:$0x1] %v705_v36  ;;  %v2877_v15 = vld [vmem:[#allocation2 + $0xc] sm:$0x1]  ;;  %v3892_v18 = vld [vmem:[#allocation2 + $0x30] sm:$0xe] }
 0x1b5   : > { %700 = vst [vmem:[#allocation2 + $0x24] sm:$0x1] %v699_v37  ;;  %1148 = vrot.lane.b32.xlu0 %v1131_v38, %s3506_s16  ;;  %1146 = vrot.lane.b32.xlu1 %v1130_v47, %s3506_s16  ;;  %v2641_v20 = vrot.slane %v2606_v3, 5  ;;  %v3897_v35 = vld [vmem:[#allocation2] sm:$0xf]  ;;  %v2637_v37 = vrot.slane %v2604_v5, 5 }
 0x1b6   : > { %v650_v55 = vpop.permute.xlu0 %649  ;;  %v646_v56 = vpop.permute.xlu1 %645  ;;  %v3871_v62 = vrot.slane %v778_v44, %v3594_v43  ;;  %v3874_v63 = vrot.slane %v744_v46, %v3594_v43  ;;  %v2875_v38 = vld [vmem:[#allocation2 + $0x4] sm:$0x1]  ;;  %v1711_v44 = vrot.slane %v1709_v54, 5  ;;  %v3922_v54 = vrot.slane %v743_v45, %v3594_v43  ;;  %v1685_v12 = vld [vmem:[#allocation2 + $0x28] sm:$0xf] }
 0x1b7   : > { %v717_v0 = vsel %vm3790_vm12, %v650_v55, %v716_v34  ;;  %v711_v2 = vsel %vm3790_vm12, %v646_v56, %v710_v39  ;;  %v1708_v39 = vrot.slane %v1706_v53, 4  ;;  %v2610_v47 = vld [vmem:[#allocation2 + $0x1c] sm:$0x1]  ;;  %v1678_v56 = vld [vmem:[#allocation2 + $0xc] sm:$0x1]  ;;  %v3916_v53 = vrot.slane %v777_v42, %v3594_v43 }
 0x1b8   : > { %718 = vst [vmem:[#allocation2 + $0x3c] sm:$0x1] %v717_v0  ;;  %712 = vst [vmem:[#allocation2 + $0x34] sm:$0x1] %v711_v2  ;;  %v3907_v46 = vpack.i.b16 %v3871_v62, %v3874_v63  ;;  %v1137_v0 = vld [vmem:[#allocation2 + $0x38] sm:$0xf]  ;;  %v2638_v28 = vsel %vm3901_vm15, %v3339_v24, %v2637_v37 }
 0x1b9   : > { %1152 = vrot.lane.b32.xlu0 %v1133_v50, %s3506_s16  ;;  %1150 = vrot.lane.b32.xlu1 %v1132_v58, %s3506_s16  ;;  %v2912_v50 = vrot.slane %v2877_v15, 5  ;;  %v1681_v58 = vld [vmem:[#allocation2 + $0x18] sm:$0xf]  ;;  %v2608_v2 = vld [vmem:[#allocation2 + $0x14] sm:$0x1]  ;;  %v2642_v15 = vsel %vm3901_vm15, %v3340_v23, %v2641_v20  ;;  %v2908_v55 = vrot.slane %v2875_v38, 5  ;;  %v1712_v34 = vor.u32 %v1711_v44, %v1708_v39 }
 0x1ba   : > { %4952 = vst [vmem:[#allocation3_spill] sm:$0xff] %v3907_v46  ;;  %v2881_v3 = vld [vmem:[#allocation2 + $0x1c] sm:$0x1]  ;;  %v2879_v5 = vld [vmem:[#allocation2 + $0x14] sm:$0x1]  ;;  %v1715_v33 = vshll.u32 %v1678_v56, 16 }
 0x1bb   : > { %v2885_v42 = vld [vmem:[#allocation2 + $0x2c] sm:$0x1]  ;;  %v1692_v29 = vshrl.u32 %v3897_v35, 16  ;;  %v2649_v31 = vrot.slane %v2610_v47, 5  ;;  %v2645_v6 = vrot.slane %v2608_v2, 5  ;;  %v2920_v45 = vrot.slane %v2881_v3, 5 }
 0x1bc   : > { %v2612_v30 = vld [vmem:[#allocation2 + $0x24] sm:$0x1]  ;;  %v2916_v32 = vrot.slane %v2879_v5, 5  ;;  %v1695_v10 = vshll.u32 %v3897_v35, 16  ;;  %v1734_v38 = vshrl.u32 %v1681_v58, 16  ;;  %v1737_v24 = vshll.u32 %v1681_v58, 16 }
 0x1bd   : > { %1156 = vrot.lane.b32.xlu0 %v1135_v57, %s3506_s16  ;;  %1154 = vrot.lane.b32.xlu1 %v1134_v19, %s3506_s16  ;;  %v1136_v57 = vld [vmem:[#allocation2 + $0x30] sm:$0xf]  ;;  %v2614_v19 = vld [vmem:[#allocation2 + $0x2c] sm:$0x1]  ;;  %v2883_v23 = vld [vmem:[#allocation2 + $0x24] sm:$0x1]  ;;  %v3940_v39 = vsel %vm3901_vm15, %v3357_v26, %v2912_v50  ;;  %v3946_v44 = vsel %vm3901_vm15, %v3356_v27, %v2908_v55  ;;  %v2650_v13 = vsel %vm3901_vm15, %v3342_v40, %v2649_v31 }
 0x1be   : > { %v2657_v20 = vrot.slane %v2614_v19, 5  ;;  %v2653_v37 = vrot.slane %v2612_v30, 5  ;;  %v2928_v47 = vrot.slane %v2885_v42, 5  ;;  %v1679_v56 = vld [vmem:[#allocation2 + $0x10] sm:$0xf]  ;;  %v3948_v2 = vrot.slane %v1712_v34, 4 }
 0x1bf   : > { %v3950_v35 = vrot.slane %v1715_v33, 5  ;;  %v1676_v58 = vld [vmem:[#allocation2 + $0x4] sm:$0x1]  ;;  %v1694_v3 = vrot.slane %v1692_v29, 4  ;;  %v2646_v26 = vsel %vm3901_vm15, %v3341_v41, %v2645_v6  ;;  %v2618_v27 = vld [vmem:[#allocation2 + $0x3c] sm:$0x1]  ;;  %v3965_v33 = vsel %vm3901_vm15, %v3359_v9, %v2920_v45 }
 0x1c0   : > { %v2616_v34 = vld [vmem:[#allocation2 + $0x34] sm:$0x1]  ;;  %v3971_v21 = vsel %vm3901_vm15, %v3358_v14, %v2916_v32  ;;  %v2889_v40 = vld [vmem:[#allocation2 + $0x3c] sm:$0x1]  ;;  %v2658_v22 = vsel %vm3901_vm15, %v3344_v7, %v2657_v20  ;;  %v1697_v41 = vrot.slane %v1695_v10, 5  ;;  %v1736_v50 = vrot.slane %v1734_v38, 4 }
 0x1c1   : > { %1160 = vrot.lane.b32.xlu0 %v1137_v0, %s3506_s16  ;;  %1158 = vrot.lane.b32.xlu1 %v1136_v57, %s3506_s16  ;;  %v2924_v0 = vrot.slane %v2883_v23, 5  ;;  %v1682_v48 = vld [vmem:[#allocation2 + $0x1c] sm:$0x1]  ;;  %v1739_v55 = vrot.slane %v1737_v24, 5  ;;  %v2654_v49 = vsel %vm3901_vm15, %v3343_v8, %v2653_v37  ;;  %v3986_v9 = vsel %vm3901_vm15, %v3361_v16, %v2928_v47  ;;  %v2887_v57 = vld [vmem:[#allocation2 + $0x34] sm:$0x1] }
 0x1c2   : > { %v1720_v7 = vshrl.u32 %v1679_v56, 16  ;;  %v1723_v14 = vshll.u32 %v1679_v56, 16  ;;  %v2665_v32 = vrot.slane %v2618_v27, 5  ;;  %v2661_v5 = vrot.slane %v2616_v34, 5  ;;  %v1680_v29 = vld [vmem:[#allocation2 + $0x14] sm:$0x1] }
 0x1c3   : > { %v2936_v52 = vrot.slane %v2889_v40, 5  ;;  %v3999_v60 = vsel %vm3901_vm15, %v3360_v17, %v2924_v0  ;;  %v1743_v8 = vshll.u32 %v1682_v48, 16  ;;  %v1762_v16 = vshrl.u32 %v1685_v12, 16  ;;  %v1683_v45 = vld [vmem:[#allocation2 + $0x20] sm:$0xf] }
 0x1c4   : > { %v1765_v19 = vshll.u32 %v1685_v12, 16  ;;  %v1698_v30 = vor.u32 %v1697_v41, %v1694_v3  ;;  %v1740_v42 = vor.u32 %v1739_v55, %v1736_v50  ;;  %v2932_v31 = vrot.slane %v2887_v57, 5  ;;  %v1686_v0 = vld [vmem:[#allocation2 + $0x2c] sm:$0x1]  ;;  %v1684_v27 = vld [vmem:[#allocation2 + $0x24] sm:$0x1] }
 0x1c5   : > { %2669 = vrot.lane.b32.xlu0 %v2642_v15, %s3505_s15  ;;  %2667 = vrot.lane.b32.xlu1 %v2638_v28, %s3505_s15  ;;  %v1701_v15 = vshll.u32 %v1676_v58, 16  ;;  %v1718_v28 = vsel %vm3990_vm2, %v3948_v2, %v3950_v35  ;;  %v1722_v6 = vrot.slane %v1720_v7, 4  ;;  %v1725_v17 = vrot.slane %v1723_v14, 5  ;;  %v1689_v58 = vld [vmem:[#allocation2 + $0x38] sm:$0xf] }
 0x1c6   : > { %v4010_v23 = vcombine.high %v3922_v54, %v4935_v1  ;;  %v4955_v20 = vrot.slane %v3864_v59, 9  ;;  %v4956_v38 = vrot.slane %v3880_v11, 9  ;;  %v4957_v37 = vrot.slane %v3882_v4, 9  ;;  %v2347_v61 = vld [vmem:[#allocation2 + $0x8] sm:$0xe] }
 0x1c7   : > { %v4026_v56 = vrot.slane %v1701_v15, 5  ;;  %v4029_v59 = vrot.slane %v1743_v8, 5  ;;  %v1729_v3 = vshll.u32 %v1680_v29, 16  ;;  %v1764_v12 = vrot.slane %v1762_v16, 4  ;;  %v2010_v8 = vld [vmem:[#allocation2] sm:$0xf] }
 0x1c8   : > { %v2666_v10 = vsel %vm3901_vm15, %v4955_v20, %v2665_v32  ;;  %v2662_v24 = vsel %vm3901_vm15, %v4956_v38, %v2661_v5  ;;  %v4024_v47 = vsel %vm3901_vm15, %v4957_v37, %v2936_v52  ;;  %v1767_v11 = vrot.slane %v1765_v19, 5  ;;  %v1688_v38 = vld [vmem:[#allocation2 + $0x34] sm:$0x1]  ;;  %v2356_v52 = vld [vmem:[#allocation2 + $0x2c] sm:$0x1] }
 0x1c9   : > { %2673 = vrot.lane.b32.xlu0 %v2650_v13, %s3505_s15  ;;  %2671 = vrot.lane.b32.xlu1 %v2646_v26, %s3505_s15  ;;  %v1687_v13 = vld [vmem:[#allocation2 + $0x30] sm:$0xf]  ;;  %v4032_v26 = vrot.slane %v1698_v30, 4  ;;  %v4034_v4 = vrot.slane %v1740_v42, 4  ;;  %v1748_v34 = vshrl.u32 %v1683_v45, 16  ;;  %v1751_v40 = vshll.u32 %v1683_v45, 16 }
 0x1ca   : > { %v1726_v41 = vor.u32 %v1725_v17, %v1722_v6  ;;  %v1771_v48 = vshll.u32 %v1686_v0, 16  ;;  %v1790_v50 = vshrl.u32 %v1689_v58, 16  ;;  %v1793_v55 = vshll.u32 %v1689_v58, 16  ;;  %v2013_v30 = vld [vmem:[#allocation2 + $0xc] sm:$0x1] }
 0x1cb   : > { %v4958_v7 = vrot.slane %v3892_v18, 9  ;;  %v1776_v32 = vshrl.u32 %v1687_v13, 16  ;;  %v1779_v5 = vshll.u32 %v1687_v13, 16  ;;  %v4051_v57 = vrot.slane %v1729_v3, 5  ;;  %v1690_v45 = vld [vmem:[#allocation2 + $0x3c] sm:$0x1] }
 0x1cc   : > { %v1768_v18 = vor.u32 %v1767_v11, %v1764_v12  ;;  %v1757_v15 = vshll.u32 %v1684_v27, 16  ;;  %v1750_v16 = vrot.slane %v1748_v34, 4  ;;  %v1753_v19 = vrot.slane %v1751_v40, 5 }
 0x1cd   : > { %2677 = vrot.lane.b32.xlu0 %v2658_v22, %s3505_s15  ;;  %2675 = vrot.lane.b32.xlu1 %v2654_v49, %s3505_s15  ;;  %v2012_v22 = vld [vmem:[#allocation2 + $0x8] sm:$0xf]  ;;  %v4040_v14 = vsel %vm3901_vm15, %v4958_v7, %v2932_v31  ;;  %v1704_v49 = vsel %vm3990_vm2, %v4032_v26, %v4026_v56  ;;  %v2016_v31 = vld [vmem:[#allocation2 + $0x18] sm:$0xf]  ;;  %v4054_v6 = vrot.slane %v1726_v41, 4  ;;  %v4056_v17 = vrot.slane %v1771_v48, 5 }
 0x1ce   : > { %v2041_v42 = vshrl.u32 %v2012_v22, 16  ;;  %v2044_v29 = vshll.u32 %v2012_v22, 16  ;;  %v1792_v20 = vrot.slane %v1790_v50, 4  ;;  %v1778_v37 = vrot.slane %v1776_v32, 4  ;;  %v2014_v48 = vld [vmem:[#allocation2 + $0x10] sm:$0xf] }
 0x1cf   : > { %v1781_v0 = vrot.slane %v1779_v5, 5  ;;  %v2027_v58 = vshrl.u32 %v2010_v8, 16  ;;  %v2030_v3 = vshll.u32 %v2010_v8, 16  ;;  %v4062_v12 = vrot.slane %v1757_v15, 5  ;;  %v2011_v7 = vld [vmem:[#allocation2 + $0x4] sm:$0x1] }
 0x1d0   : > { %v2069_v11 = vshrl.u32 %v2016_v31, 16  ;;  %v2072_v13 = vshll.u32 %v2016_v31, 16  ;;  %v1754_v27 = vor.u32 %v1753_v19, %v1750_v16  ;;  %v1799_v34 = vshll.u32 %v1690_v45, 16  ;;  %v2017_v15 = vld [vmem:[#allocation2 + $0x1c] sm:$0x1] }
 0x1d1   : > { %2681 = vrot.lane.b32.xlu0 %v2666_v10, %s3505_s15  ;;  %2679 = vrot.lane.b32.xlu1 %v2662_v24, %s3505_s15  ;;  %v1795_v10 = vrot.slane %v1793_v55, 5  ;;  %v4060_v24 = vrot.slane %v1768_v18, 4  ;;  %v2043_v40 = vrot.slane %v2041_v42, 4  ;;  %v2046_v41 = vrot.slane %v2044_v29, 5  ;;  %v2015_v8 = vld [vmem:[#allocation2 + $0x14] sm:$0x1] }
 0x1d2   : > { %v1785_v55 = vshll.u32 %v1688_v38, 16  ;;  %v2050_v22 = vshll.u32 %v2013_v30, 16  ;;  %v2029_v5 = vrot.slane %v2027_v58, 4  ;;  %v2032_v18 = vrot.slane %v2030_v3, 5  ;;  %v2020_v31 = vld [vmem:[#allocation2 + $0x28] sm:$0xf] }
 0x1d3   : > { %v2071_v16 = vrot.slane %v2069_v11, 4  ;;  %v2074_v19 = vrot.slane %v2072_v13, 5  ;;  %v2055_v42 = vshrl.u32 %v2014_v48, 16  ;;  %v2058_v29 = vshll.u32 %v2014_v48, 16  ;;  %v2018_v48 = vld [vmem:[#allocation2 + $0x20] sm:$0xf] }
 0x1d4   : > { %v4078_v30 = vrot.slane %v1754_v27, 4  ;;  %v4080_v45 = vrot.slane %v1799_v34, 5  ;;  %v2033_v3 = vor.u32 %v2032_v18, %v2029_v5  ;;  %v2064_v11 = vshll.u32 %v2015_v8, 16  ;;  %v2355_v50 = vld [vmem:[#allocation2 + $0x28] sm:$0xe] }
 0x1d5   : > { %2940 = vrot.lane.b32.xlu0 %v3940_v39, %s3506_s16  ;;  %2938 = vrot.lane.b32.xlu1 %v3946_v44, %s3506_s16  ;;  %v1796_v39 = vor.u32 %v1795_v10, %v1792_v20  ;;  %v1782_v44 = vor.u32 %v1781_v0, %v1778_v37  ;;  %v2047_v20 = vor.u32 %v2046_v41, %v2043_v40  ;;  %v2036_v10 = vshll.u32 %v2011_v7, 16  ;;  %v2019_v7 = vld [vmem:[#allocation2 + $0x24] sm:$0x1]  ;;  %v2352_v41 = vld [vmem:[#allocation2 + $0x1c] sm:$0x1] }
 0x1d6   : > { %v4084_v37 = vrot.slane %v1785_v55, 5  ;;  %v4086_v0 = vrot.slane %v2050_v22, 5  ;;  %v2097_v13 = vshrl.u32 %v2020_v31, 16  ;;  %v2057_v27 = vrot.slane %v2055_v42, 4  ;;  %v2021_v22 = vld [vmem:[#allocation2 + $0x2c] sm:$0x1] }
 0x1d7   : > { %v4082_v38 = vrot.slane %v1796_v39, 4  ;;  %v4088_v58 = vrot.slane %v1782_v44, 4  ;;  %v2060_v34 = vrot.slane %v2058_v29, 5  ;;  %v2100_v40 = vshll.u32 %v2020_v31, 16  ;;  %v2358_v56 = vld [vmem:[#allocation2 + $0x34] sm:$0x1] }
 0x1d8   : > { %v4102_v55 = vrot.slane %v2047_v20, 4  ;;  %v2083_v5 = vshrl.u32 %v2018_v48, 16  ;;  %v2086_v18 = vshll.u32 %v2018_v48, 16  ;;  %v4120_v42 = vrot.slane %v2097_v13, 4  ;;  %v4136_v13 = vld [vmem:[#allocation2 + $0x3c] sm:$0x1] }
 0x1d9   : > { %2944 = vrot.lane.b32.xlu0 %v3965_v33, %s3506_s16  ;;  %2942 = vrot.lane.b32.xlu1 %v3971_v21, %s3506_s16  ;;  %v2078_v33 = vshll.u32 %v2017_v15, 16  ;;  %v2075_v21 = vor.u32 %v2074_v19, %v2071_v16  ;;  %v2024_v15 = vld [vmem:[#allocation2 + $0x38] sm:$0xf]  ;;  %v4116_v16 = vrot.slane %v2033_v3, 4  ;;  %v4118_v19 = vrot.slane %v2064_v11, 5 }
 0x1da   : > { %v2061_v31 = vor.u32 %v2060_v34, %v2057_v27  ;;  %v4126_v20 = vrot.slane %v2100_v40, 5  ;;  %v2092_v11 = vshll.u32 %v2019_v7, 16  ;;  %v810_v48 = vshrl.u32 %v3874_v63, 16  ;;  %v2346_v27 = vld [vmem:[#allocation2 + $0x4] sm:$0x1] }
 0x1db   : > { %v4110_v44 = vrot.slane %v2078_v33, 5  ;;  %v4124_v29 = vrot.slane %v2075_v21, 4  ;;  %v4128_v33 = vld [vmem:[#allocation2 + $0x30] sm:$0xf]  ;;  %v2345_v21 = vld [vmem:[#allocation2] sm:$0xe]  ;;  %v4155_v39 = vcombine.high %v3871_v62, %v4935_v1  ;;  %v4968_v36 = vsel %vm3990_vm2, %v4082_v38, %v4080_v45 }
 0x1dc   : > { %v4143_v40 = vrot.slane %v2083_v5, 4  ;;  %v2348_v7 = vld [vmem:[#allocation2 + $0xc] sm:$0x1]  ;;  %v2128_v3 = vshll.u32 %v2024_v15, 16  ;;  %v2111_v8 = vshrl.u32 %v4128_v33, 16  ;;  %v4177_v2 = vrot.slane %v2092_v11, 5 }
 0x1dd   : > { %2948 = vrot.lane.b32.xlu0 %v3986_v9, %s3506_s16  ;;  %2946 = vrot.lane.b32.xlu1 %v3999_v60, %s3506_s16  ;;  %v4104_v9 = vrot.slane %v2036_v10, 5  ;;  %4959 = vst [vmem:[#allocation4_spill] sm:$0xff] %v4110_v44  ;;  %v2106_v10 = vshll.u32 %v2021_v22, 16  ;;  %v811_v22 = vshrl.u32 %v3871_v62, 16  ;;  %v4151_v60 = vcombine.high %v3874_v63, %v4935_v1  ;;  %v2349_v34 = vld [vmem:[#allocation2 + $0x10] sm:$0xe] }
 0x1de   : > { %v2350_v5 = vld [vmem:[#allocation2 + $0x14] sm:$0x1]  ;;  %v2353_v62 = vld [vmem:[#allocation2 + $0x20] sm:$0xe]  ;;  %v2354_v1 = vld [vmem:[#allocation2 + $0x24] sm:$0x1]  ;;  %v4970_v38 = vor.u32 %v4126_v20, %v4120_v42  ;;  %v4971_v20 = vsel %vm3990_vm2, %v4102_v55, %v4086_v0 }
 0x1df   : > { %v4169_v32 = vpack.i.b16 %v811_v22, %v810_v48  ;;  %4961 = vst [vmem:[#allocation6_spill] sm:$0xff] %v4177_v2  ;;  %v2382_v48 = vrot.slane %v2346_v27, 5  ;;  %v2134_v63 = vshll.u32 %v4136_v13, 16  ;;  %v2114_v46 = vshll.u32 %v4128_v33, 16  ;;  %v2360_v22 = vld [vmem:[#allocation2 + $0x3c] sm:$0x1] }
 0x1e0   : > { %v3322_v26 = vrot.slane %v2345_v21, 9  ;;  %v4191_v11 = vrot.slane %v2111_v8, 4  ;;  %v2386_v2 = vrot.slane %v2348_v7, 5  ;;  %v4963_v27 = vsel %vm3990_vm2, %v4034_v4, %v4029_v59 }
 0x1e1   : > { %2952 = vrot.lane.b32.xlu0 %v4024_v47, %s3506_s16  ;;  %2950 = vrot.lane.b32.xlu1 %v4040_v14, %s3506_s16  ;;  %v2125_v47 = vshrl.u32 %v2024_v15, 16  ;;  %v4145_v14 = vrot.slane %v2086_v18, 5  ;;  %v4163_v18 = vrot.slane %v2061_v31, 4  ;;  %v4167_v15 = vrot.slane %v2106_v10, 5  ;;  %4960 = vst [vmem:[#allocation5_spill] sm:$0xff] %v4169_v32 }
 0x1e2   : > { %v2351_v31 = vld [vmem:[#allocation2 + $0x18] sm:$0xe]  ;;  %v2357_v10 = vld [vmem:[#allocation2 + $0x30] sm:$0xe]  ;;  %v3323_v32 = vrot.slane %v2347_v61, 9  ;;  %v2383_v33 = vsel %vm3901_vm15, %v3322_v26, %v2382_v48  ;;  %v3324_v13 = vrot.slane %v2349_v34, 9  ;;  %v4964_v61 = vsel %vm3990_vm2, %v4054_v6, %v4051_v57 }
 0x1e3   : > { %v4179_v35 = vrot.slane %v2125_v47, 4  ;;  %v2359_v47 = vld [vmem:[#allocation2 + $0x38] sm:$0xe]  ;;  %v2390_v21 = vrot.slane %v2350_v5, 5  ;;  %v3326_v8 = vrot.slane %v2353_v62, 9  ;;  %v2398_v7 = vrot.slane %v2354_v1, 5 }
 0x1e4   : > { %v2402_v44 = vrot.slane %v2356_v52, 5  ;;  %v2387_v59 = vsel %vm3901_vm15, %v3323_v32, %v2386_v2  ;;  %v3325_v4 = vrot.slane %v2351_v31, 9  ;;  %v2406_v48 = vrot.slane %v2358_v56, 5  ;;  %v2023_v34 = vld [vmem:[#allocation2 + $0x34] sm:$0x1] }
 0x1e5   : > { %1805 = vrot.lane.b32.xlu0 %v1718_v28, %s3505_s15  ;;  %1803 = vrot.lane.b32.xlu1 %v1704_v49, %s3505_s15  ;;  %v4183_v28 = vpack.i.b16 %v4155_v39, %v4151_v60  ;;  %v4189_v49 = vrot.slane %v2128_v3, 5  ;;  %v2394_v3 = vrot.slane %v2352_v41, 5  ;;  %v2399_v41 = vsel %vm3901_vm15, %v3326_v8, %v2398_v7  ;;  %v1353_v56 = vld [vmem:[#allocation2] sm:$0xf] }
 0x1e6   : > { %v3329_v26 = vrot.slane %v2359_v47, 9  ;;  %v2410_v57 = vrot.slane %v2360_v22, 5  ;;  %v4965_v1 = vsel %vm3990_vm2, %v4060_v24, %v4056_v17  ;;  %v2391_v52 = vsel %vm3901_vm15, %v3324_v13, %v2390_v21 }
 0x1e7   : > { %4962 = vst [vmem:[#allocation7_spill] sm:$0xff] %v4183_v28  ;;  %v3327_v28 = vrot.slane %v2355_v50, 9  ;;  %v2420_v50 = vcombine.low %v2383_v33, %v2399_v41  ;;  %v2395_v62 = vsel %vm3901_vm15, %v3325_v4, %v2394_v3  ;;  %v816_v2 = vshrl.u32 %v4151_v60, 16 }
 0x1e8   : > { %v2411_v17 = vsel %vm3901_vm15, %v3329_v26, %v2410_v57  ;;  %v2120_v31 = vshll.u32 %v2023_v34, 16  ;;  %v817_v22 = vshrl.u32 %v4155_v39, 16  ;;  %v798_v47 = vshrl.u32 %v3922_v54, 16 }
 0x1e9   : > { %1809 = vrot.lane.b32.xlu0 %v4963_v27, %s3505_s15  ;;  %1807 = vrot.lane.b32.xlu1 %v4964_v61, %s3505_s15  ;;  %v3328_v27 = vrot.slane %v2357_v10, 9  ;;  %v2403_v5 = vsel %vm3901_vm15, %v3327_v28, %v2402_v44  ;;  %v4966_v44 = vsel %vm3990_vm2, %v4078_v30, %v4062_v12  ;;  %v2116_v28 = vrot.slane %v2114_v46, 5 }
 0x1ea   : > { %v2454_v32 = vcombine.low %v2387_v59, %v2403_v5  ;;  %v2462_v10 = vcombine.low %v2395_v62, %v2411_v17  ;;  %v799_v12 = vshrl.u32 %v3916_v53, 16  ;;  %v4967_v30 = vmov 0   ;;  %v4976_v62 = vld [vmem:[#allocation6_spill] sm:$0xff] }
 0x1eb   : > { %v2407_v6 = vsel %vm3901_vm15, %v3328_v27, %v2406_v48  ;;  %v793_v33 = vcombine.high %v3916_v53, %v4967_v30  ;;  %v2427_v46 = vrot.slane %v2420_v50, %v3586_v25  ;;  %v4249_v21 = vpack.i.b16 %v817_v22, %v816_v2  ;;  %v1355_v48 = vld [vmem:[#allocation2 + $0x8] sm:$0xf] }
 0x1ec   : > { %v2428_v24 = vcombine.low %v2391_v52, %v2407_v6  ;;  %v2461_v39 = vrot.slane %v2454_v32, %v3586_v25  ;;  %v2469_v60 = vrot.slane %v2462_v10, %v3586_v25  ;;  %v4969_v3 = vsel %vm3990_vm2, %v4088_v58, %v4084_v37  ;;  %v4974_v32 = vld [vmem:[#allocation4_spill] sm:$0xff] }
 0x1ed   : > { %1813 = vrot.lane.b32.xlu0 %v4965_v1, %s3505_s15  ;;  %1811 = vrot.lane.b32.xlu1 %v4966_v44, %s3505_s15  ;;  %v2067_v45 = vsel %vm3990_vm2, %v4163_v18, %v4118_v19  ;;  %v2104_v61 = vrot.slane %v4970_v38, 4  ;;  %v2131_v8 = vor.u32 %v4189_v49, %v4179_v35  ;;  %v1373_v7 = vshrl.u32 %v1353_v56, 16 }
 0x1ee   : > { %v2435_v13 = vrot.slane %v2428_v24, %v3586_v25  ;;  %v4266_v59 = vrot.slane %v2134_v63, 5  ;;  %v2471_v27 = vcombine.high %v2461_v39, %v2469_v60  ;;  %v1376_v37 = vshll.u32 %v1353_v56, 16 }
 0x1ef   : > { %v2109_v58 = vsel %vm3990_vm2, %v2104_v61, %v4167_v15  ;;  %v2117_v19 = vor.u32 %v2116_v28, %v4191_v11  ;;  %v804_v18 = vshrl.u32 %v4010_v23, 16  ;;  %v805_v42 = vshrl.u32 %v793_v33, 16  ;;  %v1354_v11 = vld [vmem:[#allocation2 + $0x4] sm:$0x1]  ;;  %v4977_v28 = vld [vmem:[#allocation5_spill] sm:$0xff] }
 0x1f0   : > { %v2437_v4 = vcombine.high %v2427_v46, %v2435_v13  ;;  %v4972_v63 = vor.u32 %v4145_v14, %v4143_v40  ;;  %v4282_v49 = vrot.slane %v2120_v31, 5  ;;  %v4284_v34 = vpack.i.b16 %v799_v12, %v798_v47  ;;  %v1357_v47 = vld [vmem:[#allocation2 + $0x10] sm:$0xf] }
 0x1f1   : > { %1817 = vrot.lane.b32.xlu0 %v4968_v36, %s3505_s15  ;;  %1815 = vrot.lane.b32.xlu1 %v4969_v3, %s3505_s15  ;;  %v2436_v15 = vcombine.low %v2427_v46, %v2435_v13  ;;  %v4973_v41 = vsel %vm3990_vm2, %v4116_v16, %v4104_v9  ;;  %v2132_v5 = vrot.slane %v2131_v8, 4  ;;  %v2470_v0 = vcombine.low %v2461_v39, %v2469_v60  ;;  %v1356_v9 = vld [vmem:[#allocation2 + $0xc] sm:$0x1]  ;;  %v4978_v46 = vld [vmem:[#allocation7_spill] sm:$0xff]  ;;  %v1358_v3 = vld [vmem:[#allocation2 + $0x14] sm:$0x1] }
 0x1f2   : > { %v2090_v35 = vrot.slane %v4972_v63, 4  ;;  %v1375_v55 = vrot.slane %v1373_v7, 4  ;;  %v1387_v26 = vshrl.u32 %v1355_v48, 16  ;;  %v4293_v40 = vrot.slane %v2437_v4, %v3594_v43  ;;  %v1361_v4 = vld [vmem:[#allocation2 + $0x20] sm:$0xf] }
 0x1f3   : > { %v4296_v14 = vrot.slane %v2471_v27, %v3594_v43  ;;  %v1378_v57 = vrot.slane %v1376_v37, 5  ;;  %v1390_v1 = vshll.u32 %v1355_v48, 16  ;;  %v2118_v52 = vrot.slane %v2117_v19, 4  ;;  %v1362_v27 = vld [vmem:[#allocation2 + $0x24] sm:$0x1] }
 0x1f4   : > { %v4299_v6 = vpack.i.b16 %v793_v33, %v4010_v23  ;;  %v4301_v50 = vpack.i.b16 %v805_v42, %v804_v18  ;;  %v1382_v16 = vshll.u32 %v1354_v11, 16  ;;  %v4975_v44 = vsel %vm3990_vm2, %v4124_v29, %v4974_v32 }
 0x1f5   : > { %2140 = vrot.lane.b32.xlu0 %v4971_v20, %s3506_s16  ;;  %2138 = vrot.lane.b32.xlu1 %v4973_v41, %s3506_s16  ;;  %v2095_v17 = vsel %vm3990_vm2, %v2090_v35, %v4976_v62  ;;  %v2137_v23 = vsel %vm3990_vm2, %v2132_v5, %v4266_v59  ;;  %v3269_v24 = vcombine.low %v4284_v34, %v4284_v34  ;;  %v4329_v22 = vrot.slane %v1387_v26, 4  ;;  %v1360_v20 = vld [vmem:[#allocation2 + $0x1c] sm:$0x1] }
 0x1f6   : > { %v4318_v2 = vrot.slane %v2436_v15, %v3594_v43  ;;  %v2123_v29 = vsel %vm3990_vm2, %v2118_v52, %v4282_v49  ;;  %v3273_v31 = vcombine.low %v4977_v28, %v4977_v28  ;;  %v4327_v10 = vrot.slane %v2470_v0, %v3594_v43  ;;  %v1364_v15 = vld [vmem:[#allocation2 + $0x2c] sm:$0x1] }
 0x1f7   : > { %v4333_v56 = vpack.i.b16 %v4296_v14, %v4293_v40  ;;  %v1379_v12 = vor.u32 %v1378_v57, %v1375_v55  ;;  %v4335_v33 = vrot.slane %v1390_v1, 5  ;;  %v1396_v13 = vshll.u32 %v1356_v9, 16  ;;  %v1365_v55 = vld [vmem:[#allocation2 + $0x30] sm:$0xf]  ;;  %v1366_v9 = vld [vmem:[#allocation2 + $0x34] sm:$0x1] }
 0x1f8   : > { %v3270_v36 = vcombine.low %v4299_v6, %v4299_v6  ;;  %v3274_v39 = vcombine.low %v4978_v46, %v4978_v46  ;;  %v3271_v60 = vcombine.low %v4301_v50, %v4301_v50  ;;  %v4343_v38 = vrot.slane %v1382_v16, 5 }
 0x1f9   : > { %2144 = vrot.lane.b32.xlu0 %v4975_v44, %s3506_s16  ;;  %2142 = vrot.lane.b32.xlu1 %v2067_v45, %s3506_s16  ;;  %v1359_v45 = vld [vmem:[#allocation2 + $0x18] sm:$0xf]  ;;  %v2491_v61 = vshrl.u32 %v4318_v2, 16  ;;  %v4349_v8 = vcombine.high %v4318_v2, %v4967_v30  ;;  %v4353_v7 = vcombine.high %v4293_v40, %v4967_v30  ;;  %v2503_v59 = vshrl.u32 %v4293_v40, 16 }
 0x1fa   : > { %v2492_v48 = vshrl.u32 %v4327_v10, 16  ;;  %v4360_v37 = vcombine.high %v4327_v10, %v4967_v30  ;;  %v1401_v19 = vshrl.u32 %v1357_v47, 16  ;;  %v1404_v18 = vshll.u32 %v1357_v47, 16 }
 0x1fb   : > { %v3333_v42 = vcombine.low %v4333_v56, %v4333_v56  ;;  %v4364_v63 = vrot.slane %v1379_v12, 4  ;;  %v1393_v35 = vor.u32 %v4335_v33, %v4329_v22  ;;  %v4368_v49 = vrot.slane %v1396_v13, 5 }
 0x1fc   : > { %v1415_v11 = vshrl.u32 %v1359_v45, 16  ;;  %v1418_v41 = vshll.u32 %v1359_v45, 16  ;;  %v1429_v5 = vshrl.u32 %v1361_v4, 16  ;;  %v1432_v0 = vshll.u32 %v1361_v4, 16 }
 0x1fd   : > { %2148 = vrot.lane.b32.xlu0 %v2109_v58, %s3506_s16  ;;  %2146 = vrot.lane.b32.xlu1 %v2095_v17, %s3506_s16  ;;  %v1363_v58 = vld [vmem:[#allocation2 + $0x28] sm:$0xf]  ;;  %v1410_v26 = vshll.u32 %v1358_v3, 16  ;;  %v1438_v57 = vshll.u32 %v1362_v27, 16  ;;  %v1403_v16 = vrot.slane %v1401_v19, 4  ;;  %v1406_v32 = vrot.slane %v1404_v18, 5 }
 0x1fe   : > { %v1443_v1 = vshrl.u32 %v1363_v58, 16  ;;  %v1446_v52 = vshll.u32 %v1363_v58, 16  ;;  %v1431_v44 = vrot.slane %v1429_v5, 4  ;;  %v1434_v62 = vrot.slane %v1432_v0, 5  ;;  %v1367_v17 = vld [vmem:[#allocation2 + $0x38] sm:$0xf] }
 0x1ff   : > { %v1424_v22 = vshll.u32 %v1360_v20, 16  ;;  %v1452_v33 = vshll.u32 %v1364_v15, 16  ;;  %v1417_v13 = vrot.slane %v1415_v11, 4  ;;  %v1420_v45 = vrot.slane %v1418_v41, 5  ;;  %v4979_v3 = vld [vmem:[#allocation3_spill] sm:$0xff] }
 0x200   : > { %v1445_v47 = vrot.slane %v1443_v1, 4  ;;  %v1448_v12 = vrot.slane %v1446_v52, 5  ;;  %v1457_v4 = vshrl.u32 %v1365_v55, 16  ;;  %v4980_v27 = vcombine.low %v4979_v3, %v4979_v3 }
 0x201   : > { %2152 = vrot.lane.b32.xlu0 %v2137_v23, %s3506_s16  ;;  %2150 = vrot.lane.b32.xlu1 %v2123_v29, %s3506_s16  ;;  %v1435_v23 = vor.u32 %v1434_v62, %v1431_v44  ;;  %v1368_v29 = vld [vmem:[#allocation2 + $0x3c] sm:$0x1]  ;;  %v1440_v58 = vrot.slane %v1438_v57, 5  ;;  %v1460_v18 = vshll.u32 %v1365_v55, 16  ;;  %v1466_v5 = vshll.u32 %v1366_v9, 16 }
 0x202   : > { %v1449_v19 = vor.u32 %v1448_v12, %v1445_v47  ;;  %v1407_v20 = vor.u32 %v1406_v32, %v1403_v16  ;;  %v1412_v15 = vrot.slane %v1410_v26, 5  ;;  %v1459_v11 = vrot.slane %v1457_v4, 4 }
 0x203   : > { %v1471_v41 = vshrl.u32 %v1367_v17, 16  ;;  %v1436_v0 = vrot.slane %v1435_v23, 4  ;;  %v1454_v1 = vrot.slane %v1452_v33, 5  ;;  %v1462_v52 = vrot.slane %v1460_v18, 5 }
 0x204   : > { %v1474_v44 = vshll.u32 %v1367_v17, 16  ;;  %v1421_v62 = vor.u32 %v1420_v45, %v1417_v13  ;;  %v1450_v3 = vrot.slane %v1449_v19, 4  ;;  %v1480_v47 = vshll.u32 %v1368_v29, 16 }
 0x205   : > { %833 = vrot.lane.b32.xlu0 %v4980_v27, %s3507_s17  ;;  %821 = vrot.lane.b32.xlu1 %v3269_v24, %s3508_s18  ;;  %v1473_v57 = vrot.slane %v1471_v41, 4  ;;  %v1441_v34 = vsel %vm3990_vm2, %v1436_v0, %v1440_v58  ;;  %v1463_v24 = vor.u32 %v1462_v52, %v1459_v11  ;;  %v1468_v55 = vrot.slane %v1466_v5, 5 }
 0x206   : > { %v1476_v26 = vrot.slane %v1474_v44, 5  ;;  %v1385_v9 = vsel %vm3990_vm2, %v4364_v63, %v4343_v38  ;;  %v1394_v16 = vrot.slane %v1393_v35, 4  ;;  %v1408_v28 = vrot.slane %v1407_v20, 4 }
 0x207   : > { %v1455_v32 = vsel %vm3990_vm2, %v1450_v3, %v1454_v1  ;;  %v1464_v17 = vrot.slane %v1463_v24, 4  ;;  %v1482_v33 = vrot.slane %v1480_v47, 5  ;;  %v2493_v6 = vpack.i.b16 %v2492_v48, %v2491_v61 }
 0x208   : > { %v1477_v12 = vor.u32 %v1476_v26, %v1473_v57  ;;  %v1422_v13 = vrot.slane %v1421_v62, 4  ;;  %v1492_v38 = vcombine.low %v1385_v9, %v1441_v34  ;;  %v1413_v63 = vsel %vm3990_vm2, %v1408_v28, %v1412_v15 }
 0x209   : > { %837 = vrot.lane.b32.xlu0 %v3273_v31, %s3509_s19  ;;  %825 = vrot.lane.b32.xlu1 %v3270_v36, %s3510_s20  ;;  %v1426_v31 = vrot.slane %v1424_v22, 5  ;;  %v1399_v36 = vsel %vm3990_vm2, %v1394_v16, %v4368_v49  ;;  %v1469_v35 = vsel %vm3990_vm2, %v1464_v17, %v1468_v55  ;;  %v2490_v61 = vpack.i.b16 %v4327_v10, %v4318_v2 }
 0x20a   : > { %v1478_v22 = vrot.slane %v1477_v12, 4  ;;  %v2487_v48 = vcombine.high %v4296_v14, %v4967_v30  ;;  %v1500_v46 = vcombine.low %v1413_v63, %v1469_v35  ;;  %v2496_v49 = vpack.i.b16 %v4360_v37, %v4349_v8 }
 0x20b   : > { %v2504_v45 = vshrl.u32 %v4296_v14, 16  ;;  %v1427_v23 = vsel %vm3990_vm2, %v1422_v13, %v1426_v31  ;;  %v3512_v27 = vmov 0.0   ;;  %v3330_v56 = vcombine.low %v2493_v6, %v2493_v6 }
 0x20c   : > { %v1483_v4 = vsel %vm3990_vm2, %v1478_v22, %v1482_v33  ;;  %3407 = vmatprep.subr.bf16.mxu1 %v3512_v27  ;;  %3401 = vmatprep.subr.bf16.mxu0 %v3512_v27  ;;  %v1507_v29 = vrot.slane %v1500_v46, %v3586_v25  ;;  %v3275_v51 = vcombine.low %v4249_v21, %v4249_v21  ;;  %v2497_v14 = vshrl.u32 %v4349_v8, 16 }
 0x20d   : > { %841 = vrot.lane.b32.xlu0 %v3274_v39, %s3511_s23  ;;  %2526 = vrot.lane.b32.xlu1 %v3333_v42, %s3507_s17  ;;  %v1526_v39 = vcombine.low %v1399_v36, %v1455_v32  ;;  %v1499_v42 = vrot.slane %v1492_v38, %v3586_v25  ;;  %v1534_v58 = vcombine.low %v1427_v23, %v1483_v4  ;;  %v2509_v47 = vshrl.u32 %v4353_v7, 16 }
 0x20e   : > { %v3331_v15 = vcombine.low %v2496_v49, %v2496_v49  ;;  %v2508_v11 = vpack.i.b16 %v2487_v48, %v4353_v7  ;;  %v2505_v50 = vpack.i.b16 %v2504_v45, %v2503_v59  ;;  %v2510_v34 = vshrl.u32 %v2487_v48, 16  ;;  %3409 = vmatprep.mubr.msk.bf16.mxu1 %vm3515_vm3, %v3512_v27  ;;  %3403 = vmatprep.mubr.msk.bf16.mxu0 %vm3515_vm3, %v3512_v27 }
 0x20f   : > { %v1509_v19 = vcombine.high %v1499_v42, %v1507_v29  ;;  %v1533_v18 = vrot.slane %v1526_v39, %v3586_v25  ;;  %v1541_v5 = vrot.slane %v1534_v58, %v3586_v25  ;;  %v1508_v20 = vcombine.low %v1499_v42, %v1507_v29 }
 0x210   : > { %v3334_v44 = vcombine.low %v2505_v50, %v2505_v50  ;;  %v2511_v12 = vpack.i.b16 %v2510_v34, %v2509_v47  ;;  %vm3155_vm12 = vcmask 523264   ;;  %vm3167_vm15 = vcmask 15368  }
 0x211   : > { %829 = vrot.lane.b32.xlu0 %v3271_v60, %s3513_s24  ;;  %2514 = vrot.lane.b32.xlu1 %v3330_v56, %s3508_s18  ;;  %v2498_v60 = vshrl.u32 %v4360_v37, 16  ;;  %v1523_v21 = vrot.slane %v1509_v19, %v3594_v43  ;;  %v1543_v41 = vcombine.high %v1533_v18, %v1541_v5  ;;  %v4446_v8 = vrot.slane %v1508_v20, %v3594_v43 }
 0x212   : > { %v1542_v0 = vcombine.low %v1533_v18, %v1541_v5  ;;  %v3335_v37 = vcombine.low %v2508_v11, %v2508_v11  ;;  %v3336_v22 = vcombine.low %v2511_v12, %v2511_v12 }
 0x213   : > { %v1557_v1 = vrot.slane %v1543_v41, %v3594_v43  ;;  %v2499_v62 = vpack.i.b16 %v2498_v60, %v2497_v14  ;;  %v1563_v3 = vshrl.u32 %v4446_v8, 16  ;;  %v1575_v31 = vshrl.u32 %v1523_v21, 16 }
 0x214   : > { %v4452_v52 = vrot.slane %v1542_v0, %v3594_v43  ;;  %v1524_v7 = vcombine.high %v4446_v8, %v4967_v30  ;;  %v1525_v63 = vcombine.high %v1523_v21, %v4967_v30 }
 0x215   : > { %845 = vrot.lane.b32.xlu0 %v3275_v51, %s3514_s25  ;;  %2518 = vrot.lane.b32.xlu1 %v3331_v15, %s3510_s20  ;;  %v1574_v57 = vpack.i.b16 %v1557_v1, %v1523_v21  ;;  %v1576_v32 = vshrl.u32 %v1557_v1, 16  ;;  %v3332_v17 = vcombine.low %v2499_v62, %v2499_v62  ;;  %v1559_v35 = vcombine.high %v1557_v1, %v4967_v30 }
 0x216   : > { %v881_v40 = vpop.permute.xlu0 %880  ;;  %v879_v59 = vpop.permute.xlu1 %878  ;;  %v1564_v24 = vshrl.u32 %v4452_v52, 16  ;;  %v1562_v55 = vpack.i.b16 %v4452_v52, %v4446_v8  ;;  %v1558_v33 = vcombine.high %v4452_v52, %v4967_v30  ;;  %v1569_v39 = vshrl.u32 %v1524_v7, 16 }
 0x217   : > { %v3298_v16 = vcombine.low %v1574_v57, %v1574_v57  ;;  %v1577_v38 = vpack.i.b16 %v1576_v32, %v1575_v31  ;;  %v1580_v42 = vpack.i.b16 %v1559_v35, %v1525_v63  ;;  %v1581_v18 = vshrl.u32 %v1525_v63, 16 }
 0x218   : > { %v1565_v28 = vpack.i.b16 %v1564_v24, %v1563_v3  ;;  %v1568_v48 = vpack.i.b16 %v1558_v33, %v1524_v7  ;;  %v1570_v49 = vshrl.u32 %v1558_v33, 16  ;;  %v1582_v11 = vshrl.u32 %v1559_v35, 16 }
 0x219   : > { %2534 = vrot.lane.b32.xlu0 %v3335_v37, %s3511_s23  ;;  %2530 = vrot.lane.b32.xlu1 %v3334_v44, %s3509_s19  ;;  %v3299_v56 = vcombine.low %v1577_v38, %v1577_v38  ;;  %v3300_v60 = vcombine.low %v1580_v42, %v1580_v42 }
 0x21a   : > { %v885_v26 = vpop.permute.xlu0 %884  ;;  %v883_v9 = vpop.permute.xlu1 %882  ;;  %v3295_v13 = vcombine.low %v1565_v28, %v1565_v28  ;;  %v3296_v51 = vcombine.low %v1568_v48, %v1568_v48  ;;  %v1571_v19 = vpack.i.b16 %v1570_v49, %v1569_v39  ;;  %v1583_v37 = vpack.i.b16 %v1582_v11, %v1581_v18 }
 0x21d   : > { %1598 = vrot.lane.b32.xlu0 %v3298_v16, %s3507_s17  ;;  %2522 = vrot.lane.b32.xlu1 %v3332_v17, %s3513_s24 }
 0x21e   : > { %v889_v6 = vpop.permute.xlu0 %888  ;;  %v887_v36 = vpop.permute.xlu1 %886 }
 0x21f   : > { %v936_v46 = vcombine.low %v881_v40, %v889_v6  ;;  %v902_v45 = vcombine.low %v879_v59, %v887_v36  ;;  %v3297_v59 = vcombine.low %v1571_v19, %v1571_v19 }
 0x221   : > { %1586 = vrot.lane.b32.xlu0 %v3295_v13, %s3508_s18  ;;  %2538 = vrot.lane.b32.xlu1 %v3336_v22, %s3514_s25  ;;  %v943_v14 = vrot.slane %v936_v46, %v3586_v25  ;;  %v909_v5 = vrot.slane %v902_v45, %v3586_v25 }
 0x222   : > { %v893_v23 = vpop.permute.xlu0 %892  ;;  %v891_v4 = vpop.permute.xlu1 %890 }
 0x223   : > { %v944_v29 = vcombine.low %v885_v26, %v893_v23  ;;  %v910_v58 = vcombine.low %v883_v9, %v891_v4  ;;  %v3301_v26 = vcombine.low %v1583_v37, %v1583_v37 }
 0x225   : > { %1602 = vrot.lane.b32.xlu0 %v3299_v56, %s3509_s19  ;;  %v951_v20 = vrot.slane %v944_v29, %v3586_v25  ;;  %v917_v15 = vrot.slane %v910_v58, %v3586_v25  ;;  %1590 = vrot.lane.b32.xlu1 %v3296_v51, %s3510_s20 }
 0x227   : > { %v1149_v50 = vpop.permute.xlu0 %1148  ;;  %v952_v21 = vcombine.low %v943_v14, %v951_v20  ;;  %v953_v41 = vcombine.high %v943_v14, %v951_v20  ;;  %v918_v0 = vcombine.low %v909_v5, %v917_v15  ;;  %v919_v1 = vcombine.high %v909_v5, %v917_v15  ;;  %v1147_v40 = vpop.permute.xlu1 %1146 }
 0x229   : > { %1606 = vrot.lane.b32.xlu0 %v3300_v60, %s3511_s23  ;;  %v4483_v44 = vrot.slane %v952_v21, %v3594_v43  ;;  %v4486_v62 = vrot.slane %v953_v41, %v3594_v43  ;;  %v4489_v3 = vrot.slane %v918_v0, %v3594_v43  ;;  %v933_v57 = vrot.slane %v919_v1, %v3594_v43 }
 0x22b   : > { %v1153_v47 = vpop.permute.xlu0 %1152  ;;  %v1151_v34 = vpop.permute.xlu1 %1150  ;;  %v984_v9 = vpack.i.b16 %v4486_v62, %v933_v57  ;;  %v4496_v16 = vcombine.high %v4489_v3, %v4967_v30  ;;  %v4500_v28 = vcombine.high %v4483_v44, %v4967_v30  ;;  %v4504_v17 = vcombine.high %v933_v57, %v4967_v30 }
 0x22c   : > { %v972_v12 = vpack.i.b16 %v4483_v44, %v4489_v3  ;;  %v4512_v13 = vcombine.high %v4486_v62, %v4967_v30  ;;  %v973_v19 = vshrl.u32 %v4489_v3, 16  ;;  %v974_v11 = vshrl.u32 %v4483_v44, 16 }
 0x22d   : > { %1594 = vrot.lane.b32.xlu0 %v3297_v59, %s3513_s24  ;;  %v3279_v6 = vcombine.low %v984_v9, %v984_v9  ;;  %v978_v36 = vpack.i.b16 %v4500_v28, %v4496_v16  ;;  %v985_v0 = vshrl.u32 %v933_v57, 16  ;;  %v986_v1 = vshrl.u32 %v4486_v62, 16 }
 0x22e   : > { %v990_v23 = vpack.i.b16 %v4512_v13, %v4504_v17 }
 0x22f   : > { %v1157_v24 = vpop.permute.xlu0 %1156  ;;  %v1155_v31 = vpop.permute.xlu1 %1154  ;;  %v3277_v45 = vcombine.low %v978_v36, %v978_v36 }
 0x230   : > { %v1204_v32 = vcombine.low %v1149_v50, %v1157_v24  ;;  %v1170_v7 = vcombine.low %v1147_v40, %v1155_v31  ;;  %v3281_v15 = vcombine.low %v990_v23, %v990_v23  ;;  %v987_v31 = vpack.i.b16 %v986_v1, %v985_v0 }
 0x231   : > { %1610 = vrot.lane.b32.xlu0 %v3301_v26, %s3514_s25 }
 0x232   : > { %v1211_v22 = vrot.slane %v1204_v32, %v3586_v25  ;;  %v1177_v46 = vrot.slane %v1170_v7, %v3586_v25 }
 0x233   : > { %v1161_v33 = vpop.permute.xlu0 %1160  ;;  %v1159_v63 = vpop.permute.xlu1 %1158 }
 0x234   : > { %v1212_v38 = vcombine.low %v1153_v47, %v1161_v33  ;;  %v1178_v35 = vcombine.low %v1151_v34, %v1159_v63  ;;  %v975_v34 = vpack.i.b16 %v974_v11, %v973_v19 }
 0x235   : > { %1008 = vrot.lane.b32.xlu0 %v3279_v6, %s3507_s17 }
 0x236   : > { %v1219_v48 = vrot.slane %v1212_v38, %v3586_v25  ;;  %v1185_v39 = vrot.slane %v1178_v35, %v3586_v25  ;;  %v3276_v62 = vcombine.low %v975_v34, %v975_v34 }
 0x237   : > { %v2670_v49 = vpop.permute.xlu0 %2669  ;;  %v2668_v42 = vpop.permute.xlu1 %2667 }
 0x238   : > { %v1220_v4 = vcombine.low %v1211_v22, %v1219_v48  ;;  %v1221_v56 = vcombine.high %v1211_v22, %v1219_v48  ;;  %v1186_v29 = vcombine.low %v1177_v46, %v1185_v39  ;;  %v1187_v58 = vcombine.high %v1177_v46, %v1185_v39 }
 0x239   : > { %1000 = vrot.lane.b32.xlu0 %v3277_v45, %s3510_s20  ;;  %v3280_v45 = vcombine.low %v987_v31, %v987_v31 }
 0x23a   : > { %v4523_v51 = vrot.slane %v1220_v4, %v3594_v43  ;;  %v4526_v14 = vrot.slane %v1221_v56, %v3594_v43  ;;  %v4530_v18 = vrot.slane %v1186_v29, %v3594_v43  ;;  %v4533_v5 = vrot.slane %v1187_v58, %v3594_v43 }
 0x23b   : > { %v2674_v20 = vpop.permute.xlu0 %2673  ;;  %v2672_v50 = vpop.permute.xlu1 %2671  ;;  %v991_v29 = vshrl.u32 %v4504_v17, 16  ;;  %v992_v58 = vshrl.u32 %v4512_v13, 16 }
 0x23c   : > { %v4538_v60 = vcombine.high %v4526_v14, %v4967_v30  ;;  %v1252_v21 = vpack.i.b16 %v4526_v14, %v4533_v5  ;;  %v4545_v41 = vcombine.high %v4533_v5, %v4967_v30  ;;  %v1240_v40 = vpack.i.b16 %v4523_v51, %v4530_v18 }
 0x23d   : > { %1016 = vrot.lane.b32.xlu0 %v3281_v15, %s3511_s23  ;;  %v1241_v7 = vshrl.u32 %v4530_v18, 16  ;;  %v1242_v33 = vshrl.u32 %v4523_v51, 16  ;;  %v4561_v22 = vcombine.high %v4530_v18, %v4967_v30  ;;  %v4565_v48 = vcombine.high %v4523_v51, %v4967_v30  ;;  %v3283_v18 = vld [vmem:[%s4931_s3 + $0x4] sm:$0xf] }
 0x23e   : > { %v3289_v37 = vcombine.low %v1252_v21, %v1252_v21  ;;  %v1258_v47 = vpack.i.b16 %v4538_v60, %v4545_v41  ;;  %v1253_v15 = vshrl.u32 %v4533_v5, 16  ;;  %v1254_v11 = vshrl.u32 %v4526_v14, 16 }
 0x23f   : > { %v2678_v59 = vpop.permute.xlu0 %2677  ;;  %v2676_v24 = vpop.permute.xlu1 %2675  ;;  %v1243_v23 = vpack.i.b16 %v1242_v33, %v1241_v7  ;;  %v1246_v0 = vpack.i.b16 %v4565_v48, %v4561_v22  ;;  %v979_v5 = vshrl.u32 %v4496_v16, 16  ;;  %v980_v14 = vshrl.u32 %v4500_v28, 16 }
 0x240   : > { %1276 = vrot.lane.b32.xlu1 %v3289_v37, %s3507_s17  ;;  %v3291_v26 = vcombine.low %v1258_v47, %v1258_v47  ;;  %v2725_v9 = vcombine.low %v2670_v49, %v2678_v59  ;;  %v2691_v32 = vcombine.low %v2668_v42, %v2676_v24  ;;  %v1255_v24 = vpack.i.b16 %v1254_v11, %v1253_v15 }
 0x241   : > { %v3286_v59 = vcombine.low %v1243_v23, %v1243_v23 }
 0x242   : > { %1284 = vrot.lane.b32.xlu0 %v3291_v26, %s3511_s23  ;;  %v2732_v63 = vrot.slane %v2725_v9, %v3586_v25  ;;  %v2698_v46 = vrot.slane %v2691_v32, %v3586_v25  ;;  %v993_v26 = vpack.i.b16 %v992_v58, %v991_v29  ;;  %v3287_v9 = vcombine.low %v1246_v0, %v1246_v0 }
 0x243   : > { %v2682_v57 = vpop.permute.xlu0 %2681  ;;  %v2680_v36 = vpop.permute.xlu1 %2679 }
 0x244   : > { %v2733_v6 = vcombine.low %v2674_v20, %v2682_v57  ;;  %v2699_v38 = vcombine.low %v2672_v50, %v2680_v36  ;;  %996 = vrot.lane.b32.xlu1 %v3276_v62, %s3508_s18 }
 0x246   : > { %v2740_v35 = vrot.slane %v2733_v6, %v3586_v25  ;;  %v2706_v39 = vrot.slane %v2699_v38, %v3586_v25  ;;  %v981_v6 = vpack.i.b16 %v980_v14, %v979_v5 }
 0x247   : > { %v4569_v49 = vpop.permute.xlu0 %2940  ;;  %v4571_v42 = vpop.permute.xlu1 %2938 }
 0x248   : > { %v2741_v4 = vcombine.low %v2732_v63, %v2740_v35  ;;  %v2742_v56 = vcombine.high %v2732_v63, %v2740_v35  ;;  %v2707_v19 = vcombine.low %v2698_v46, %v2706_v39  ;;  %v2708_v20 = vcombine.high %v2698_v46, %v2706_v39  ;;  %1012 = vrot.lane.b32.xlu1 %v3280_v45, %s3509_s19 }
 0x249   : > { %v3290_v63 = vcombine.low %v1255_v24, %v1255_v24  ;;  %v3282_v35 = vcombine.low %v993_v26, %v993_v26  ;;  %v1247_v46 = vshrl.u32 %v4561_v22, 16  ;;  %v1248_v39 = vshrl.u32 %v4565_v48, 16 }
 0x24a   : > { %v4579_v50 = vrot.slane %v2741_v4, %v3594_v43  ;;  %v2756_v21 = vrot.slane %v2742_v56, %v3594_v43  ;;  %v4585_v17 = vrot.slane %v2707_v19, %v3594_v43  ;;  %v2722_v13 = vrot.slane %v2708_v20, %v3594_v43 }
 0x24b   : > { %v2945_v1 = vpop.permute.xlu0 %2944  ;;  %v2943_v37 = vpop.permute.xlu1 %2942  ;;  %v3278_v0 = vcombine.low %v981_v6, %v981_v6 }
 0x24c   : > { %v2758_v47 = vcombine.high %v2756_v21, %v4967_v30  ;;  %1264 = vrot.lane.b32.xlu1 %v3286_v59, %s3508_s18  ;;  %v2773_v34 = vpack.i.b16 %v2756_v21, %v2722_v13  ;;  %v2724_v31 = vcombine.high %v2722_v13, %v4967_v30  ;;  %v2761_v32 = vpack.i.b16 %v4579_v50, %v4585_v17 }
 0x24d   : > { %v2762_v7 = vshrl.u32 %v4585_v17, 16  ;;  %v2763_v16 = vshrl.u32 %v4579_v50, 16  ;;  %v2757_v45 = vcombine.high %v4579_v50, %v4967_v30  ;;  %v2774_v4 = vshrl.u32 %v2722_v13, 16 }
 0x24e   : > { %v3350_v62 = vcombine.low %v2773_v34, %v2773_v34  ;;  %v2781_v28 = vshrl.u32 %v2758_v47, 16  ;;  %v4597_v36 = vpack.i.b16 %v2758_v47, %v2724_v31  ;;  %v2780_v38 = vshrl.u32 %v2724_v31, 16 }
 0x24f   : > { %v2949_v57 = vpop.permute.xlu0 %2948  ;;  %v2947_v33 = vpop.permute.xlu1 %2946  ;;  %v2775_v56 = vshrl.u32 %v2756_v21, 16  ;;  %v2723_v29 = vcombine.high %v4585_v17, %v4967_v30  ;;  %v2764_v20 = vpack.i.b16 %v2763_v16, %v2762_v7  ;;  %v1259_v21 = vshrl.u32 %v4545_v41, 16 }
 0x250   : > { %1268 = vrot.lane.b32.xlu1 %v3287_v9, %s3510_s20  ;;  %2797 = vrot.lane.b32.xlu0 %v3350_v62, %s3507_s17  ;;  %v2996_v23 = vcombine.low %v4569_v49, %v2949_v57  ;;  %v2962_v58 = vcombine.low %v4571_v42, %v2947_v33  ;;  %v4609_v15 = vpack.i.b16 %v2781_v28, %v2780_v38  ;;  %v1260_v13 = vshrl.u32 %v4538_v60, 16 }
 0x251   : > { %v1249_v49 = vpack.i.b16 %v1248_v39, %v1247_v46  ;;  %v2776_v5 = vpack.i.b16 %v2775_v56, %v2774_v4  ;;  %v3347_v34 = vcombine.low %v2764_v20, %v2764_v20  ;;  %v2768_v24 = vshrl.u32 %v2723_v29, 16 }
 0x252   : > { %v4616_v59 = vrot.slane %v2996_v23, %v3586_v25  ;;  %v4622_v14 = vrot.slane %v2962_v58, %v3586_v25  ;;  %v1261_v31 = vpack.i.b16 %v1260_v13, %v1259_v21  ;;  %v2767_v6 = vpack.i.b16 %v2757_v45, %v2723_v29 }
 0x253   : > { %v2953_v19 = vpop.permute.xlu0 %2952  ;;  %v2951_v22 = vpop.permute.xlu1 %2950  ;;  %v3288_v7 = vcombine.low %v1249_v49, %v1249_v49  ;;  %v3351_v16 = vcombine.low %v2776_v5, %v2776_v5 }
 0x254   : > { %v3004_v11 = vcombine.low %v2945_v1, %v2953_v19  ;;  %v2970_v48 = vcombine.low %v2943_v37, %v2951_v22  ;;  %1280 = vrot.lane.b32.xlu1 %v3290_v63, %s3509_s19  ;;  %1020 = vrot.lane.b32.xlu0 %v3282_v35, %s3514_s25  ;;  %v2769_v1 = vshrl.u32 %v2757_v45, 16  ;;  %v3292_v35 = vcombine.low %v1261_v31, %v1261_v31 }
 0x255   : > { %v3348_v58 = vcombine.low %v2767_v6, %v2767_v6 }
 0x256   : > { %v4619_v42 = vrot.slane %v3004_v11, %v3586_v25  ;;  %v4625_v37 = vrot.slane %v2970_v48, %v3586_v25  ;;  %v2770_v28 = vpack.i.b16 %v2769_v1, %v2768_v24 }
 0x257   : > { %v1806_v47 = vpop.permute.xlu0 %1805  ;;  %v1804_v41 = vpop.permute.xlu1 %1803 }
 0x258   : > { %v3012_v60 = vcombine.low %v4616_v59, %v4619_v42  ;;  %v2978_v26 = vcombine.low %v4622_v14, %v4625_v37  ;;  %1004 = vrot.lane.b32.xlu1 %v3278_v0, %s3513_s24  ;;  %2785 = vrot.lane.b32.xlu0 %v3347_v34, %s3508_s18  ;;  %v3349_v46 = vcombine.low %v2770_v28, %v2770_v28 }
 0x25a   : > { %v4634_v9 = vrot.slane %v3012_v60, %v3594_v43  ;;  %v4637_v57 = vrot.slane %v2978_v26, %v3594_v43 }
 0x25b   : > { %v1810_v62 = vpop.permute.xlu0 %1809  ;;  %v1808_v33 = vpop.permute.xlu1 %1807 }
 0x25c   : > { %1272 = vrot.lane.b32.xlu1 %v3288_v7, %s3513_s24  ;;  %2801 = vrot.lane.b32.xlu0 %v3351_v16, %s3509_s19  ;;  %v3033_v39 = vshrl.u32 %v4637_v57, 16  ;;  %v3034_v23 = vshrl.u32 %v4634_v9, 16  ;;  %v4649_v29 = vcombine.high %v4637_v57, %v4967_v30  ;;  %v4653_v11 = vcombine.high %v4634_v9, %v4967_v30 }
 0x25e   : > { %v3035_v45 = vpack.i.b16 %v3034_v23, %v3033_v39  ;;  %v3038_v34 = vpack.i.b16 %v4653_v11, %v4649_v29 }
 0x25f   : > { %v1814_v63 = vpop.permute.xlu0 %1813  ;;  %v1812_v4 = vpop.permute.xlu1 %1811 }
 0x260   : > { %1288 = vrot.lane.b32.xlu1 %v3292_v35, %s3514_s25  ;;  %2793 = vrot.lane.b32.xlu0 %v3349_v46, %s3513_s24  ;;  %v1861_v56 = vcombine.low %v1806_v47, %v1814_v63  ;;  %v1827_v19 = vcombine.low %v1804_v41, %v1812_v4  ;;  %v3364_v47 = vcombine.low %v3035_v45, %v3035_v45 }
 0x261   : > { %v3365_v6 = vcombine.low %v3038_v34, %v3038_v34 }
 0x262   : > { %v1868_v49 = vrot.slane %v1861_v56, %v3586_v25  ;;  %v1834_v13 = vrot.slane %v1827_v19, %v3586_v25 }
 0x263   : > { %v1818_v20 = vpop.permute.xlu0 %1817  ;;  %v1816_v0 = vpop.permute.xlu1 %1815 }
 0x264   : > { %v1869_v22 = vcombine.low %v1810_v62, %v1818_v20  ;;  %v1835_v48 = vcombine.low %v1808_v33, %v1816_v0  ;;  %2789 = vrot.lane.b32.xlu1 %v3348_v58, %s3510_s20 }
 0x266   : > { %v1876_v21 = vrot.slane %v1869_v22, %v3586_v25  ;;  %v1842_v5 = vrot.slane %v1835_v48, %v3586_v25 }
 0x267   : > { %v2141_v1 = vpop.permute.xlu0 %2140  ;;  %v2139_v41 = vpop.permute.xlu1 %2138 }
 0x268   : > { %v1877_v24 = vcombine.low %v1868_v49, %v1876_v21  ;;  %v1878_v60 = vcombine.high %v1868_v49, %v1876_v21  ;;  %v1843_v26 = vcombine.low %v1834_v13, %v1842_v5  ;;  %v1844_v31 = vcombine.high %v1834_v13, %v1842_v5  ;;  %3056 = vrot.lane.b32.xlu1 %v3364_v47, %s3508_s18 }
 0x26a   : > { %v4664_v62 = vrot.slane %v1877_v24, %v3594_v43  ;;  %v1892_v7 = vrot.slane %v1878_v60, %v3594_v43  ;;  %v4668_v16 = vrot.slane %v1843_v26, %v3594_v43  ;;  %v1858_v28 = vrot.slane %v1844_v31, %v3594_v43 }
 0x26b   : > { %v2145_v33 = vpop.permute.xlu0 %2144  ;;  %v2143_v63 = vpop.permute.xlu1 %2142 }
 0x26c   : > { %v1899_v35 = vshrl.u32 %v4664_v62, 16  ;;  %3060 = vrot.lane.b32.xlu1 %v3365_v6, %s3510_s20  ;;  %v1909_v46 = vpack.i.b16 %v1892_v7, %v1858_v28  ;;  %v1898_v39 = vshrl.u32 %v4668_v16, 16  ;;  %v1859_v19 = vcombine.high %v4668_v16, %v4967_v30 }
 0x26d   : > { %v1893_v20 = vcombine.high %v4664_v62, %v4967_v30  ;;  %v1911_v0 = vshrl.u32 %v1892_v7, 16  ;;  %v1910_v5 = vshrl.u32 %v1858_v28, 16 }
 0x26e   : > { %v3307_v56 = vcombine.low %v1909_v46, %v1909_v46  ;;  %v1900_v58 = vpack.i.b16 %v1899_v35, %v1898_v39 }
 0x26f   : > { %v2149_v4 = vpop.permute.xlu0 %2148  ;;  %v2147_v45 = vpop.permute.xlu1 %2146  ;;  %v1903_v13 = vpack.i.b16 %v1893_v20, %v1859_v19 }
 0x270   : > { %1933 = vrot.lane.b32.xlu1 %v3307_v56, %s3507_s17  ;;  %v2196_v22 = vcombine.low %v2141_v1, %v2149_v4  ;;  %v2162_v48 = vcombine.low %v2139_v41, %v2147_v45  ;;  %v3304_v21 = vcombine.low %v1900_v58, %v1900_v58  ;;  %v1912_v41 = vpack.i.b16 %v1911_v0, %v1910_v5 }
 0x271   : > { %v3305_v35 = vcombine.low %v1903_v13, %v1903_v13  ;;  %v1860_v45 = vcombine.high %v1858_v28, %v4967_v30 }
 0x272   : > { %v2203_v60 = vrot.slane %v2196_v22, %v3586_v25  ;;  %v2169_v31 = vrot.slane %v2162_v48, %v3586_v25  ;;  %v1894_v22 = vcombine.high %v1892_v7, %v4967_v30 }
 0x273   : > { %v2153_v49 = vpop.permute.xlu0 %2152  ;;  %v2151_v34 = vpop.permute.xlu1 %2150 }
 0x274   : > { %v2204_v47 = vcombine.low %v2145_v33, %v2153_v49  ;;  %v2170_v24 = vcombine.low %v2143_v63, %v2151_v34  ;;  %1921 = vrot.lane.b32.xlu1 %v3304_v21, %s3508_s18  ;;  %v3308_v49 = vcombine.low %v1912_v41, %v1912_v41  ;;  %v797_v21 = vpack.i.b16 %v3916_v53, %v3922_v54 }
 0x275   : > { %v1905_v34 = vshrl.u32 %v1893_v20, 16  ;;  %v1916_v41 = vshrl.u32 %v1860_v45, 16 }
 0x276   : > { %v2211_v26 = vrot.slane %v2204_v47, %v3586_v25  ;;  %v2177_v6 = vrot.slane %v2170_v24, %v3586_v25  ;;  %v1904_v47 = vshrl.u32 %v1859_v19, 16  ;;  %v1915_v24 = vpack.i.b16 %v1894_v22, %v1860_v45 }
 0x277   : > { %v834_v1 = vpop.permute.xlu0 %833  ;;  %v822_v4 = vpop.permute.xlu1 %821 }
 0x278   : > { %v2212_v46 = vcombine.low %v2203_v60, %v2211_v26  ;;  %v2213_v39 = vcombine.high %v2203_v60, %v2211_v26  ;;  %v2178_v56 = vcombine.low %v2169_v31, %v2177_v6  ;;  %v2179_v33 = vcombine.high %v2169_v31, %v2177_v6  ;;  %1925 = vrot.lane.b32.xlu1 %v3305_v35, %s3510_s20 }
 0x279   : > { %v1906_v35 = vpack.i.b16 %v1905_v34, %v1904_v47  ;;  %v2979_v47 = vcombine.high %v4622_v14, %v4625_v37 }
 0x27a   : > { %v4688_v63 = vrot.slane %v2212_v46, %v3594_v43  ;;  %v2227_v58 = vrot.slane %v2213_v39, %v3594_v43  ;;  %v4694_v25 = vrot.slane %v2178_v56, %v3594_v43  ;;  %v2193_v0 = vrot.slane %v2179_v33, %v3594_v43 }
 0x27b   : > { %v838_v48 = vpop.permute.xlu0 %837  ;;  %v826_v13 = vpop.permute.xlu1 %825  ;;  %v1917_v46 = vshrl.u32 %v1894_v22, 16  ;;  %v3013_v39 = vcombine.high %v4616_v59, %v4619_v42  ;;  %v850_v56 = vsel %vm847_vm4, %v797_v21, %v822_v4  ;;  %v3309_v33 = vcombine.low %v1915_v24, %v1915_v24 }
 0x27c   : > { %v4701_v5 = vcombine.high %v4688_v63, %v4967_v30  ;;  %1937 = vrot.lane.b32.xlu1 %v3308_v49, %s3509_s19  ;;  %v2244_v28 = vpack.i.b16 %v2227_v58, %v2193_v0  ;;  %v4706_v7 = vcombine.high %v4694_v25, %v4967_v30  ;;  %v2233_v26 = vshrl.u32 %v4694_v25, 16 }
 0x27d   : > { %v2234_v31 = vshrl.u32 %v4688_v63, 16  ;;  %v853_v49 = vsel %vm851_vm5, %v850_v56, %v826_v13  ;;  %v2245_v19 = vshrl.u32 %v2193_v0, 16  ;;  %v2246_v23 = vshrl.u32 %v2227_v58, 16 }
 0x27e   : > { %v3316_v53 = vcombine.low %v2244_v28, %v2244_v28  ;;  %v2238_v54 = vpack.i.b16 %v4701_v5, %v4706_v7  ;;  %v3039_v59 = vshrl.u32 %v4649_v29, 16  ;;  %v3040_v42 = vshrl.u32 %v4653_v11, 16 }
 0x27f   : > { %v842_v60 = vpop.permute.xlu0 %841  ;;  %v4712_v6 = vpop.permute.xlu1 %2526  ;;  %v2235_v38 = vpack.i.b16 %v2234_v31, %v2233_v26  ;;  %v3306_v13 = vcombine.low %v1906_v35, %v1906_v35  ;;  %v1918_v34 = vpack.i.b16 %v1917_v46, %v1916_v41  ;;  %v2229_v37 = vcombine.high %v2227_v58, %v4967_v30 }
 0x280   : > { %2268 = vrot.lane.b32.xlu0 %v3316_v53, %s3507_s17  ;;  %v3314_v20 = vcombine.low %v2238_v54, %v2238_v54  ;;  %v2247_v24 = vpack.i.b16 %v2246_v23, %v2245_v19  ;;  %v2195_v2 = vcombine.high %v2193_v0, %v4967_v30  ;;  %v3027_v10 = vrot.slane %v3013_v39, %v3594_v43  ;;  %v869_v23 = vld [vmem:[%s4931_s3] sm:$0xf] }
 0x281   : > { %v3313_v11 = vcombine.low %v2235_v38, %v2235_v38  ;;  %v3310_v58 = vcombine.low %v1918_v34, %v1918_v34  ;;  %v3041_v38 = vpack.i.b16 %v3040_v42, %v3039_v59  ;;  %v2239_v31 = vshrl.u32 %v4706_v7, 16 }
 0x282   : > { %2260 = vrot.lane.b32.xlu1 %v3314_v20, %s3510_s20  ;;  %v2240_v19 = vshrl.u32 %v4701_v5, 16  ;;  %v3029_v20 = vcombine.high %v3027_v10, %v4967_v30  ;;  %v3046_v41 = vshrl.u32 %v3027_v10, 16 }
 0x283   : > { %v830_v28 = vpop.permute.xlu0 %829  ;;  %v2515_v22 = vpop.permute.xlu1 %2514  ;;  %v3366_v39 = vcombine.low %v3041_v38, %v3041_v38 }
 0x284   : > { %v856_v45 = vsel %vm854_vm6, %v853_v49, %v830_v28  ;;  %v2542_v21 = vsel %vm847_vm4, %v2490_v61, %v2515_v22  ;;  %1941 = vrot.lane.b32.xlu0 %v3309_v33, %s3511_s23  ;;  %v2993_v61 = vrot.slane %v2979_v47, %v3594_v43  ;;  %v3317_v43 = vcombine.low %v2247_v24, %v2247_v24 }
 0x285   : > { %v859_v4 = vsel %vm857_vm7, %v856_v45, %v834_v1  ;;  %v2241_v49 = vpack.i.b16 %v2240_v19, %v2239_v31  ;;  %v2251_v28 = vshrl.u32 %v2195_v2, 16  ;;  %v2252_v47 = vshrl.u32 %v2229_v37, 16 }
 0x286   : > { %v862_v14 = vsel %vm860_vm8, %v859_v4, %v838_v48  ;;  %1929 = vrot.lane.b32.xlu1 %v3306_v13, %s3513_s24  ;;  %v2995_v46 = vcombine.high %v2993_v61, %v4967_v30  ;;  %v3044_v56 = vpack.i.b16 %v3027_v10, %v2993_v61  ;;  %v3045_v33 = vshrl.u32 %v2993_v61, 16 }
 0x287   : > { %v846_v29 = vpop.permute.xlu0 %845  ;;  %v865_v1 = vsel %vm863_vm9, %v862_v14, %v842_v60  ;;  %v2519_v53 = vpop.permute.xlu1 %2518  ;;  %v2250_v60 = vpack.i.b16 %v2229_v37, %v2195_v2  ;;  %v3052_v22 = vshrl.u32 %v3029_v20, 16  ;;  %v3315_v14 = vcombine.low %v2241_v49, %v2241_v49 }
 0x288   : > { %v868_v54 = vsel %vm866_vm10, %v865_v1, %v846_v29  ;;  %v2544_v48 = vsel %vm851_vm5, %v2542_v21, %v2519_v53  ;;  %2256 = vrot.lane.b32.xlu0 %v3313_v11, %s3508_s18  ;;  %v3367_v59 = vcombine.low %v3044_v56, %v3044_v56  ;;  %v3047_v42 = vpack.i.b16 %v3046_v41, %v3045_v33 }
 0x289   : > { %v1088_v26 = vsel %vm1042_vm11, %v868_v54, 0  ;;  %v3318_v7 = vcombine.low %v2250_v60, %v2250_v60  ;;  %v3051_v4 = vshrl.u32 %v2995_v46, 16  ;;  %v2253_v29 = vpack.i.b16 %v2252_v47, %v2251_v28 }
 0x28a   : > { %3408 = vmatpush3.bf16.msra.mxu1 %v1088_v26  ;;  %1945 = vrot.lane.b32.xlu1 %v3310_v58, %s3514_s25  ;;  %v3368_v24 = vcombine.low %v3047_v42, %v3047_v42  ;;  %v3352_v54 = vcombine.low %v4597_v36, %v4597_v36 }
 0x28b   : > { %v2535_v0 = vpop.permute.xlu0 %2534  ;;  %3419 = vmatprep.subr.bf16.mxu1 %v3512_v27  ;;  %v2531_v35 = vpop.permute.xlu1 %2530  ;;  %v3053_v2 = vpack.i.b16 %v3052_v22, %v3051_v4  ;;  %v3319_v10 = vcombine.low %v2253_v29, %v2253_v29 }
 0x28c   : > { %2272 = vrot.lane.b32.xlu0 %v3317_v43, %s3509_s19 }
 0x28d   : > { %3410 = vmatmul.mubr.msk.bf16.vlgmr.msra.gmra.mrb[0].mxu1 %vm847_vm4, %v869_v23  ;;  %v3370_v61 = vcombine.low %v3053_v2, %v3053_v2  ;;  %v3353_v23 = vcombine.low %v4609_v15, %v4609_v15  ;;  %v3145_v15 = vld [vmem:[%s4932_s4] sm:$0xff] }
 0x28e   : > { %3421 = vmatprep.mubr.msk.bf16.mxu1 %vm3515_vm3, %v3512_v27  ;;  %3064 = vrot.lane.b32.xlu1 %v3366_v39, %s3513_s24 }
 0x28f   : > { %v1599_v5 = vpop.permute.xlu0 %1598  ;;  %v2523_v45 = vpop.permute.xlu1 %2522 }
 0x290   : > { %v2546_v30 = vsel %vm854_vm6, %v2544_v48, %v2523_v45  ;;  %2276 = vrot.lane.b32.xlu0 %v3318_v7, %s3511_s23 }
 0x291   : > { %v2548_v21 = vsel %vm857_vm7, %v2546_v30, %v4712_v6 }
 0x292   : > { %3068 = vrot.lane.b32.xlu1 %v3367_v59, %s3507_s17  ;;  %v2550_v34 = vsel %vm860_vm8, %v2548_v21, %v2531_v35 }
 0x293   : > { %v1587_v13 = vpop.permute.xlu0 %1586  ;;  %v2552_v37 = vsel %vm863_vm9, %v2550_v34, %v2535_v0  ;;  %v2539_v11 = vpop.permute.xlu1 %2538  ;;  %v3050_v0 = vpack.i.b16 %v3029_v20, %v2995_v46  ;;  %v3302_v20 = vld [vmem:[%s4931_s3 + $0xc] sm:$0xf] }
 0x294   : > { %v4766_v1 = vsel %vm866_vm10, %v2552_v37, %v2539_v11  ;;  %2264 = vrot.lane.b32.xlu0 %v3315_v14, %s3513_s24  ;;  %v1614_v58 = vsel %vm847_vm4, %v1562_v55, %v1587_v13 }
 0x295   : > { %v3369_v52 = vcombine.low %v3050_v0, %v3050_v0 }
 0x296   : > { %3072 = vrot.lane.b32.xlu1 %v3368_v24, %s3509_s19 }
 0x297   : > { %v1603_v6 = vpop.permute.xlu0 %1602  ;;  %v1591_v48 = vpop.permute.xlu1 %1590 }
 0x298   : > { %2280 = vrot.lane.b32.xlu0 %v3319_v10, %s3514_s25  ;;  %v1616_v26 = vsel %vm851_vm5, %v1614_v58, %v1591_v48 }
 0x29a   : > { %3080 = vrot.lane.b32.xlu1 %v3370_v61, %s3514_s25 }
 0x29b   : > { %v1607_v53 = vpop.permute.xlu0 %1606 }
 0x29c   : > { %2805 = vrot.lane.b32.xlu0 %v3352_v54, %s3511_s23 }
 0x29f   : > { %v1595_v38 = vpop.permute.xlu0 %1594 }
 0x2a0   : > { %v1618_v43 = vsel %vm854_vm6, %v1616_v26, %v1595_v38  ;;  %2809 = vrot.lane.b32.xlu0 %v3353_v23, %s3514_s25  ;;  %v3293_v26 = vld [vmem:[%s4931_s3 + $0x8] sm:$0xf] }
 0x2a1   : > { %v1620_v60 = vsel %vm857_vm7, %v1618_v43, %v1599_v5 }
 0x2a2   : > { %v1622_v36 = vsel %vm860_vm8, %v1620_v60, %v1603_v6 }
 0x2a3   : > { %v1611_v31 = vpop.permute.xlu0 %1610  ;;  %v1624_v8 = vsel %vm863_vm9, %v1622_v36, %v1607_v53 }
 0x2a4   : > { %v1626_v55 = vsel %vm866_vm10, %v1624_v8, %v1611_v31  ;;  %3076 = vrot.lane.b32.xlu0 %v3369_v52, %s3511_s23  ;;  %v4981_v8 = vpack.i.b16 %v4664_v62, %v4668_v16  ;;  %v3311_v16 = vld [vmem:[%s4931_s3 + $0x10] sm:$0xf] }
 0x2a5   : > { %v1632_v19 = vsel %vm1042_vm11, %v1626_v55, 0 }
 0x2a6   : > { %3420 = vmatpush3.bf16.msra.mxu1 %v1632_v19 }
 0x2a7   : > { %3431 = vmatprep.subr.bf16.mxu1 %v3512_v27  ;;  %v1009_v35 = vpop.permute.xlu0 %1008 }
 0x2a8   : > { %3148 = vperm.xlu0 %3485, %v3145_v15  }
 0x2a9   : > { %3422 = vmatmul.mubr.msk.bf16.vlgmr.msra.gmra.mrb[4].mxu1 %vm847_vm4, %v3302_v20 }
 0x2aa   : > { %3433 = vmatprep.mubr.msk.bf16.mxu1 %vm3515_vm3, %v3512_v27 }
 0x2ab   : > { %v1001_v41 = vpop.permute.xlu0 %1000 }
 0x2af   : > { %v1017_v56 = vpop.permute.xlu0 %1016 }
 0x2b2   : > { %v1277_v46 = vpop.permute.xlu1 %1276 }
 0x2b4   : > { %v1285_v5 = vpop.permute.xlu0 %1284 }
 0x2b6   : > { %v997_v39 = vpop.permute.xlu1 %996 }
 0x2b7   : > { %v1024_v22 = vsel %vm847_vm4, %v972_v12, %v997_v39 }
 0x2b8   : > { %v1026_v30 = vsel %vm851_vm5, %v1024_v22, %v1001_v41 }
 0x2ba   : > { %v1013_v33 = vpop.permute.xlu1 %1012 }
 0x2be   : > { %v1265_v7 = vpop.permute.xlu1 %1264 }
 0x2bf   : > { %v1292_v13 = vsel %vm847_vm4, %v1240_v40, %v1265_v7 }
 0x2c2   : > { %v2798_v49 = vpop.permute.xlu0 %2797  ;;  %v1269_v28 = vpop.permute.xlu1 %1268 }
 0x2c3   : > { %v1294_v14 = vsel %vm851_vm5, %v1292_v13, %v1269_v28 }
 0x2c6   : > { %v1021_v47 = vpop.permute.xlu0 %1020  ;;  %v1281_v45 = vpop.permute.xlu1 %1280 }
 0x2ca   : > { %v1005_v59 = vpop.permute.xlu1 %1004  ;;  %v2786_v42 = vpop.permute.xlu0 %2785 }
 0x2cb   : > { %v1028_v4 = vsel %vm854_vm6, %v1026_v30, %v1005_v59  ;;  %v2813_v61 = vsel %vm847_vm4, %v2761_v32, %v2786_v42  ;;  %v3337_v30 = vld [vmem:[%s4931_s3 + $0x18] sm:$0xf] }
 0x2cc   : > { %v1030_v21 = vsel %vm857_vm7, %v1028_v4, %v1009_v35 }
 0x2cd   : > { %v1032_v34 = vsel %vm860_vm8, %v1030_v21, %v1013_v33 }
 0x2ce   : > { %v1273_v44 = vpop.permute.xlu1 %1272  ;;  %v1034_v3 = vsel %vm863_vm9, %v1032_v34, %v1017_v56  ;;  %v4818_v24 = vpop.permute.xlu0 %2801  ;;  %v3320_v34 = vld [vmem:[%s4931_s3 + $0x14] sm:$0xf] }
 0x2cf   : > { %v1296_v12 = vsel %vm854_vm6, %v1294_v14, %v1273_v44  ;;  %v1036_v29 = vsel %vm866_vm10, %v1034_v3, %v1021_v47 }
 0x2d0   : > { %v1298_v37 = vsel %vm857_vm7, %v1296_v12, %v1277_v46  ;;  %v1043_v11 = vsel %vm1042_vm11, %v1036_v29, 0  ;;  %v4983_v12 = vpack.i.b16 %v4634_v9, %v4637_v57 }
 0x2d1   : > { %3402 = vmatpush3.bf16.msra.mxu0 %v1043_v11  ;;  %v1300_v51 = vsel %vm860_vm8, %v1298_v37, %v1281_v45 }
 0x2d2   : > { %v1302_v40 = vsel %vm863_vm9, %v1300_v51, %v1285_v5  ;;  %v1289_v2 = vpop.permute.xlu1 %1288  ;;  %3413 = vmatprep.subr.bf16.mxu0 %v3512_v27  ;;  %v2794_v54 = vpop.permute.xlu0 %2793  ;;  %v2560_v5 = vsel %vm1042_vm11, %v4766_v1, 0 }
 0x2d3   : > { %v1304_v6 = vsel %vm866_vm10, %v1302_v40, %v1289_v2 }
 0x2d4   : > { %v1310_v10 = vsel %vm1042_vm11, %v1304_v6, 0  ;;  %3404 = vmatmul.mubr.msk.bf16.vlgmr.msra.gmra.mrb[0].mxu0 %vm847_vm4, %v3283_v18 }
 0x2d5   : > { %3414 = vmatpush3.bf16.msra.mxu0 %v1310_v10  ;;  %3415 = vmatprep.mubr.msk.bf16.mxu0 %vm3515_vm3, %v3512_v27 }
 0x2d6   : > { %v2790_v53 = vpop.permute.xlu1 %2789  ;;  %3425 = vmatprep.subr.bf16.mxu0 %v3512_v27 }
 0x2d7   : > { %v2815_v48 = vsel %vm851_vm5, %v2813_v61, %v2790_v53 }
 0x2d8   : > { %v2817_v58 = vsel %vm854_vm6, %v2815_v48, %v2794_v54  ;;  %v3371_v54 = vld [vmem:[%s4931_s3 + $0x20] sm:$0xf] }
 0x2d9   : > { %v2819_v38 = vsel %vm857_vm7, %v2817_v58, %v2798_v49  ;;  %v4982_v49 = vpack.i.b16 %v4688_v63, %v4694_v25 }
 0x2da   : > { %v3057_v23 = vpop.permute.xlu1 %3056  ;;  %v2821_v3 = vsel %vm860_vm8, %v2819_v38, %v4818_v24 }
 0x2db   : > { %v3084_v29 = vsel %vm847_vm4, %v4983_v12, %v3057_v23 }
 0x2dc   : > { %3416 = vmatmul.mubr.msk.bf16.vlgmr.msra.gmra.mrb[4].mxu0 %vm847_vm4, %v3293_v26 }
 0x2dd   : > { %3427 = vmatprep.mubr.msk.bf16.mxu0 %vm3515_vm3, %v3512_v27 }
 0x2de   : > { %v3061_v50 = vpop.permute.xlu1 %3060 }
 0x2df   : > { %v3086_v51 = vsel %vm851_vm5, %v3084_v29, %v3061_v50 }
 0x2e2   : > { %v1934_v17 = vpop.permute.xlu1 %1933 }
 0x2e6   : > { %v1922_v32 = vpop.permute.xlu1 %1921 }
 0x2e7   : > { %v1949_v52 = vsel %vm847_vm4, %v4981_v8, %v1922_v32 }
 0x2ea   : > { %v1926_v0 = vpop.permute.xlu1 %1925 }
 0x2eb   : > { %v1951_v55 = vsel %vm851_vm5, %v1949_v52, %v1926_v0 }
 0x2ee   : > { %v1938_v43 = vpop.permute.xlu1 %1937 }
 0x2f2   : > { %v2269_v60 = vpop.permute.xlu0 %2268 }
 0x2f4   : > { %v2261_v36 = vpop.permute.xlu1 %2260 }
 0x2f6   : > { %v1942_v31 = vpop.permute.xlu0 %1941 }
 0x2f8   : > { %v1930_v19 = vpop.permute.xlu1 %1929 }
 0x2f9   : > { %v1953_v15 = vsel %vm854_vm6, %v1951_v55, %v1930_v19 }
 0x2fa   : > { %v1955_v20 = vsel %vm857_vm7, %v1953_v15, %v1934_v17  ;;  %v2257_v35 = vpop.permute.xlu0 %2256 }
 0x2fb   : > { %v1957_v41 = vsel %vm860_vm8, %v1955_v20, %v1938_v43  ;;  %v2284_v28 = vsel %vm847_vm4, %v4982_v49, %v2257_v35 }
 0x2fc   : > { %v1959_v46 = vsel %vm863_vm9, %v1957_v41, %v1942_v31  ;;  %v1946_v39 = vpop.permute.xlu1 %1945  ;;  %v2286_v22 = vsel %vm851_vm5, %v2284_v28, %v2261_v36 }
 0x2fd   : > { %v1961_v56 = vsel %vm866_vm10, %v1959_v46, %v1946_v39 }
 0x2fe   : > { %v1967_v33 = vsel %vm1042_vm11, %v1961_v56, 0  ;;  %v2273_v62 = vpop.permute.xlu0 %2272 }
 0x2ff   : > { %3426 = vmatpush3.bf16.msra.mxu0 %v1967_v33 }
 0x300   : > { %3437 = vmatprep.subr.bf16.mxu0 %v3512_v27  ;;  %v3065_v47 = vpop.permute.xlu1 %3064 }
 0x301   : > { %v3088_v40 = vsel %vm854_vm6, %v3086_v51, %v3065_v47 }
 0x302   : > { %v2277_v7 = vpop.permute.xlu0 %2276  ;;  %3428 = vmatmul.mubr.msk.bf16.vlgmr.msra.gmra.mrb[8].mxu0 %vm847_vm4, %v3311_v16 }
 0x303   : > { %3438 = vmatpush3.bf16.msra.mxu0 %v2560_v5  ;;  %3439 = vmatprep.mubr.msk.bf16.mxu0 %vm3515_vm3, %v3512_v27 }
 0x304   : > { %3449 = vmatprep.subr.bf16.mxu0 %v3512_v27  ;;  %v3069_v4 = vpop.permute.xlu1 %3068 }
 0x305   : > { %v3090_v24 = vsel %vm857_vm7, %v3088_v40, %v3069_v4 }
 0x306   : > { %v2265_v45 = vpop.permute.xlu0 %2264 }
 0x307   : > { %v2288_v1 = vsel %vm854_vm6, %v2286_v22, %v2265_v45 }
 0x308   : > { %v2290_v63 = vsel %vm857_vm7, %v2288_v1, %v2269_v60  ;;  %v3073_v44 = vpop.permute.xlu1 %3072 }
 0x309   : > { %v2292_v25 = vsel %vm860_vm8, %v2290_v63, %v2273_v62  ;;  %v3092_v9 = vsel %vm860_vm8, %v3090_v24, %v3073_v44 }
 0x30a   : > { %v2281_v59 = vpop.permute.xlu0 %2280  ;;  %v2294_v42 = vsel %vm863_vm9, %v2292_v25, %v2277_v7  ;;  %3440 = vmatmul.mubr.msk.bf16.vlgmr.msra.gmra.mrb[12].mxu0 %vm847_vm4, %v3337_v30 }
 0x30b   : > { %v2296_v21 = vsel %vm866_vm10, %v2294_v42, %v2281_v59  ;;  %3451 = vmatprep.mubr.msk.bf16.mxu0 %vm3515_vm3, %v3512_v27 }
 0x30c   : > { %v2302_v13 = vsel %vm1042_vm11, %v2296_v21, 0  ;;  %v3081_v6 = vpop.permute.xlu1 %3080 }
 0x30d   : > { %3432 = vmatpush3.bf16.msra.mxu1 %v2302_v13 }
 0x30e   : > { %v2806_v14 = vpop.permute.xlu0 %2805  ;;  %3443 = vmatprep.subr.bf16.mxu1 %v3512_v27 }
 0x30f   : > { %v2823_v37 = vsel %vm863_vm9, %v2821_v3, %v2806_v14 }
 0x310   : > { %3434 = vmatmul.mubr.msk.bf16.vlgmr.msra.gmra.mrb[8].mxu1 %vm847_vm4, %v3320_v34 }
 0x311   : > { %3445 = vmatprep.mubr.msk.bf16.mxu1 %vm3515_vm3, %v3512_v27  ;;  %v3354_v27 = vld [vmem:[%s4931_s3 + $0x1c] sm:$0xf] }
 0x312   : > { %v2810_v11 = vpop.permute.xlu0 %2809 }
 0x313   : > { %v2825_v18 = vsel %vm866_vm10, %v2823_v37, %v2810_v11 }
 0x314   : > { %v2831_v2 = vsel %vm1042_vm11, %v2825_v18, 0 }
 0x315   : > { %3444 = vmatpush3.bf16.msra.mxu1 %v2831_v2 }
 0x316   : > { %v3077_v57 = vpop.permute.xlu0 %3076 }
 0x317   : > { %v3094_v10 = vsel %vm863_vm9, %v3092_v9, %v3077_v57 }
 0x318   : > { %v3096_v61 = vsel %vm866_vm10, %v3094_v10, %v3081_v6  ;;  %3446 = vmatmul.mubr.msk.bf16.vlgmr.msra.gmra.mrb[12].mxu1 %vm847_vm4, %v3354_v27 }
 0x319   : > { %v3102_v53 = vsel %vm1042_vm11, %v3096_v61, 0 }
 0x31a   : > { %3450 = vmatpush3.bf16.msra.mxu0 %v3102_v53 }
 0x31d   : > { %3452 = vmatmul.mubr.msk.bf16.vlgmr.msra.gmra.mrb[16].mxu0 %vm847_vm4, %v3371_v54 }
 0x327   : > { %v3149_v13 = vpop.permute.xlu0 %3148 }
 0x360   : > { %v1124_v48 = vpop.f32.mrb[0].mxu1 }
 0x361   : > { %v3411_v58 = vpop.f32.mrb[1].mxu1 }
 0x362   : > { %v1127_v26 = vpop.f32.mrb[2].mxu1 }
 0x363   : > { %v3412_v38 = vpop.f32.mrb[3].mxu1 }
 0x37c   : > { %v1668_v23 = vpop.f32.mrb[4].mxu1 }
 0x37d   : > { %v3423_v50 = vpop.f32.mrb[5].mxu1 }
 0x37e   : > { %v1671_v17 = vpop.f32.mrb[6].mxu1 }
 0x37f   : > { %v3424_v32 = vpop.f32.mrb[7].mxu1 }
 0x3a7   : > { %v1079_v0 = vpop.f32.mrb[0].mxu0 }
 0x3a8   : > { %v3405_v43 = vpop.f32.mrb[1].mxu0  ;;  %v1125_v60 = vadd.f32 %v1124_v48, %v1079_v0 }
 0x3a9   : > { %v1082_v36 = vpop.f32.mrb[2].mxu0 }
 0x3aa   : > { %v3406_v31 = vpop.f32.mrb[3].mxu0 }
 0x3af   : > { %v1346_v8 = vpop.f32.mrb[4].mxu0 }
 0x3b0   : > { %v1352_v52 = vadd.f32 %v1346_v8, %v1125_v60  ;;  %v3417_v55 = vpop.f32.mrb[5].mxu0 }
 0x3b1   : > { %v1349_v19 = vpop.f32.mrb[6].mxu0 }
 0x3b2   : > { %v1674_v15 = vadd.f32 %v1668_v23, %v1352_v52  ;;  %v3418_v20 = vpop.f32.mrb[7].mxu0 }
 0x3d5   : > { %v2003_v35 = vpop.f32.mrb[8].mxu0 }
 0x3d6   : > { %v2009_v41 = vadd.f32 %v2003_v35, %v1674_v15  ;;  %v3429_v46 = vpop.f32.mrb[9].mxu0 }
 0x3d7   : > { %v2006_v39 = vpop.f32.mrb[10].mxu0 }
 0x3d8   : > { %v3430_v56 = vpop.f32.mrb[11].mxu0 }
 0x3dd   : > { %v2596_v33 = vpop.f32.mrb[12].mxu0 }
 0x3de   : > { %v3441_v62 = vpop.f32.mrb[13].mxu0 }
 0x3df   : > { %v2599_v16 = vpop.f32.mrb[14].mxu0 }
 0x3e0   : > { %v3442_v5 = vpop.f32.mrb[15].mxu0 }
 0x3e3   : > { %v2338_v7 = vpop.f32.mrb[8].mxu1 }
 0x3e4   : > { %v2344_v49 = vadd.f32 %v2338_v7, %v2009_v41  ;;  %v3435_v28 = vpop.f32.mrb[9].mxu1 }
 0x3e5   : > { %v2341_v47 = vpop.f32.mrb[10].mxu1 }
 0x3e6   : > { %v2602_v45 = vadd.f32 %v2596_v33, %v2344_v49  ;;  %v3436_v22 = vpop.f32.mrb[11].mxu1 }
 0x3eb   : > { %v2867_v1 = vpop.f32.mrb[12].mxu1 }
 0x3ec   : > { %v2873_v30 = vadd.f32 %v2867_v1, %v2602_v45  ;;  %v3447_v63 = vpop.f32.mrb[13].mxu1 }
 0x3ed   : > { %v2870_v25 = vpop.f32.mrb[14].mxu1 }
 0x3ee   : > { %v3448_v59 = vpop.f32.mrb[15].mxu1 }
 0x3f0   : > { %v3138_v42 = vpop.f32.mrb[16].mxu0 }
 0x3f1   : > { %v3144_v4 = vadd.f32 %v3138_v42, %v2873_v30  ;;  %v3453_v21 = vpop.f32.mrb[17].mxu0 }
 0x3f2   : > { %v3141_v34 = vpop.f32.mrb[18].mxu0 }
 0x3f3   : > { %v3151_v14 = vadd.f32 %v3149_v13, %v3144_v4  ;;  %v3454_v44 = vpop.f32.mrb[19].mxu0 }
 0x3f5   : > { %v3152_v3 = vpack.c.bf16 %v3151_v14, %v3151_v14  ;;  %v3156_v12 = vsel %vm3155_vm12, %v3151_v14, 0.0 }
 0x3f6   : > { %3157 = vadd.xlane.f32.xlu1 %v3156_v12 }
 0x3f7   : > { %3154 = vst.msk [vmem:[%s253_s28] sm:$0xf] %vm3153_vm13, %v3152_v3 }
 0x483   : > { %v3158_v29 = vpop.xlane.xlu1 %3157 }
 0x484   : > { %v3159_v37 = vmul.f32 0.015625, %v3158_v29  ;;  %3166 = vst.msk [vmem:[%s257_s8] sm:$0xff] %vm3165_vm14, %v3158_v29 }
 0x486   : > { %v3160_v11 = vsub.f32 %v3151_v14, %v3159_v37 }
 0x488   : > { %v3161_v51 = vmul.f32 %v3160_v11, %v3160_v11 }
 0x48a   : > { %v3162_v18 = vsel %vm3155_vm12, %v3161_v51, 0.0 }
 0x48b   : > { %3163 = vadd.xlane.f32.xlu0 %v3162_v18 }
 0x518   : > { %v3164_v40 = vpop.xlane.xlu0 %3163 }
 0x519   : > { %3168 = vst.msk [vmem:[%s257_s8] sm:$0xff] %vm3167_vm15, %v3164_v40 }
 0x51a PF: > { %s17_s21 = sadd.s32 1, %s3492_s21  }
 0x51b   : > { %p14_p4 = scmp.ge.s32.totalorder %s17_s21, 4  }
 0x51d   :  { %16 = sbr.rel (!%p14_p4) target bundleno = 1 (0x1), region = 90 }

</bundles_post_ra>
